<compile_context>
chip_gen: v6e
topology: v6e:2x2x1
jax: 0.10.0
libtpu: 0.0.40
codegen_flags: <defaults>
</compile_context>

<pallas_src>
import functools
import math

import jax
import jax.numpy as jnp
import numpy as np
from jax import lax
from jax.experimental import pallas as pl
from jax.experimental.pallas import tpu as pltpu

NUM_LABELS = 10
LANE = 128          # lane-dense padding of the label dimension
EPS = 1e-5


def net_kernel(x_ref,
               w1, b1, w2, b2, w3, b3, w4, b4, lwc, lbc,
               o_ref, *, W, TB):
    """One grid step processes TB batch elements as a flat (TB*W, C) tile."""
    rows = TB * W
    x = x_ref[...]                                        # (rows, 640) bf16

    # Per-row position within its own example: stops the width-3 conv from
    # bleeding across packed examples (and across the tile edges).
    w_idx = lax.broadcasted_iota(jnp.int32, (rows, 1), 0) % W
    has_prev = w_idx > 0
    has_next = w_idx < (W - 1)

    def conv_bn_relu(h, w_ref, b_ref):
        # h: (rows, K) bf16 ; w_ref: (3*K, Cout) bf16 with the three width taps
        # stacked on rows and the BN(eval) scale already folded in; b_ref holds
        # the folded BN shift + conv bias.  Three accumulating matmuls against
        # static weight sub-blocks replace the old concat([h_prev, h, h_next]).
        K = h.shape[1]
        y = jnp.dot(h, w_ref[K:2 * K, :], preferred_element_type=jnp.float32)
        yp = jnp.dot(h, w_ref[0:K, :], preferred_element_type=jnp.float32)
        yn = jnp.dot(h, w_ref[2 * K:3 * K, :], preferred_element_type=jnp.float32)
        y += b_ref[...]
        # dot() is row-wise independent, so shifting the narrower f32 results
        # is equivalent to shifting the bf16 inputs; example boundaries (and
        # the wrap-around rows) are zeroed on the f32 accumulator.
        y += jnp.where(has_prev, jnp.roll(yp, 1, axis=0), 0.0)
        y += jnp.where(has_next, jnp.roll(yn, -1, axis=0), 0.0)
        return jnp.maximum(y, 0.0).astype(jnp.bfloat16)

    h = conv_bn_relu(x, w1, b1)                           # (rows, 256)
    h = conv_bn_relu(h, w2, b2)                           # (rows, 384)
    h = conv_bn_relu(h, w3, b3)                           # (rows, 384)
    h = conv_bn_relu(h, w4, b4)                           # (rows, 128)

    # head2: Linear(128,1024) -> Linear(1024,10) folded offline into a single
    # lane-padded (128, 128) matmul + bias (no nonlinearity between them).
    h = jnp.dot(h, lwc[...], preferred_element_type=jnp.float32) + lbc[...]

    # max_pool2d (1,2)/(1,2)/(0,1) along W, per example.  Window j covers the
    # original indices {2j-1, 2j}; out-of-range taps are ignored.  Every row is
    # a full 128-lane vector and there is a single output store (bf16).
    h3 = h.reshape(TB, W, LANE)
    w_out = W // 2 + 1
    pooled = []
    for j in range(w_out):
        lo, hi = 2 * j - 1, 2 * j
        if lo < 0:
            pooled.append(h3[:, hi:hi + 1, :])
        elif hi > W - 1:
            pooled.append(h3[:, lo:lo + 1, :])
        else:
            pooled.append(jnp.maximum(h3[:, lo:lo + 1, :], h3[:, hi:hi + 1, :]))
    o_ref[...] = jnp.concatenate(pooled, axis=1).astype(o_ref.dtype)


def init_params(key):
    specs = [(128, 256, 5), (256, 384, 1), (384, 384, 1), (384, 128, 1)]
    keys = iter(jax.random.split(key, 6 * len(specs) + 4))
    params = {"conv": [], "bn": []}
    for cin, cout, kh in specs:
        fan_in = cin * kh * 3
        w = jax.random.normal(next(keys), (cout, cin, kh, 3), jnp.float32) * (2.0 / fan_in) ** 0.5
        b = 0.1 * jax.random.normal(next(keys), (cout,), jnp.float32)
        gamma = 1.0 + 0.1 * jax.random.normal(next(keys), (cout,), jnp.float32)
        beta = 0.1 * jax.random.normal(next(keys), (cout,), jnp.float32)
        mean = 0.1 * jax.random.normal(next(keys), (cout,), jnp.float32)
        var = jax.random.uniform(next(keys), (cout,), jnp.float32, 0.5, 1.5)
        params["conv"].append((w, b))
        params["bn"].append((gamma, beta, mean, var))
    lw1 = jax.random.normal(next(keys), (1024, 128), jnp.float32) * (2.0 / 128) ** 0.5
    lb1 = 0.05 * jax.random.normal(next(keys), (1024,), jnp.float32)
    lw2 = jax.random.normal(next(keys), (NUM_LABELS, 1024), jnp.float32) * (2.0 / 1024) ** 0.5
    lb2 = 0.05 * jax.random.normal(next(keys), (NUM_LABELS,), jnp.float32)
    params["lin"] = [(lw1, lb1), (lw2, lb2)]
    return params


def pack_kernel_args(params):
    """PyTorch-layout params -> kernel arrays: BN(eval) scale folded into bf16
    conv weights, BN shift + conv bias folded into one f32 bias, and the two
    head2 Linears folded into a single lane-padded (128, 128) matrix."""
    hi = lax.Precision.HIGHEST
    args = []
    for (w, b), (g, bt, m, v) in zip(params["conv"], params["bn"]):
        cout, cin, kh, kw = w.shape                       # kw == 3
        # (cout,cin,kh,kw) -> (kw, cin, kh, cout) -> (kw*cin*kh, cout);
        # per-tap feature index f = ci*KH + khi matches the x unfold below.
        wt = jnp.transpose(w, (3, 1, 2, 0)).reshape(kw * cin * kh, cout)
        scale = g / jnp.sqrt(v + EPS)                     # BN(eval) scale ...
        bias = bt + (b - m) * scale                       # ... shift + conv bias
        args += [(wt * scale[None, :]).astype(jnp.bfloat16),
                 bias[None, :].astype(jnp.float32)]
    (lw1, lb1), (lw2, lb2) = params["lin"]
    wc = jnp.dot(lw1.T, lw2.T, precision=hi)              # (128, 10)
    bc = jnp.dot(lw2, lb1, precision=hi) + lb2            # (10,)
    wc = jnp.pad(wc, ((0, 0), (0, LANE - NUM_LABELS)))    # lane-dense (128,128)
    bc = jnp.pad(bc, (0, LANE - NUM_LABELS))
    args += [wc.astype(jnp.bfloat16), bc[None, :].astype(jnp.float32)]
    return args


def _pick_tb(n, w, target_rows=512, max_rows=1024):
    """Batch elements per grid step.  Prefer (TB*W) % 8 == 0, rows near
    target_rows (MXU fill / per-step-overhead amortisation), exact divisors of
    N (no padding) and a batch grid of length >= 2 (v7x megacore)."""
    best = None
    for tb in range(1, n + 1):
        rows = tb * w
        if rows > max_rows:
            break
        if rows % 8:
            continue
        if n >= 2 and pl.cdiv(n, tb) < 2:                 # keep >= 2 grid steps
            continue
        if n % tb:
            continue
        best = tb
        if rows >= target_rows:
            break
    if best is None:
        # No clean divisor: pad the batch instead of serialising it into one
        # oversized single tile.
        step = 8 // math.gcd(w, 8)                        # smallest rows%8==0 TB
        best = step
        while ((best + step) * w <= min(max_rows, target_rows)
               and (n < 2 or pl.cdiv(n, best + step) >= 2)):
            best += step
    return best


def net_forward(x, params):
    # x: NCHW (N, 128, 5, W), exactly like the PyTorch module input.
    N, C, H, W = x.shape
    assert C == 128 and H == 5
    w_out = W // 2 + 1
    feat = C * H                                          # 640

    # im2col over the (fully consumed) height dim, flattened to rows:
    # row r = (n, w), feature index f = c*H + h; bf16 activations for the MXU.
    # NOTE: wrapper-side XLA pass over the input (outside the kernel roofline).
    x_rows = jnp.transpose(x, (0, 3, 1, 2)).reshape(N * W, feat).astype(jnp.bfloat16)
    args = pack_kernel_args(params)

    TB = _pick_tb(N, W)
    n_pad = pl.cdiv(N, TB) * TB
    if n_pad != N:                                        # pad batch, never TB=N
        x_rows = jnp.pad(x_rows, ((0, (n_pad - N) * W), (0, 0)))
    grid = (n_pad // TB,)

    def const_spec(a):                                    # grid-invariant weights
        nd = a.ndim
        return pl.BlockSpec(a.shape, lambda n, _nd=nd: (0,) * _nd)

    in_specs = ([pl.BlockSpec((TB * W, feat), lambda n: (n, 0))]
                + [const_spec(a) for a in args])
    out_spec = pl.BlockSpec((TB, w_out, LANE), lambda n: (n, 0, 0))

    out = pl.pallas_call(
        functools.partial(net_kernel, W=W, TB=TB),
        out_shape=jax.ShapeDtypeStruct((n_pad, w_out, LANE), jnp.bfloat16),
        grid_spec=pltpu.PrefetchScalarGridSpec(
            num_scalar_prefetch=0,
            grid=grid,
            in_specs=in_specs,
            out_specs=out_spec),
        compiler_params=pltpu.CompilerParams(
            dimension_semantics=("parallel",),            # batch is independent
            vmem_limit_bytes=32 * 1024 * 1024),
    )(x_rows, *args)

    # (n_pad, w_out, 128) bf16 -> keep the 10 real labels, PyTorch layout, f32.
    out = out[:N, :, :NUM_LABELS].astype(jnp.float32)
    return jnp.transpose(out, (0, 2, 1))                  # (N, 10, w_out)


def net_reference(x, params):
    """Pure-JAX f32 reference matching the PyTorch forward (BN in eval mode)."""
    hi = lax.Precision.HIGHEST
    h = x
    for (w, b), (g, bt, m, v) in zip(params["conv"], params["bn"]):
        h = lax.conv_general_dilated(
            h, w, window_strides=(1, 1), padding=((0, 0), (1, 1)),
            dimension_numbers=("NCHW", "OIHW", "NCHW"), precision=hi)
        h = h + b[None, :, None, None]
        h = (h - m[None, :, None, None]) / jnp.sqrt(v[None, :, None, None] + EPS)
        h = h * g[None, :, None, None] + bt[None, :, None, None]
        h = jnp.maximum(h, 0.0)
    h = jnp.squeeze(h, axis=2)                            # (N, 128, W)
    h = jnp.transpose(h, (0, 2, 1))                       # (N, W, 128)
    (lw1, lb1), (lw2, lb2) = params["lin"]
    h = jnp.dot(h, lw1.T, precision=hi) + lb1
    h = jnp.dot(h, lw2.T, precision=hi) + lb2             # (N, W, 10)
    h = jnp.transpose(h, (0, 2, 1))                       # (N, 10, W)
    hp = jnp.pad(h, ((0, 0), (0, 0), (1, 1)), constant_values=-jnp.inf)
    n, l, wp = hp.shape                                   # even W: wp = 2*(W//2+1)
    return jnp.max(hp.reshape(n, l, wp // 2, 2), axis=-1)


if __name__ == "__main__":
    key = jax.random.PRNGKey(0)
    kp, kx = jax.random.split(key)
    params = init_params(kp)

    N, C, H, W = 2, 128, 5, 8          # H must be 5 (consumed by the (5,3) conv)
    x = jax.random.normal(kx, (N, C, H, W), jnp.float32)

    out = jax.block_until_ready(net_forward(x, params))
    ref = net_reference(x, params)

    assert out.shape == (N, NUM_LABELS, W // 2 + 1)
    # bf16 MXU math (f32 accumulation) + folded/re-quantised weights vs the
    # f32 reference -> looser tolerance.
    np.testing.assert_allclose(np.asarray(out), np.asarray(ref),
                               rtol=5e-2, atol=1e-1)
    print("KERNEL_OK")
</pallas_src>

<mosaic_0001>
module attributes {stable_mosaic.version = 11 : i64} {
  func.func @net_kernel(%arg0: i32, %arg1: memref<8x640xbf16, #tpu.memory_space<vmem>>, %arg2: memref<1920x256xbf16, #tpu.memory_space<vmem>>, %arg3: memref<1x256xf32, #tpu.memory_space<vmem>>, %arg4: memref<768x384xbf16, #tpu.memory_space<vmem>>, %arg5: memref<1x384xf32, #tpu.memory_space<vmem>>, %arg6: memref<1152x384xbf16, #tpu.memory_space<vmem>>, %arg7: memref<1x384xf32, #tpu.memory_space<vmem>>, %arg8: memref<1152x128xbf16, #tpu.memory_space<vmem>>, %arg9: memref<1x128xf32, #tpu.memory_space<vmem>>, %arg10: memref<128x128xbf16, #tpu.memory_space<vmem>>, %arg11: memref<1x128xf32, #tpu.memory_space<vmem>>, %arg12: memref<1x5x128xbf16, #tpu.memory_space<vmem>>) attributes {dimension_semantics = [#tpu.dimension_semantics<parallel>], iteration_bounds = array<i64: 2>, scalar_prefetch = 0 : i64, scratch_operands = 0 : i64, tpu.core_type = #tpu.core_type<tc>, window_params = [{transform_indices = @transform_0, window_bounds = array<i64: 8, 640>}, {pipeline_mode = #tpu.pipeline_mode<synchronous>, transform_indices = @transform_1, window_bounds = array<i64: 1920, 256>}, {pipeline_mode = #tpu.pipeline_mode<synchronous>, transform_indices = @transform_2, window_bounds = array<i64: 1, 256>}, {pipeline_mode = #tpu.pipeline_mode<synchronous>, transform_indices = @transform_3, window_bounds = array<i64: 768, 384>}, {pipeline_mode = #tpu.pipeline_mode<synchronous>, transform_indices = @transform_4, window_bounds = array<i64: 1, 384>}, {pipeline_mode = #tpu.pipeline_mode<synchronous>, transform_indices = @transform_5, window_bounds = array<i64: 1152, 384>}, {pipeline_mode = #tpu.pipeline_mode<synchronous>, transform_indices = @transform_6, window_bounds = array<i64: 1, 384>}, {pipeline_mode = #tpu.pipeline_mode<synchronous>, transform_indices = @transform_7, window_bounds = array<i64: 1152, 128>}, {pipeline_mode = #tpu.pipeline_mode<synchronous>, transform_indices = @transform_8, window_bounds = array<i64: 1, 128>}, {pipeline_mode = #tpu.pipeline_mode<synchronous>, transform_indices = @transform_9, window_bounds = array<i64: 128, 128>}, {pipeline_mode = #tpu.pipeline_mode<synchronous>, transform_indices = @transform_10, window_bounds = array<i64: 1, 128>}, {transform_indices = @transform_11, window_bounds = array<i64: 1, 5, 128>}]} {
    %c0 = arith.constant 0 : index
    %c0_0 = arith.constant 0 : index
    %0 = vector.load %arg1[%c0, %c0_0] : memref<8x640xbf16, #tpu.memory_space<vmem>>, vector<8x640xbf16>
    %1 = tpu.iota {dimensions = array<i32: 0>} : vector<8x1xi32>
    %c8_i32 = arith.constant 8 : i32
    %c0_i32 = arith.constant 0 : i32
    %2 = arith.cmpi eq, %c8_i32, %c0_i32 : i32
    %c1_i32 = arith.constant 1 : i32
    %3 = arith.select %2, %c1_i32, %c8_i32 : i32
    %4 = vector.broadcast %3 : i32 to vector<8x1xi32>
    %5 = arith.remsi %1, %4 : vector<8x1xi32>
    %c0_i32_1 = arith.constant 0 : i32
    %6 = vector.broadcast %c0_i32_1 : i32 to vector<8x1xi32>
    %7 = arith.cmpi ne, %5, %6 : vector<8x1xi32>
    %c0_i32_2 = arith.constant 0 : i32
    %8 = vector.broadcast %c0_i32_2 : i32 to vector<8x1xi32>
    %9 = arith.cmpi slt, %5, %8 : vector<8x1xi32>
    %c0_i32_3 = arith.constant 0 : i32
    %10 = arith.cmpi slt, %3, %c0_i32_3 : i32
    %11 = vector.broadcast %10 : i1 to vector<8x1xi1>
    %12 = vector.broadcast %11 : vector<8x1xi1> to vector<8x1xi1>
    %13 = arith.xori %9, %12 : vector<8x1xi1>
    %14 = arith.andi %13, %7 : vector<8x1xi1>
    %15 = vector.broadcast %3 : i32 to vector<8x1xi32>
    %16 = arith.addi %5, %15 : vector<8x1xi32>
    %17 = arith.select %14, %16, %5 : vector<8x1xi1>, vector<8x1xi32>
    %c0_i32_4 = arith.constant 0 : i32
    %18 = vector.broadcast %c0_i32_4 : i32 to vector<8x1xi32>
    %19 = arith.cmpi sgt, %17, %18 : vector<8x1xi32>
    %c7_i32 = arith.constant 7 : i32
    %20 = vector.broadcast %c7_i32 : i32 to vector<8x1xi32>
    %21 = arith.cmpi slt, %17, %20 : vector<8x1xi32>
    %c640 = arith.constant 640 : index
    %c0_5 = arith.constant 0 : index
    %22 = vector.load %arg2[%c640, %c0_5] : memref<1920x256xbf16, #tpu.memory_space<vmem>>, vector<640x256xbf16>
    %cst = arith.constant dense<0.000000e+00> : vector<8x256xf32>
    %23 = tpu.matmul %0, %22, %cst {dimension_numbers = #tpu.dot_dimension_numbers<[1], [0], [0], [1], [0, 0, 1, 1], [], []>} : vector<8x640xbf16>, vector<640x256xbf16>, vector<8x256xf32> -> vector<8x256xf32>
    %c0_6 = arith.constant 0 : index
    %c0_7 = arith.constant 0 : index
    %24 = vector.load %arg2[%c0_6, %c0_7] : memref<1920x256xbf16, #tpu.memory_space<vmem>>, vector<640x256xbf16>
    %cst_8 = arith.constant dense<0.000000e+00> : vector<8x256xf32>
    %25 = tpu.matmul %0, %24, %cst_8 {dimension_numbers = #tpu.dot_dimension_numbers<[1], [0], [0], [1], [0, 0, 1, 1], [], []>} : vector<8x640xbf16>, vector<640x256xbf16>, vector<8x256xf32> -> vector<8x256xf32>
    %c1280 = arith.constant 1280 : index
    %c0_9 = arith.constant 0 : index
    %26 = vector.load %arg2[%c1280, %c0_9] : memref<1920x256xbf16, #tpu.memory_space<vmem>>, vector<640x256xbf16>
    %cst_10 = arith.constant dense<0.000000e+00> : vector<8x256xf32>
    %27 = tpu.matmul %0, %26, %cst_10 {dimension_numbers = #tpu.dot_dimension_numbers<[1], [0], [0], [1], [0, 0, 1, 1], [], []>} : vector<8x640xbf16>, vector<640x256xbf16>, vector<8x256xf32> -> vector<8x256xf32>
    %c0_11 = arith.constant 0 : index
    %c0_12 = arith.constant 0 : index
    %28 = vector.load %arg3[%c0_11, %c0_12] : memref<1x256xf32, #tpu.memory_space<vmem>>, vector<1x256xf32>
    %29 = vector.broadcast %28 : vector<1x256xf32> to vector<8x256xf32>
    %30 = arith.addf %23, %29 : vector<8x256xf32>
    %31 = vector.extract_strided_slice %25 {offsets = [7, 0], sizes = [1, 256], strides = [1, 1]} : vector<8x256xf32> to vector<1x256xf32>
    %32 = vector.extract_strided_slice %25 {offsets = [0, 0], sizes = [7, 256], strides = [1, 1]} : vector<8x256xf32> to vector<7x256xf32>
    %33 = tpu.concatenate %31, %32 in 0 : vector<1x256xf32>, vector<7x256xf32> -> vector<8x256xf32>
    %cst_13 = arith.constant 0.000000e+00 : f32
    %34 = vector.shape_cast %19 : vector<8x1xi1> to vector<8x1xi1>
    %35 = vector.broadcast %34 : vector<8x1xi1> to vector<8x256xi1>
    %36 = vector.broadcast %cst_13 : f32 to vector<8x256xf32>
    %37 = arith.select %35, %33, %36 : vector<8x256xi1>, vector<8x256xf32>
    %38 = arith.addf %30, %37 : vector<8x256xf32>
    %39 = vector.extract_strided_slice %27 {offsets = [1, 0], sizes = [7, 256], strides = [1, 1]} : vector<8x256xf32> to vector<7x256xf32>
    %40 = vector.extract_strided_slice %27 {offsets = [0, 0], sizes = [1, 256], strides = [1, 1]} : vector<8x256xf32> to vector<1x256xf32>
    %41 = tpu.concatenate %39, %40 in 0 : vector<7x256xf32>, vector<1x256xf32> -> vector<8x256xf32>
    %cst_14 = arith.constant 0.000000e+00 : f32
    %42 = vector.shape_cast %21 : vector<8x1xi1> to vector<8x1xi1>
    %43 = vector.broadcast %42 : vector<8x1xi1> to vector<8x256xi1>
    %44 = vector.broadcast %cst_14 : f32 to vector<8x256xf32>
    %45 = arith.select %43, %41, %44 : vector<8x256xi1>, vector<8x256xf32>
    %46 = arith.addf %38, %45 : vector<8x256xf32>
    %cst_15 = arith.constant 0.000000e+00 : f32
    %47 = vector.broadcast %cst_15 : f32 to vector<8x256xf32>
    %48 = arith.maximumf %46, %47 : vector<8x256xf32>
    %49 = arith.truncf %48 : vector<8x256xf32> to vector<8x256xbf16>
    %c256 = arith.constant 256 : index
    %c0_16 = arith.constant 0 : index
    %50 = vector.load %arg4[%c256, %c0_16] : memref<768x384xbf16, #tpu.memory_space<vmem>>, vector<256x384xbf16>
    %cst_17 = arith.constant dense<0.000000e+00> : vector<8x384xf32>
    %51 = tpu.matmul %49, %50, %cst_17 {dimension_numbers = #tpu.dot_dimension_numbers<[1], [0], [0], [1], [0, 0, 1, 1], [], []>} : vector<8x256xbf16>, vector<256x384xbf16>, vector<8x384xf32> -> vector<8x384xf32>
    %c0_18 = arith.constant 0 : index
    %c0_19 = arith.constant 0 : index
    %52 = vector.load %arg4[%c0_18, %c0_19] : memref<768x384xbf16, #tpu.memory_space<vmem>>, vector<256x384xbf16>
    %cst_20 = arith.constant dense<0.000000e+00> : vector<8x384xf32>
    %53 = tpu.matmul %49, %52, %cst_20 {dimension_numbers = #tpu.dot_dimension_numbers<[1], [0], [0], [1], [0, 0, 1, 1], [], []>} : vector<8x256xbf16>, vector<256x384xbf16>, vector<8x384xf32> -> vector<8x384xf32>
    %c512 = arith.constant 512 : index
    %c0_21 = arith.constant 0 : index
    %54 = vector.load %arg4[%c512, %c0_21] : memref<768x384xbf16, #tpu.memory_space<vmem>>, vector<256x384xbf16>
    %cst_22 = arith.constant dense<0.000000e+00> : vector<8x384xf32>
    %55 = tpu.matmul %49, %54, %cst_22 {dimension_numbers = #tpu.dot_dimension_numbers<[1], [0], [0], [1], [0, 0, 1, 1], [], []>} : vector<8x256xbf16>, vector<256x384xbf16>, vector<8x384xf32> -> vector<8x384xf32>
    %c0_23 = arith.constant 0 : index
    %c0_24 = arith.constant 0 : index
    %56 = vector.load %arg5[%c0_23, %c0_24] : memref<1x384xf32, #tpu.memory_space<vmem>>, vector<1x384xf32>
    %57 = vector.broadcast %56 : vector<1x384xf32> to vector<8x384xf32>
    %58 = arith.addf %51, %57 : vector<8x384xf32>
    %59 = vector.extract_strided_slice %53 {offsets = [7, 0], sizes = [1, 384], strides = [1, 1]} : vector<8x384xf32> to vector<1x384xf32>
    %60 = vector.extract_strided_slice %53 {offsets = [0, 0], sizes = [7, 384], strides = [1, 1]} : vector<8x384xf32> to vector<7x384xf32>
    %61 = tpu.concatenate %59, %60 in 0 : vector<1x384xf32>, vector<7x384xf32> -> vector<8x384xf32>
    %cst_25 = arith.constant 0.000000e+00 : f32
    %62 = vector.shape_cast %19 : vector<8x1xi1> to vector<8x1xi1>
    %63 = vector.broadcast %62 : vector<8x1xi1> to vector<8x384xi1>
    %64 = vector.broadcast %cst_25 : f32 to vector<8x384xf32>
    %65 = arith.select %63, %61, %64 : vector<8x384xi1>, vector<8x384xf32>
    %66 = arith.addf %58, %65 : vector<8x384xf32>
    %67 = vector.extract_strided_slice %55 {offsets = [1, 0], sizes = [7, 384], strides = [1, 1]} : vector<8x384xf32> to vector<7x384xf32>
    %68 = vector.extract_strided_slice %55 {offsets = [0, 0], sizes = [1, 384], strides = [1, 1]} : vector<8x384xf32> to vector<1x384xf32>
    %69 = tpu.concatenate %67, %68 in 0 : vector<7x384xf32>, vector<1x384xf32> -> vector<8x384xf32>
    %cst_26 = arith.constant 0.000000e+00 : f32
    %70 = vector.shape_cast %21 : vector<8x1xi1> to vector<8x1xi1>
    %71 = vector.broadcast %70 : vector<8x1xi1> to vector<8x384xi1>
    %72 = vector.broadcast %cst_26 : f32 to vector<8x384xf32>
    %73 = arith.select %71, %69, %72 : vector<8x384xi1>, vector<8x384xf32>
    %74 = arith.addf %66, %73 : vector<8x384xf32>
    %cst_27 = arith.constant 0.000000e+00 : f32
    %75 = vector.broadcast %cst_27 : f32 to vector<8x384xf32>
    %76 = arith.maximumf %74, %75 : vector<8x384xf32>
    %77 = arith.truncf %76 : vector<8x384xf32> to vector<8x384xbf16>
    %c384 = arith.constant 384 : index
    %c0_28 = arith.constant 0 : index
    %78 = vector.load %arg6[%c384, %c0_28] : memref<1152x384xbf16, #tpu.memory_space<vmem>>, vector<384x384xbf16>
    %cst_29 = arith.constant dense<0.000000e+00> : vector<8x384xf32>
    %79 = tpu.matmul %77, %78, %cst_29 {dimension_numbers = #tpu.dot_dimension_numbers<[1], [0], [0], [1], [0, 0, 1, 1], [], []>} : vector<8x384xbf16>, vector<384x384xbf16>, vector<8x384xf32> -> vector<8x384xf32>
    %c0_30 = arith.constant 0 : index
    %c0_31 = arith.constant 0 : index
    %80 = vector.load %arg6[%c0_30, %c0_31] : memref<1152x384xbf16, #tpu.memory_space<vmem>>, vector<384x384xbf16>
    %cst_32 = arith.constant dense<0.000000e+00> : vector<8x384xf32>
    %81 = tpu.matmul %77, %80, %cst_32 {dimension_numbers = #tpu.dot_dimension_numbers<[1], [0], [0], [1], [0, 0, 1, 1], [], []>} : vector<8x384xbf16>, vector<384x384xbf16>, vector<8x384xf32> -> vector<8x384xf32>
    %c768 = arith.constant 768 : index
    %c0_33 = arith.constant 0 : index
    %82 = vector.load %arg6[%c768, %c0_33] : memref<1152x384xbf16, #tpu.memory_space<vmem>>, vector<384x384xbf16>
    %cst_34 = arith.constant dense<0.000000e+00> : vector<8x384xf32>
    %83 = tpu.matmul %77, %82, %cst_34 {dimension_numbers = #tpu.dot_dimension_numbers<[1], [0], [0], [1], [0, 0, 1, 1], [], []>} : vector<8x384xbf16>, vector<384x384xbf16>, vector<8x384xf32> -> vector<8x384xf32>
    %c0_35 = arith.constant 0 : index
    %c0_36 = arith.constant 0 : index
    %84 = vector.load %arg7[%c0_35, %c0_36] : memref<1x384xf32, #tpu.memory_space<vmem>>, vector<1x384xf32>
    %85 = vector.broadcast %84 : vector<1x384xf32> to vector<8x384xf32>
    %86 = arith.addf %79, %85 : vector<8x384xf32>
    %87 = vector.extract_strided_slice %81 {offsets = [7, 0], sizes = [1, 384], strides = [1, 1]} : vector<8x384xf32> to vector<1x384xf32>
    %88 = vector.extract_strided_slice %81 {offsets = [0, 0], sizes = [7, 384], strides = [1, 1]} : vector<8x384xf32> to vector<7x384xf32>
    %89 = tpu.concatenate %87, %88 in 0 : vector<1x384xf32>, vector<7x384xf32> -> vector<8x384xf32>
    %cst_37 = arith.constant 0.000000e+00 : f32
    %90 = vector.shape_cast %19 : vector<8x1xi1> to vector<8x1xi1>
    %91 = vector.broadcast %90 : vector<8x1xi1> to vector<8x384xi1>
    %92 = vector.broadcast %cst_37 : f32 to vector<8x384xf32>
    %93 = arith.select %91, %89, %92 : vector<8x384xi1>, vector<8x384xf32>
    %94 = arith.addf %86, %93 : vector<8x384xf32>
    %95 = vector.extract_strided_slice %83 {offsets = [1, 0], sizes = [7, 384], strides = [1, 1]} : vector<8x384xf32> to vector<7x384xf32>
    %96 = vector.extract_strided_slice %83 {offsets = [0, 0], sizes = [1, 384], strides = [1, 1]} : vector<8x384xf32> to vector<1x384xf32>
    %97 = tpu.concatenate %95, %96 in 0 : vector<7x384xf32>, vector<1x384xf32> -> vector<8x384xf32>
    %cst_38 = arith.constant 0.000000e+00 : f32
    %98 = vector.shape_cast %21 : vector<8x1xi1> to vector<8x1xi1>
    %99 = vector.broadcast %98 : vector<8x1xi1> to vector<8x384xi1>
    %100 = vector.broadcast %cst_38 : f32 to vector<8x384xf32>
    %101 = arith.select %99, %97, %100 : vector<8x384xi1>, vector<8x384xf32>
    %102 = arith.addf %94, %101 : vector<8x384xf32>
    %cst_39 = arith.constant 0.000000e+00 : f32
    %103 = vector.broadcast %cst_39 : f32 to vector<8x384xf32>
    %104 = arith.maximumf %102, %103 : vector<8x384xf32>
    %105 = arith.truncf %104 : vector<8x384xf32> to vector<8x384xbf16>
    %c384_40 = arith.constant 384 : index
    %c0_41 = arith.constant 0 : index
    %106 = vector.load %arg8[%c384_40, %c0_41] : memref<1152x128xbf16, #tpu.memory_space<vmem>>, vector<384x128xbf16>
    %cst_42 = arith.constant dense<0.000000e+00> : vector<8x128xf32>
    %107 = tpu.matmul %105, %106, %cst_42 {dimension_numbers = #tpu.dot_dimension_numbers<[1], [0], [0], [1], [0, 0, 1, 1], [], []>} : vector<8x384xbf16>, vector<384x128xbf16>, vector<8x128xf32> -> vector<8x128xf32>
    %c0_43 = arith.constant 0 : index
    %c0_44 = arith.constant 0 : index
    %108 = vector.load %arg8[%c0_43, %c0_44] : memref<1152x128xbf16, #tpu.memory_space<vmem>>, vector<384x128xbf16>
    %cst_45 = arith.constant dense<0.000000e+00> : vector<8x128xf32>
    %109 = tpu.matmul %105, %108, %cst_45 {dimension_numbers = #tpu.dot_dimension_numbers<[1], [0], [0], [1], [0, 0, 1, 1], [], []>} : vector<8x384xbf16>, vector<384x128xbf16>, vector<8x128xf32> -> vector<8x128xf32>
    %c768_46 = arith.constant 768 : index
    %c0_47 = arith.constant 0 : index
    %110 = vector.load %arg8[%c768_46, %c0_47] : memref<1152x128xbf16, #tpu.memory_space<vmem>>, vector<384x128xbf16>
    %cst_48 = arith.constant dense<0.000000e+00> : vector<8x128xf32>
    %111 = tpu.matmul %105, %110, %cst_48 {dimension_numbers = #tpu.dot_dimension_numbers<[1], [0], [0], [1], [0, 0, 1, 1], [], []>} : vector<8x384xbf16>, vector<384x128xbf16>, vector<8x128xf32> -> vector<8x128xf32>
    %c0_49 = arith.constant 0 : index
    %c0_50 = arith.constant 0 : index
    %112 = vector.load %arg9[%c0_49, %c0_50] : memref<1x128xf32, #tpu.memory_space<vmem>>, vector<1x128xf32>
    %113 = vector.broadcast %112 : vector<1x128xf32> to vector<8x128xf32>
    %114 = arith.addf %107, %113 : vector<8x128xf32>
    %115 = vector.extract_strided_slice %109 {offsets = [7, 0], sizes = [1, 128], strides = [1, 1]} : vector<8x128xf32> to vector<1x128xf32>
    %116 = vector.extract_strided_slice %109 {offsets = [0, 0], sizes = [7, 128], strides = [1, 1]} : vector<8x128xf32> to vector<7x128xf32>
    %117 = tpu.concatenate %115, %116 in 0 : vector<1x128xf32>, vector<7x128xf32> -> vector<8x128xf32>
    %cst_51 = arith.constant 0.000000e+00 : f32
    %118 = vector.shape_cast %19 : vector<8x1xi1> to vector<8x1xi1>
    %119 = vector.broadcast %118 : vector<8x1xi1> to vector<8x128xi1>
    %120 = vector.broadcast %cst_51 : f32 to vector<8x128xf32>
    %121 = arith.select %119, %117, %120 : vector<8x128xi1>, vector<8x128xf32>
    %122 = arith.addf %114, %121 : vector<8x128xf32>
    %123 = vector.extract_strided_slice %111 {offsets = [1, 0], sizes = [7, 128], strides = [1, 1]} : vector<8x128xf32> to vector<7x128xf32>
    %124 = vector.extract_strided_slice %111 {offsets = [0, 0], sizes = [1, 128], strides = [1, 1]} : vector<8x128xf32> to vector<1x128xf32>
    %125 = tpu.concatenate %123, %124 in 0 : vector<7x128xf32>, vector<1x128xf32> -> vector<8x128xf32>
    %cst_52 = arith.constant 0.000000e+00 : f32
    %126 = vector.shape_cast %21 : vector<8x1xi1> to vector<8x1xi1>
    %127 = vector.broadcast %126 : vector<8x1xi1> to vector<8x128xi1>
    %128 = vector.broadcast %cst_52 : f32 to vector<8x128xf32>
    %129 = arith.select %127, %125, %128 : vector<8x128xi1>, vector<8x128xf32>
    %130 = arith.addf %122, %129 : vector<8x128xf32>
    %cst_53 = arith.constant 0.000000e+00 : f32
    %131 = vector.broadcast %cst_53 : f32 to vector<8x128xf32>
    %132 = arith.maximumf %130, %131 : vector<8x128xf32>
    %133 = arith.truncf %132 : vector<8x128xf32> to vector<8x128xbf16>
    %c0_54 = arith.constant 0 : index
    %c0_55 = arith.constant 0 : index
    %134 = vector.load %arg10[%c0_54, %c0_55] : memref<128x128xbf16, #tpu.memory_space<vmem>>, vector<128x128xbf16>
    %cst_56 = arith.constant dense<0.000000e+00> : vector<8x128xf32>
    %135 = tpu.matmul %133, %134, %cst_56 {dimension_numbers = #tpu.dot_dimension_numbers<[1], [0], [0], [1], [0, 0, 1, 1], [], []>} : vector<8x128xbf16>, vector<128x128xbf16>, vector<8x128xf32> -> vector<8x128xf32>
    %c0_57 = arith.constant 0 : index
    %c0_58 = arith.constant 0 : index
    %136 = vector.load %arg11[%c0_57, %c0_58] : memref<1x128xf32, #tpu.memory_space<vmem>>, vector<1x128xf32>
    %137 = vector.broadcast %136 : vector<1x128xf32> to vector<8x128xf32>
    %138 = arith.addf %135, %137 : vector<8x128xf32>
    %139 = vector.shape_cast %138 : vector<8x128xf32> to vector<1x8x128xf32>
    %140 = vector.extract_strided_slice %139 {offsets = [0, 0, 0], sizes = [1, 1, 128], strides = [1, 1, 1]} : vector<1x8x128xf32> to vector<1x1x128xf32>
    %141 = vector.extract_strided_slice %139 {offsets = [0, 1, 0], sizes = [1, 1, 128], strides = [1, 1, 1]} : vector<1x8x128xf32> to vector<1x1x128xf32>
    %142 = vector.extract_strided_slice %139 {offsets = [0, 2, 0], sizes = [1, 1, 128], strides = [1, 1, 1]} : vector<1x8x128xf32> to vector<1x1x128xf32>
    %143 = arith.maximumf %141, %142 : vector<1x1x128xf32>
    %144 = vector.extract_strided_slice %139 {offsets = [0, 3, 0], sizes = [1, 1, 128], strides = [1, 1, 1]} : vector<1x8x128xf32> to vector<1x1x128xf32>
    %145 = vector.extract_strided_slice %139 {offsets = [0, 4, 0], sizes = [1, 1, 128], strides = [1, 1, 1]} : vector<1x8x128xf32> to vector<1x1x128xf32>
    %146 = arith.maximumf %144, %145 : vector<1x1x128xf32>
    %147 = vector.extract_strided_slice %139 {offsets = [0, 5, 0], sizes = [1, 1, 128], strides = [1, 1, 1]} : vector<1x8x128xf32> to vector<1x1x128xf32>
    %148 = vector.extract_strided_slice %139 {offsets = [0, 6, 0], sizes = [1, 1, 128], strides = [1, 1, 1]} : vector<1x8x128xf32> to vector<1x1x128xf32>
    %149 = arith.maximumf %147, %148 : vector<1x1x128xf32>
    %150 = vector.extract_strided_slice %139 {offsets = [0, 7, 0], sizes = [1, 1, 128], strides = [1, 1, 1]} : vector<1x8x128xf32> to vector<1x1x128xf32>
    %151 = tpu.concatenate %140, %143, %146, %149, %150 in 1 : vector<1x1x128xf32>, vector<1x1x128xf32>, vector<1x1x128xf32>, vector<1x1x128xf32>, vector<1x1x128xf32> -> vector<1x5x128xf32>
    %152 = arith.truncf %151 : vector<1x5x128xf32> to vector<1x5x128xbf16>
    %c0_59 = arith.constant 0 : index
    %c0_60 = arith.constant 0 : index
    %c0_61 = arith.constant 0 : index
    %153 = vector.load %arg12[%c0_59, %c0_60, %c0_61] : memref<1x5x128xbf16, #tpu.memory_space<vmem>>, vector<1x5x128xbf16>
    tpu.vector_store %arg12[%c0_59, %c0_60, %c0_61], %152 {strides = array<i32>} : memref<1x5x128xbf16, #tpu.memory_space<vmem>>, vector<1x5x128xbf16>,
    return
  }
  func.func @transform_0(%arg0: i32) -> (i32, i32) {
    %c0_i32 = arith.constant 0 : i32
    %c0_i32_0 = arith.constant 0 : i32
    return %arg0, %c0_i32 : i32, i32
  }
  func.func @transform_1(%arg0: i32) -> (i32, i32) {
    %c0_i32 = arith.constant 0 : i32
    %c0_i32_0 = arith.constant 0 : i32
    %c0_i32_1 = arith.constant 0 : i32
    return %c0_i32, %c0_i32_0 : i32, i32
  }
  func.func @transform_2(%arg0: i32) -> (i32, i32) {
    %c0_i32 = arith.constant 0 : i32
    %c0_i32_0 = arith.constant 0 : i32
    %c0_i32_1 = arith.constant 0 : i32
    return %c0_i32, %c0_i32_0 : i32, i32
  }
  func.func @transform_3(%arg0: i32) -> (i32, i32) {
    %c0_i32 = arith.constant 0 : i32
    %c0_i32_0 = arith.constant 0 : i32
    %c0_i32_1 = arith.constant 0 : i32
    return %c0_i32, %c0_i32_0 : i32, i32
  }
  func.func @transform_4(%arg0: i32) -> (i32, i32) {
    %c0_i32 = arith.constant 0 : i32
    %c0_i32_0 = arith.constant 0 : i32
    %c0_i32_1 = arith.constant 0 : i32
    return %c0_i32, %c0_i32_0 : i32, i32
  }
  func.func @transform_5(%arg0: i32) -> (i32, i32) {
    %c0_i32 = arith.constant 0 : i32
    %c0_i32_0 = arith.constant 0 : i32
    %c0_i32_1 = arith.constant 0 : i32
    return %c0_i32, %c0_i32_0 : i32, i32
  }
  func.func @transform_6(%arg0: i32) -> (i32, i32) {
    %c0_i32 = arith.constant 0 : i32
    %c0_i32_0 = arith.constant 0 : i32
    %c0_i32_1 = arith.constant 0 : i32
    return %c0_i32, %c0_i32_0 : i32, i32
  }
  func.func @transform_7(%arg0: i32) -> (i32, i32) {
    %c0_i32 = arith.constant 0 : i32
    %c0_i32_0 = arith.constant 0 : i32
    %c0_i32_1 = arith.constant 0 : i32
    return %c0_i32, %c0_i32_0 : i32, i32
  }
  func.func @transform_8(%arg0: i32) -> (i32, i32) {
    %c0_i32 = arith.constant 0 : i32
    %c0_i32_0 = arith.constant 0 : i32
    %c0_i32_1 = arith.constant 0 : i32
    return %c0_i32, %c0_i32_0 : i32, i32
  }
  func.func @transform_9(%arg0: i32) -> (i32, i32) {
    %c0_i32 = arith.constant 0 : i32
    %c0_i32_0 = arith.constant 0 : i32
    %c0_i32_1 = arith.constant 0 : i32
    return %c0_i32, %c0_i32_0 : i32, i32
  }
  func.func @transform_10(%arg0: i32) -> (i32, i32) {
    %c0_i32 = arith.constant 0 : i32
    %c0_i32_0 = arith.constant 0 : i32
    %c0_i32_1 = arith.constant 0 : i32
    return %c0_i32, %c0_i32_0 : i32, i32
  }
  func.func @transform_11(%arg0: i32) -> (i32, i32, i32) {
    %c0_i32 = arith.constant 0 : i32
    %c0_i32_0 = arith.constant 0 : i32
    %c0_i32_1 = arith.constant 0 : i32
    return %arg0, %c0_i32, %c0_i32_0 : i32, i32, i32
  }
}

</mosaic_0001>

<bundles_post_ra>
// kernel: tpu_custom_call.1
= control target key start
LH: loop header
LB: loop body
LE: loop exit
PB: predicated region body
PF: predicated region fallthrough
CT: control target
= control target key end

     0   :  { %s9618_s0 = inlined_call_operand.hbm [shape: bf16[16,640], index: 0, kind: input, shape index: {}]   ;;  %s9619_s1 = inlined_call_operand.hbm [shape: bf16[1920,256], index: 1, kind: input, shape index: {}]   ;;  %s9620_s2 = inlined_call_operand.hbm [shape: f32[1,256], index: 2, kind: input, shape index: {}]   ;;  %s9621_s3 = inlined_call_operand.hbm [shape: bf16[768,384], index: 3, kind: input, shape index: {}]   ;;  %s9622_s4 = inlined_call_operand.vmem [shape: f32[1,384], index: 4, kind: input, shape index: {}]   ;;  %s9623_s5 = inlined_call_operand.hbm [shape: bf16[1152,384], index: 5, kind: input, shape index: {}]   ;;  %s9624_s6 = inlined_call_operand.vmem [shape: f32[1,384], index: 6, kind: input, shape index: {}]   ;;  %s9625_s7 = inlined_call_operand.hbm [shape: bf16[1152,128], index: 7, kind: input, shape index: {}]   ;;  %s9626_s8 = inlined_call_operand.vmem [shape: f32[1,128], index: 8, kind: input, shape index: {}]   ;;  %s9627_s9 = inlined_call_operand.hbm [shape: bf16[128,128], index: 9, kind: input, shape index: {}]   ;;  %s9628_s10 = inlined_call_operand.vmem [shape: f32[1,128], index: 10, kind: input, shape index: {}]   ;;  %s9629_s11 = inlined_call_operand.vmem [shape: bf16[2,5,128], index: 11, kind: output, shape index: {}]  }
   0x1   :  { %9635 = sst [smem:[#allocation17_spill]] %s9619_s1 }
   0x2   :  { %9636 = sst [smem:[#allocation18_spill]] %s9620_s2 }
   0x3   :  { %16 = vsyncpa [#allocation3], 0 }
   0x4   :  { %18 = vsyncpa [#allocation3 + $0x1], 0 }
   0x5   :  { %19 = vsyncpa [#allocation5], 0 }
   0x6   :  { %20 = vsyncpa [#allocation8], 0 }
   0x7   :  { %21 = vsyncpa [#allocation11], 0  ;;  %s9177_s17 = smov 0   ;;  %s9179_s18 = smov 0  }
   0x8   :  { %s9181_s19 = smov 0   ;;  %s9183_s20 = smov 0  }
   0x9 LB: > { %s9101_s21 = smov [#allocation4]   ;;  %s9198_s23 = sadd.s32 4294967295, %s9099_s20   ;;  %s9099_s20 = sphi %s9183_s20, %s9662_s20   ;;  %s9095_s19 = sphi %s9181_s19, %s9661_s19   ;;  %s9091_s18 = sphi %s9179_s18, %s9660_s18   ;;  %s9087_s17 = sphi %s9177_s17, %s9659_s17  }
   0xa   : > { %s306_s22 = sshll.u32 %s9101_s21, 4  ;;  %p6724_p0 = scmp.ge.s32.totalorder %s9099_s20, 1  ;;  %s307_s22 = int_to_ptr.vmem [resolvable:$true] %s306_s22 }
   0xb   : > { %p9632_p1 = scmp.eq.s32.totalorder %s9198_s23, 0  ;;  %p294_p2 = scmp.lt.s32.totalorder %s9099_s20, 3 }
   0xc   : > { %s9102_s25 = smov [#allocation7]   ;;  %s9103_s28 = smov [#allocation10]  }
   0xd   : > { %p9203_p3 = pnand %p6724_p0, %p294_p2  ;;  %s330_s26 = sshll.u32 %s9102_s25, 4  ;;  %s9215_s26 = int_to_ptr.vmem [resolvable:$true] %s330_s26 }
   0xe   : > { %s9217_s29 = sshll.u32 %s9103_s28, 4  ;;  %s8880_s12 = scalar_lea.vmem %s307_s22, 30720  ;;  %s363_s29 = int_to_ptr.vmem [resolvable:$true] %s9217_s29 }
   0xf   : > { %s9637_s24 = scalar_select %p9203_p3, 1, 0 }
  0x10   : > { %p7860_p4 = pneg %p9203_p3  ;;  %p8881_p7 = scmp.ne.s32.totalorder %s307_s22, %s8880_s12 }
  0x11   : > { %p8888_p10 = scmp.lt.s32.totalorder %s307_s22, %s307_s22  ;;  %p8889_p11 = scmp.lt.s32.totalorder %s8880_s12, %s8880_s12 }
  0x12   : > { %p9211_p5 = pnand %p7860_p4, %p9632_p1 }
  0x13   : > { %p8890_p12 = por %p8889_p11, %p8888_p10 }
  0x14   : > { %p9221_p6 = pneg %p9211_p5 }
  0x16   : > { %p8883_p8 = pnand %p8881_p7, %p9221_p6 }
  0x18   : > { %p8884_p9 = pneg %p8883_p8 }
  0x1a   : > { %p8891_p13 = pnand %p8890_p12, %p8884_p9 }
  0x1c   : > { %8894 = shalt.err (!%p8891_p13)
}
  0x1d   : > { %s9104_s13 = smov 128   ;;  %s9105_s14 = smov 8  }
  0x1e   : > { %s9640_s1 = sld [smem:[#allocation17_spill]]  ;;  %s8906_s21 = scalar_lea.vmem %s9215_s26, 18432 }
  0x1f   : > { %p8907_p0 = scmp.ne.s32.totalorder %s9215_s26, %s8906_s21  ;;  %p8914_p7 = scmp.lt.s32.totalorder %s9215_s26, %s9215_s26 }
  0x20   : > { %p8915_p8 = scmp.lt.s32.totalorder %s8906_s21, %s8906_s21 }
  0x21   : > { %p8909_p2 = pnand %p8907_p0, %p9221_p6 }
  0x22   : > { %p8916_p9 = por %p8915_p8, %p8914_p7 }
  0x23   : > { %p8910_p4 = pneg %p8909_p2 }
  0x24   : > { %7863 = dma.hbm_to_vmem [thread:$0]  (!%p9211_p5), %s9640_s1, 30720, %s307_s22, [#allocation5], %s9104_s13, %s9104_s13, %s9105_s14  }
  0x25   : > { %p8917_p10 = pnand %p8916_p9, %p8910_p4 }
  0x27   : > { %8920 = shalt.err (!%p8917_p10)
}
  0x28   : > { %s9630_s25 = smov 192   ;;  %s9631_s28 = smov 12  }
  0x29   : > { %7869 = dma.hbm_to_vmem [thread:$0]  (!%p9211_p5), %s9621_s3, 18432, %s9215_s26, [#allocation8], %s9630_s25, %s9630_s25, %s9631_s28  }
  0x2a   : > { %s8932_s13 = scalar_lea.vmem %s363_s29, 9216  ;;  %p8940_p0 = scmp.lt.s32.totalorder %s363_s29, %s363_s29 }
  0x2b   : > { %p8933_p11 = scmp.ne.s32.totalorder %s363_s29, %s8932_s13  ;;  %p8941_p2 = scmp.lt.s32.totalorder %s8932_s13, %s8932_s13 }
  0x2d   : > { %p8935_p12 = pnand %p8933_p11, %p9221_p6  ;;  %p8942_p4 = por %p8941_p2, %p8940_p0 }
  0x2f   : > { %p8936_p13 = pneg %p8935_p12 }
  0x31   : > { %p8943_p7 = pnand %p8942_p4, %p8936_p13 }
  0x33   : > { %8946 = shalt.err (!%p8943_p7)
}
  0x34   : > { %s9108_s14 = smov 64   ;;  %s9109_s15 = smov 4  }
  0x35   : > { %7875 = dma.hbm_to_vmem [thread:$0]  (!%p9211_p5), %s9625_s7, 9216, %s363_s29, [#allocation11], %s9108_s14, %s9108_s14, %s9109_s15  }
  0x36   : > { %s9110_s21 = smov [#allocation6]   ;;  %s9111_s12 = smov [#allocation9]  }
  0x37   : > { %s320_s22 = sshll.u32 %s9110_s21, 4  ;;  %s346_s13 = sshll.u32 %s9111_s12, 4  ;;  %s321_s22 = int_to_ptr.vmem [resolvable:$true] %s320_s22  ;;  %s347_s13 = int_to_ptr.vmem [resolvable:$true] %s346_s13 }
  0x38   : > { %s8958_s25 = scalar_lea.vmem %s321_s22, 32  ;;  %p8966_p11 = scmp.lt.s32.totalorder %s321_s22, %s321_s22 }
  0x39   : > { %p8959_p8 = scmp.ne.s32.totalorder %s321_s22, %s8958_s25  ;;  %p8967_p12 = scmp.lt.s32.totalorder %s8958_s25, %s8958_s25 }
  0x3b   : > { %p8961_p9 = pnand %p8959_p8, %p9221_p6  ;;  %p8968_p13 = por %p8967_p12, %p8966_p11 }
  0x3d   : > { %p8962_p10 = pneg %p8961_p9 }
  0x3f   : > { %p8969_p0 = pnand %p8968_p13, %p8962_p10 }
  0x41   : > { %8972 = shalt.err (!%p8969_p0)
}
  0x42   : > { %s9641_s2 = sld [smem:[#allocation18_spill]]  ;;  %s8984_s29 = scalar_lea.vmem %s347_s13, 27648 }
  0x43   : > { %p8985_p2 = scmp.ne.s32.totalorder %s347_s13, %s8984_s29  ;;  %p8992_p8 = scmp.lt.s32.totalorder %s347_s13, %s347_s13 }
  0x44   : > { %p8993_p9 = scmp.lt.s32.totalorder %s8984_s29, %s8984_s29 }
  0x45   : > { %p8987_p4 = pnand %p8985_p2, %p9221_p6 }
  0x46   : > { %p8994_p1 = por %p8993_p9, %p8992_p8 }
  0x47   : > { %p8988_p7 = pneg %p8987_p4 }
  0x48   : > { %7866 = dma.hbm_to_vmem [thread:$0]  (!%p9211_p5), %s9641_s2, 32, %s321_s22, [#allocation5]  }
  0x49   : > { %p8995_p3 = pnand %p8994_p1, %p8988_p7 }
  0x4b   : > { %8998 = shalt.err (!%p8995_p3)
}
  0x4c   : > { %s9642_s25 = smov 12   ;;  %s9643_s16 = smov 192  }
  0x4d   : > { %7872 = dma.hbm_to_vmem [thread:$0]  (!%p9211_p5), %s9623_s5, 27648, %s347_s13, [#allocation8], %s9643_s16, %s9643_s16, %s9642_s25  }
  0x4e   : > { %s9112_s22 = smov [#allocation12]  }
  0x4f   : > { %s378_s12 = sshll.u32 %s9112_s22, 4  ;;  %s379_s12 = int_to_ptr.vmem [resolvable:$true] %s378_s12 }
  0x50   : > { %s9010_s26 = scalar_lea.vmem %s379_s12, 1024  ;;  %p9018_p1 = scmp.lt.s32.totalorder %s379_s12, %s379_s12 }
  0x51   : > { %p9011_p10 = scmp.ne.s32.totalorder %s379_s12, %s9010_s26  ;;  %p9019_p3 = scmp.lt.s32.totalorder %s9010_s26, %s9010_s26 }
  0x53   : > { %p9013_p11 = pnand %p9011_p10, %p9221_p6  ;;  %p9020_p13 = por %p9019_p3, %p9018_p1 }
  0x55   : > { %p9014_p12 = pneg %p9013_p11 }
  0x57   : > { %p9021_p0 = pnand %p9020_p13, %p9014_p12 }
  0x59   : > { %9024 = shalt.err (!%p9021_p0)
}
  0x5a   : > { %7878 = dma.hbm_to_vmem [thread:$0]  (!%p9211_p5), %s9627_s9, 1024, %s379_s12, [#allocation11], %s9108_s14, %s9108_s14, %s9109_s15  }
  0x5b   : > { %s9286_s27 = sadd.s32 1, %s9099_s20   ;;  %s34_s30 = sadd.s32 1, %s9095_s19 }
  0x5c   : > { %s31_s25 = ssub.s32 %s9099_s20, %s9286_s27  ;;  %p41_p6 = scmp.ne.s32.totalorder %s9095_s19, %s9091_s18 }
  0x5d   : > { %p32_p2 = scmp.eq.s32.totalorder %s31_s25, 0  ;;  %p42_p4 = scmp.eq.s32.totalorder %s9099_s20, 0 }
  0x5e   : > { %p47_p7 = scmp.ne.s32.totalorder %s9091_s18, %s9087_s17  ;;  %p7889_p8 = scmp.lt.s32.totalorder %s9099_s20, 2 }
  0x5f   : > { %s9298_s16 = scalar_select %p32_p2, %s9095_s19, %s34_s30  }
  0x60   : > { %p43_p9 = por %p42_p4, %p41_p6  ;;  %p9644_p10 = scmp.eq.s32.totalorder %s9198_s23, 0 }
  0x61   : > { %s395_s28 = sand.u32 1, %s9095_s19   ;;  %s7832_s14 = smul.u32 320, %s9099_s20 }
  0x62   : > { %p9302_p11 = por %p9644_p10, %p47_p7  ;;  %s7831_s15 = smul.u32 20, %s395_s28 }
  0x63   : > { %p9308_p5 = pnand %p7889_p8, %p43_p9  ;;  %s9315_s17 = scalar_lea.hbm %s9618_s0, %s7832_s14 }
  0x64   : > { %s9645_s21 = scalar_select %p9302_p11, 1, 0 }
  0x65   : > { %s399_s29 = scalar_lea.vmem [#allocation2], %s7831_s15  ;;  %s396_s30 = scalar_lea.sflag [#allocation3], %s395_s28 }
  0x66   : > { %s407_s13 = sshll.u32 %s399_s29, 4  ;;  %s9025_s25 = scalar_lea.hbm %s9315_s17, 320  ;;  %s408_s13 = int_to_ptr.vmem [resolvable:$true] %s407_s13 }
  0x67   : > { %p9026_p12 = scmp.ne.s32.totalorder %s9315_s17, %s9025_s25  ;;  %p9027_p1 = pneg %p9308_p5 }
  0x68   : > { %s9030_s12 = scalar_lea.hbm %s9618_s0, 640  ;;  %p9031_p0 = scmp.lt.s32.totalorder %s9315_s17, %s9618_s0 }
  0x69   : > { %p9028_p3 = pnand %p9027_p1, %p9026_p12  ;;  %p9032_p6 = scmp.lt.s32.totalorder %s9030_s12, %s9025_s25 }
  0x6b   : > { %p9029_p13 = pneg %p9028_p3  ;;  %p9033_p2 = por %p9032_p6, %p9031_p0 }
  0x6d   : > { %p9034_p4 = pnand %p9033_p2, %p9029_p13 }
  0x6f   : > { %9037 = shalt.err (!%p9034_p4)
}
  0x70   : > { %s9038_s15 = scalar_lea.vmem %s408_s13, 320  ;;  %s9113_s28 = smov [#allocation2]  }
  0x71   : > { %p9039_p7 = scmp.ne.s32.totalorder %s408_s13, %s9038_s15  ;;  %s9043_s29 = sshll.u32 %s9113_s28, 4  ;;  %s9044_s29 = int_to_ptr.vmem [resolvable:$false] %s9043_s29 }
  0x72   : > { %s9045_s2 = scalar_lea.vmem %s9044_s29, 640  ;;  %p9046_p10 = scmp.lt.s32.totalorder %s408_s13, %s9044_s29 }
  0x73   : > { %p9041_p8 = pnand %p9039_p7, %p9027_p1  ;;  %p9047_p12 = scmp.lt.s32.totalorder %s9045_s2, %s9038_s15 }
  0x75   : > { %p9042_p9 = pneg %p9041_p8  ;;  %p9048_p3 = por %p9047_p12, %p9046_p10 }
  0x77   : > { %p9049_p11 = pnand %p9048_p3, %p9042_p9 }
  0x79   : > { %9052 = shalt.err (!%p9049_p11)
}
  0x7a   : > { %7882 = dma.hbm_to_vmem [thread:$0]  (!%p9308_p5), %s9315_s17, 320, %s408_s13, %s396_s30  }
  0x7b   : > { %p9647_p13 = scmp.ne.s32.totalorder %s9637_s24, 0 }
  0x7c   : > { %s418_s1 = sand.u32 (!%p9647_p13), 1, %s9091_s18   ;;  %p9648_p1 = scmp.ne.s32.totalorder (!%p9647_p13), %s9645_s21, 0 }
  0x7d   : > { %416 = sbr.rel (%p9647_p13) target bundleno = 1783 (0x6f7), region = 64  ;;  %s419_s20 = scalar_lea.sflag (!%p9647_p13), [#allocation3], %s418_s1 }
  0x7e   : > { %s7833_s25 = smul.u32 (!%p9647_p13), 20, %s418_s1 }
  0x80   : > { %s9334_s12 = scalar_lea.vmem (!%p9647_p13), [#allocation2], %s7833_s25 }
  0x82   : > { %9070 = dma.done.wait (%p9648_p1), %s419_s20, 320  }
  0x83   : > { %9072 = vsyncadd (%p9648_p1), %s419_s20, 4294966976  ;;  %p9649_p11 = scmp.eq.s32.totalorder %s9198_s23, 0 }
  0x85   : > { %9074 = dma.done.wait (%p9649_p11), [#allocation5], 30752   ;;  %p9650_p5 = pmov %p9649_p11 }
  0x87   : > { %9076 = vsyncadd (%p9650_p5), [#allocation5], 4294936544  ;;  %p9651_p0 = pmov %p9650_p5 }
  0x89   : > { %9078 = dma.done.wait (%p9651_p0), [#allocation8], 46080   ;;  %p9652_p6 = pmov %p9651_p0 }
  0x8a   : > { %p9653_p2 = pmov %p9651_p0 }
  0x8b   : > { %9080 = vsyncadd (%p9652_p6), [#allocation8], 4294921216 }
  0x8c   : > { %9082 = dma.done.wait (%p9653_p2), [#allocation11], 10240   ;;  %p9654_p4 = pmov %p9651_p0 }
  0x8d   : > { %v7943_v0 = vld [vmem:[#allocation4 + $0x74] ss:$8 sps:$4 sm:$0xff]   ;;  %v7947_v2 = vld [vmem:[#allocation4 + $0x70] ss:$8 sps:$4 sm:$0xff]   ;;  %v7949_v4 = vld [vmem:[#allocation4 + $0x64] ss:$8 sps:$4 sm:$0xff]  }
  0x8e   : > { %9084 = vsyncadd (%p9654_p4), [#allocation11], 4294957056  ;;  %v7945_v1 = vld [vmem:[#allocation4 + $0x174] ss:$8 sps:$4 sm:$0xff]   ;;  %1086 = vmatprep.subr.bf16.mxu0 %v7943_v0  ;;  %v7948_v3 = vld [vmem:[#allocation4 + $0x170] ss:$8 sps:$4 sm:$0xff]  }
  0x8f   : > { %1127 = vmatprep.subr.bf16.mxu1 %v7945_v1  ;;  %1087 = vmatpush1.bf16.msra.mxu0 %v7947_v2  ;;  %v7951_v5 = vld [vmem:[#allocation4 + $0x164] ss:$8 sps:$4 sm:$0xff]   ;;  %v7953_v6 = vld [vmem:[#allocation4 + $0x60] ss:$8 sps:$4 sm:$0xff]   ;;  %v7955_v8 = vld [vmem:[#allocation4 + $0x54] ss:$8 sps:$4 sm:$0xff]  }
  0x90   : > { %1128 = vmatpush1.bf16.msra.mxu1 %v7948_v3  ;;  %1088 = vmatprep.subr.bf16.mxu0 %v7949_v4  ;;  %v7954_v7 = vld [vmem:[#allocation4 + $0x160] ss:$8 sps:$4 sm:$0xff]   ;;  %v7957_v9 = vld [vmem:[#allocation4 + $0x154] ss:$8 sps:$4 sm:$0xff]   ;;  %v7959_v10 = vld [vmem:[#allocation4 + $0x50] ss:$8 sps:$4 sm:$0xff]  }
  0x91   : > { %1129 = vmatprep.subr.bf16.mxu1 %v7951_v5  ;;  %v7960_v11 = vld [vmem:[#allocation4 + $0x150] ss:$8 sps:$4 sm:$0xff]   ;;  %v7961_v12 = vld [vmem:[#allocation4 + $0x44] ss:$8 sps:$4 sm:$0xff]   ;;  %v7965_v14 = vld [vmem:[#allocation4 + $0x40] ss:$8 sps:$4 sm:$0xff]  }
  0x92   : > { %v7963_v13 = vld [vmem:[#allocation4 + $0x144] ss:$8 sps:$4 sm:$0xff]   ;;  %v7966_v15 = vld [vmem:[#allocation4 + $0x140] ss:$8 sps:$4 sm:$0xff]   ;;  %v7967_v16 = vld [vmem:[#allocation4 + $0x34] ss:$8 sps:$4 sm:$0xff]  }
  0x93   : > { %1089 = vmatpush1.bf16.msra.mxu0 %v7953_v6  ;;  %v7969_v17 = vld [vmem:[#allocation4 + $0x134] ss:$8 sps:$4 sm:$0xff]   ;;  %v7971_v18 = vld [vmem:[#allocation4 + $0x30] ss:$8 sps:$4 sm:$0xff]   ;;  %v7973_v20 = vld [vmem:[#allocation4 + $0x24] ss:$8 sps:$4 sm:$0xff]  }
  0x94   : > { %1130 = vmatpush1.bf16.msra.mxu1 %v7954_v7  ;;  %1090 = vmatprep.subr.bf16.mxu0 %v7955_v8  ;;  %v7972_v19 = vld [vmem:[#allocation4 + $0x130] ss:$8 sps:$4 sm:$0xff]   ;;  %v7975_v21 = vld [vmem:[#allocation4 + $0x124] ss:$8 sps:$4 sm:$0xff]   ;;  %v7977_v22 = vld [vmem:[#allocation4 + $0x20] ss:$8 sps:$4 sm:$0xff]  }
  0x95   : > { %1131 = vmatprep.subr.bf16.mxu1 %v7957_v9  ;;  %v7978_v23 = vld [vmem:[#allocation4 + $0x120] ss:$8 sps:$4 sm:$0xff]   ;;  %v7979_v24 = vld [vmem:[#allocation4 + $0x14] ss:$8 sps:$4 sm:$0xff]   ;;  %v7983_v26 = vld [vmem:[#allocation4 + $0x10] ss:$8 sps:$4 sm:$0xff]  }
  0x96   : > { %v7981_v25 = vld [vmem:[#allocation4 + $0x114] ss:$8 sps:$4 sm:$0xff]   ;;  %v7984_v27 = vld [vmem:[#allocation4 + $0x110] ss:$8 sps:$4 sm:$0xff]   ;;  %v7985_v28 = vld [vmem:[#allocation4 + $0x4] ss:$8 sps:$4 sm:$0xff]  }
  0x97   : > { %1091 = vmatpush1.bf16.msra.mxu0 %v7959_v10  ;;  %v7987_v29 = vld [vmem:[#allocation4 + $0x104] ss:$8 sps:$4 sm:$0xff]   ;;  %v7989_v30 = vld [vmem:[#allocation4] ss:$8 sps:$4 sm:$0xff]   ;;  %v7991_v32 = vld [vmem:[#allocation4 + $0xf4] ss:$8 sps:$4 sm:$0xff]  }
  0x98   : > { %1132 = vmatpush1.bf16.msra.mxu1 %v7960_v11  ;;  %1092 = vmatprep.subr.bf16.mxu0 %v7961_v12  ;;  %v7990_v31 = vld [vmem:[#allocation4 + $0x100] ss:$8 sps:$4 sm:$0xff]   ;;  %v7993_v33 = vld [vmem:[#allocation4 + $0x1f4] ss:$8 sps:$4 sm:$0xff]   ;;  %v7995_v34 = vld [vmem:[#allocation4 + $0xf0] ss:$8 sps:$4 sm:$0xff]  }
  0x99   : > { %1133 = vmatprep.subr.bf16.mxu1 %v7963_v13  ;;  %v7996_v35 = vld [vmem:[#allocation4 + $0x1f0] ss:$8 sps:$4 sm:$0xff]   ;;  %v7997_v36 = vld [vmem:[#allocation4 + $0xe4] ss:$8 sps:$4 sm:$0xff]   ;;  %v8001_v38 = vld [vmem:[#allocation4 + $0xe0] ss:$8 sps:$4 sm:$0xff]  }
  0x9a   : > { %v7999_v37 = vld [vmem:[#allocation4 + $0x1e4] ss:$8 sps:$4 sm:$0xff]   ;;  %v8002_v39 = vld [vmem:[#allocation4 + $0x1e0] ss:$8 sps:$4 sm:$0xff]   ;;  %v8003_v40 = vld [vmem:[#allocation4 + $0xd4] ss:$8 sps:$4 sm:$0xff]  }
  0x9b   : > { %1093 = vmatpush1.bf16.msra.mxu0 %v7965_v14  ;;  %v8005_v41 = vld [vmem:[#allocation4 + $0x1d4] ss:$8 sps:$4 sm:$0xff]   ;;  %v8007_v42 = vld [vmem:[#allocation4 + $0xd0] ss:$8 sps:$4 sm:$0xff]   ;;  %v8009_v44 = vld [vmem:[#allocation4 + $0xc4] ss:$8 sps:$4 sm:$0xff]  }
  0x9c   : > { %1134 = vmatpush1.bf16.msra.mxu1 %v7966_v15  ;;  %1094 = vmatprep.subr.bf16.mxu0 %v7967_v16  ;;  %v8008_v43 = vld [vmem:[#allocation4 + $0x1d0] ss:$8 sps:$4 sm:$0xff]   ;;  %v8011_v45 = vld [vmem:[#allocation4 + $0x1c4] ss:$8 sps:$4 sm:$0xff]   ;;  %v8013_v49 = vld [vmem:[#allocation4 + $0xc0] ss:$8 sps:$4 sm:$0xff]  }
  0x9d   : > { %1135 = vmatprep.subr.bf16.mxu1 %v7969_v17  ;;  %v489_v46 = vld [vmem:[%s9334_s12] sm:$0xff]  ;;  %v490_v48 = vld [vmem:[%s9334_s12 + $0x8] sm:$0xff]  ;;  %v9114_v16 = vmov 0   ;;  %vm9116_vm2 = vmmov 0   ;;  %p484_p7 = scmp.lt.s32.totalorder %s9198_s23, 1  ;;  %vm2353_vm3 = vcmask 1040384  }
  0x9e   : > { %v9353_v47 = vcombine.high %v489_v46, %v489_v46  ;;  %v8014_v50 = vld [vmem:[#allocation4 + $0x1c0] ss:$8 sps:$4 sm:$0xff]   ;;  %v9356_v51 = vcombine.high %v490_v48, %v490_v48  ;;  %v8015_v52 = vld [vmem:[#allocation4 + $0xb4] ss:$8 sps:$4 sm:$0xff]   ;;  %v8019_v54 = vld [vmem:[#allocation4 + $0xb0] ss:$8 sps:$4 sm:$0xff]   ;;  %v9360_v6 = vcombine.low %v489_v46, %v489_v46  ;;  %v9362_v7 = vcombine.low %v490_v48, %v490_v48 }
  0x9f   : > { %1095 = vmatpush1.bf16.msra.mxu0 %v7971_v18  ;;  %v8017_v53 = vld [vmem:[#allocation4 + $0x1b4] ss:$8 sps:$4 sm:$0xff]   ;;  %v8020_v55 = vld [vmem:[#allocation4 + $0x1b0] ss:$8 sps:$4 sm:$0xff]   ;;  %v8021_v56 = vld [vmem:[#allocation4 + $0xa4] ss:$8 sps:$4 sm:$0xff]  }
  0xa0   : > { %1136 = vmatpush1.bf16.msra.mxu1 %v7972_v19  ;;  %1096 = vmatprep.subr.bf16.mxu0 %v7973_v20  ;;  %v8023_v57 = vld [vmem:[#allocation4 + $0x1a4] ss:$8 sps:$4 sm:$0xff]   ;;  %v8025_v58 = vld [vmem:[#allocation4 + $0xa0] ss:$8 sps:$4 sm:$0xff]   ;;  %v8027_v60 = vld [vmem:[#allocation4 + $0x94] ss:$8 sps:$4 sm:$0xff]  }
  0xa1   : > { %1137 = vmatprep.subr.bf16.mxu1 %v7975_v21  ;;  %1118 = vmatprep.mubr.bf16.mxu0 %v9353_v47  ;;  %v8026_v59 = vld [vmem:[#allocation4 + $0x1a0] ss:$8 sps:$4 sm:$0xff]   ;;  %v8029_v61 = vld [vmem:[#allocation4 + $0x194] ss:$8 sps:$4 sm:$0xff]   ;;  %v8031_v62 = vld [vmem:[#allocation4 + $0x90] ss:$8 sps:$4 sm:$0xff]  }
  0xa2   : > { %1159 = vmatprep.mubr.bf16.mxu1 %v9356_v51  ;;  %v8032_v63 = vld [vmem:[#allocation4 + $0x190] ss:$8 sps:$4 sm:$0xff]   ;;  %v8033_v0 = vld [vmem:[#allocation4 + $0x84] ss:$8 sps:$4 sm:$0xff]   ;;  %v8037_v2 = vld [vmem:[#allocation4 + $0x80] ss:$8 sps:$4 sm:$0xff]  }
  0xa3   : > { %1097 = vmatpush1.bf16.msra.mxu0 %v7977_v22  ;;  %v8035_v1 = vld [vmem:[#allocation4 + $0x184] ss:$8 sps:$4 sm:$0xff]   ;;  %v8038_v3 = vld [vmem:[#allocation4 + $0x180] ss:$8 sps:$4 sm:$0xff]   ;;  %v8045_v4 = vld [vmem:[#allocation4 + $0x274] ss:$8 sps:$4 sm:$0xff]  }
  0xa4   : > { %1138 = vmatpush1.bf16.msra.mxu1 %v7978_v23  ;;  %1098 = vmatprep.subr.bf16.mxu0 %v7979_v24  ;;  %v8048_v5 = vld [vmem:[#allocation4 + $0x574] ss:$8 sps:$4 sm:$0xff]   ;;  %v8043_v8 = vld [vmem:[#allocation4 + $0x270] ss:$8 sps:$4 sm:$0xff]   ;;  %v8051_v10 = vld [vmem:[#allocation4 + $0x264] ss:$8 sps:$4 sm:$0xff]  }
  0xa5   : > { %1139 = vmatprep.subr.bf16.mxu1 %v7981_v25  ;;  %v8046_v9 = vld [vmem:[#allocation4 + $0x570] ss:$8 sps:$4 sm:$0xff]   ;;  %v8054_v11 = vld [vmem:[#allocation4 + $0x564] ss:$8 sps:$4 sm:$0xff]   ;;  %v8049_v12 = vld [vmem:[#allocation4 + $0x260] ss:$8 sps:$4 sm:$0xff]  }
  0xa6   : > { %v8052_v13 = vld [vmem:[#allocation4 + $0x560] ss:$8 sps:$4 sm:$0xff]   ;;  %v8057_v14 = vld [vmem:[#allocation4 + $0x254] ss:$8 sps:$4 sm:$0xff]   ;;  %v8055_v17 = vld [vmem:[#allocation4 + $0x250] ss:$8 sps:$4 sm:$0xff]  }
  0xa7   : > { %1099 = vmatpush1.bf16.msra.mxu0 %v7983_v26  ;;  %v8060_v15 = vld [vmem:[#allocation4 + $0x554] ss:$8 sps:$4 sm:$0xff]   ;;  %v8058_v18 = vld [vmem:[#allocation4 + $0x550] ss:$8 sps:$4 sm:$0xff]   ;;  %v8063_v19 = vld [vmem:[#allocation4 + $0x244] ss:$8 sps:$4 sm:$0xff]  }
  0xa8   : > { %1140 = vmatpush1.bf16.msra.mxu1 %v7984_v27  ;;  %1100 = vmatprep.subr.bf16.mxu0 %v7985_v28  ;;  %v8066_v20 = vld [vmem:[#allocation4 + $0x544] ss:$8 sps:$4 sm:$0xff]   ;;  %v8061_v21 = vld [vmem:[#allocation4 + $0x240] ss:$8 sps:$4 sm:$0xff]   ;;  %v8069_v23 = vld [vmem:[#allocation4 + $0x234] ss:$8 sps:$4 sm:$0xff]  }
  0xa9   : > { %1141 = vmatprep.subr.bf16.mxu1 %v7987_v29  ;;  %v8064_v22 = vld [vmem:[#allocation4 + $0x540] ss:$8 sps:$4 sm:$0xff]   ;;  %v8072_v24 = vld [vmem:[#allocation4 + $0x534] ss:$8 sps:$4 sm:$0xff]   ;;  %v8067_v25 = vld [vmem:[#allocation4 + $0x230] ss:$8 sps:$4 sm:$0xff]  }
  0xaa   : > { %v8070_v26 = vld [vmem:[#allocation4 + $0x530] ss:$8 sps:$4 sm:$0xff]   ;;  %v8075_v27 = vld [vmem:[#allocation4 + $0x224] ss:$8 sps:$4 sm:$0xff]   ;;  %v8073_v29 = vld [vmem:[#allocation4 + $0x220] ss:$8 sps:$4 sm:$0xff]  }
  0xab   : > { %1101 = vmatpush1.bf16.msra.mxu0 %v7989_v30  ;;  %v8078_v28 = vld [vmem:[#allocation4 + $0x524] ss:$8 sps:$4 sm:$0xff]   ;;  %v8076_v30 = vld [vmem:[#allocation4 + $0x520] ss:$8 sps:$4 sm:$0xff]   ;;  %s9664_s23 = smov (!%p484_p7, %s9198_s23), 1  ;;  %vm6588_vm4 = vcmask 1041408  }
  0xac   : > { %1142 = vmatpush1.bf16.msra.mxu1 %v7990_v31  ;;  %1102 = vmatprep.subr.bf16.mxu0 %v7991_v32  ;;  %v8081_v31 = vld [vmem:[#allocation4 + $0x214] ss:$8 sps:$4 sm:$0xff]   ;;  %v8098_v46 = vld [vmem:[#allocation4 + $0x660] ss:$8 sps:$4 sm:$0xff]   ;;  %s6740_s14 = sshll.u32 %s9664_s23, 2  ;;  %vm6590_vm5 = vcmask 1042432  }
  0xad   : > { %1143 = vmatprep.subr.bf16.mxu1 %v7993_v33  ;;  %v8084_v32 = vld [vmem:[#allocation4 + $0x514] ss:$8 sps:$4 sm:$0xff]   ;;  %v8079_v33 = vld [vmem:[#allocation4 + $0x210] ss:$8 sps:$4 sm:$0xff]   ;;  %v8101_v48 = vld [vmem:[#allocation4 + $0x5e0] ss:$8 sps:$4 sm:$0xff]   ;;  %s487_s29 = scalar_lea.vmem %s9629_s11, %s6740_s14 }
  0xae   : > { %vm6592_vm6 = vcmask 1043456   ;;  %vm6596_vm7 = vsmask.f32 2304 }
  0xaf   : > { %1103 = vmatpush2.bf16.msra.mxu0 %v7995_v34  ;;  %v8082_v34 = vld [vmem:[#allocation4 + $0x510] ss:$8 sps:$4 sm:$0xff]   ;;  %vm6597_vm8 = vmand %vm6590_vm5, %vm6596_vm7 }
  0xb0   : > { %1144 = vmatpush2.bf16.msra.mxu1 %v7996_v35  ;;  %1104 = vmatprep.subr.bf16.mxu0 %v7997_v36  ;;  %v8087_v35 = vld [vmem:[#allocation4 + $0x204] ss:$8 sps:$4 sm:$0xff]  }
  0xb1   : > { %1145 = vmatprep.subr.bf16.mxu1 %v7999_v37  ;;  %v8090_v36 = vld [vmem:[#allocation4 + $0x504] ss:$8 sps:$4 sm:$0xff]   ;;  %v8085_v37 = vld [vmem:[#allocation4 + $0x200] ss:$8 sps:$4 sm:$0xff]  }
  0xb3   : > { %1105 = vmatpush2.bf16.msra.mxu0 %v8001_v38  ;;  %v8088_v38 = vld [vmem:[#allocation4 + $0x500] ss:$8 sps:$4 sm:$0xff]  }
  0xb4   : > { %1146 = vmatpush2.bf16.msra.mxu1 %v8002_v39  ;;  %1106 = vmatprep.subr.bf16.mxu0 %v8003_v40  ;;  %v8094_v39 = vld [vmem:[#allocation4 + $0x674] ss:$8 sps:$4 sm:$0xff]  }
  0xb5   : > { %1147 = vmatprep.subr.bf16.mxu1 %v8005_v41  ;;  %v8097_v40 = vld [vmem:[#allocation4 + $0x5f4] ss:$8 sps:$4 sm:$0xff]  }
  0xb6   : > { %v9369_v41 = vld [vmem:[%s9334_s12 + $0x10] ss:$0 sps:$4 sm:$0xff]  }
  0xb7   : > { %1107 = vmatpush2.bf16.msra.mxu0 %v8007_v42  ;;  %v8092_v42 = vld [vmem:[#allocation4 + $0x670] ss:$8 sps:$4 sm:$0xff]  }
  0xb8   : > { %1148 = vmatpush2.bf16.msra.mxu1 %v8008_v43  ;;  %1108 = vmatprep.subr.bf16.mxu0 %v8009_v44  ;;  %v8095_v43 = vld [vmem:[#allocation4 + $0x5f0] ss:$8 sps:$4 sm:$0xff]   ;;  %v8100_v44 = vld [vmem:[#allocation4 + $0x664] ss:$8 sps:$4 sm:$0xff]  }
  0xb9   : > { %1149 = vmatprep.subr.bf16.mxu1 %v8011_v45  ;;  %v8103_v45 = vld [vmem:[#allocation4 + $0x5e4] ss:$8 sps:$4 sm:$0xff]  }
  0xbb   : > { %1109 = vmatpush2.bf16.msra.mxu0 %v8013_v49  ;;  %v8106_v49 = vld [vmem:[#allocation4 + $0x654] ss:$8 sps:$4 sm:$0xff]  }
  0xbc   : > { %1150 = vmatpush2.bf16.msra.mxu1 %v8014_v50  ;;  %1110 = vmatprep.subr.bf16.mxu0 %v8015_v52  ;;  %v8109_v50 = vld [vmem:[#allocation4 + $0x5d4] ss:$8 sps:$4 sm:$0xff]   ;;  %v8104_v52 = vld [vmem:[#allocation4 + $0x650] ss:$8 sps:$4 sm:$0xff]  }
  0xbd   : > { %1151 = vmatprep.subr.bf16.mxu1 %v8017_v53  ;;  %v8107_v53 = vld [vmem:[#allocation4 + $0x5d0] ss:$8 sps:$4 sm:$0xff]  }
  0xbf   : > { %1111 = vmatpush2.bf16.msra.mxu0 %v8019_v54  ;;  %v8112_v54 = vld [vmem:[#allocation4 + $0x644] ss:$8 sps:$4 sm:$0xff]  }
  0xc0   : > { %1152 = vmatpush2.bf16.msra.mxu1 %v8020_v55  ;;  %1112 = vmatprep.subr.bf16.mxu0 %v8021_v56  ;;  %v8115_v55 = vld [vmem:[#allocation4 + $0x5c4] ss:$8 sps:$4 sm:$0xff]   ;;  %v8110_v56 = vld [vmem:[#allocation4 + $0x640] ss:$8 sps:$4 sm:$0xff]  }
  0xc1   : > { %1153 = vmatprep.subr.bf16.mxu1 %v8023_v57  ;;  %v8113_v57 = vld [vmem:[#allocation4 + $0x5c0] ss:$8 sps:$4 sm:$0xff]  }
  0xc3   : > { %1113 = vmatpush2.bf16.msra.mxu0 %v8025_v58  ;;  %v8118_v58 = vld [vmem:[#allocation4 + $0x634] ss:$8 sps:$4 sm:$0xff]  }
  0xc4   : > { %1154 = vmatpush2.bf16.msra.mxu1 %v8026_v59  ;;  %1114 = vmatprep.subr.bf16.mxu0 %v8027_v60  ;;  %v8121_v59 = vld [vmem:[#allocation4 + $0x5b4] ss:$8 sps:$4 sm:$0xff]   ;;  %v8116_v60 = vld [vmem:[#allocation4 + $0x630] ss:$8 sps:$4 sm:$0xff]  }
  0xc5   : > { %1155 = vmatprep.subr.bf16.mxu1 %v8029_v61  ;;  %v8119_v61 = vld [vmem:[#allocation4 + $0x5b0] ss:$8 sps:$4 sm:$0xff]  }
  0xc7   : > { %1115 = vmatpush2.bf16.msra.mxu0 %v8031_v62  ;;  %v8124_v62 = vld [vmem:[#allocation4 + $0x624] ss:$8 sps:$4 sm:$0xff]  }
  0xc8   : > { %1156 = vmatpush2.bf16.msra.mxu1 %v8032_v63  ;;  %1116 = vmatprep.subr.bf16.mxu0 %v8033_v0  ;;  %v8127_v63 = vld [vmem:[#allocation4 + $0x5a4] ss:$8 sps:$4 sm:$0xff]   ;;  %v8122_v0 = vld [vmem:[#allocation4 + $0x620] ss:$8 sps:$4 sm:$0xff]  }
  0xc9   : > { %1157 = vmatprep.subr.bf16.mxu1 %v8035_v1  ;;  %v8125_v1 = vld [vmem:[#allocation4 + $0x5a0] ss:$8 sps:$4 sm:$0xff]  }
  0xcb   : > { %1117 = vmatpush2.bf16.msra.mxu0 %v8037_v2  ;;  %v8130_v2 = vld [vmem:[#allocation4 + $0x614] ss:$8 sps:$4 sm:$0xff]  }
  0xcc   : > { %1158 = vmatpush2.bf16.msra.mxu1 %v8038_v3  ;;  %1168 = vmatprep.subr.bf16.mxu0 %v8045_v4  ;;  %v8133_v3 = vld [vmem:[#allocation4 + $0x594] ss:$8 sps:$4 sm:$0xff]   ;;  %v8128_v4 = vld [vmem:[#allocation4 + $0x610] ss:$8 sps:$4 sm:$0xff]  }
  0xcd   : > { %1689 = vmatprep.subr.bf16.mxu1 %v8048_v5  ;;  %v8131_v5 = vld [vmem:[#allocation4 + $0x590] ss:$8 sps:$4 sm:$0xff]  }
  0xce   : > { %1119 = vmatmul.mubr.bf16.vlgmr.msra.gmra.mxu0 %v9360_v6 }
  0xcf   : > { %1160 = vmatmul.mubr.bf16.vlgmr.msra.gmra.mxu1 %v9362_v7  ;;  %1169 = vmatpush1.bf16.msra.mxu0 %v8043_v8  ;;  %v8136_v8 = vld [vmem:[#allocation4 + $0x604] ss:$8 sps:$4 sm:$0xff]  }
  0xd0   : > { %1690 = vmatpush1.bf16.msra.mxu1 %v8046_v9  ;;  %1170 = vmatprep.subr.bf16.mxu0 %v8051_v10  ;;  %v8139_v9 = vld [vmem:[#allocation4 + $0x584] ss:$8 sps:$4 sm:$0xff]   ;;  %v8134_v10 = vld [vmem:[#allocation4 + $0x600] ss:$8 sps:$4 sm:$0xff]  }
  0xd1   : > { %1691 = vmatprep.subr.bf16.mxu1 %v8054_v11  ;;  %1200 = vmatprep.mubr.bf16.mxu0 %v9114_v16  ;;  %v8137_v11 = vld [vmem:[#allocation4 + $0x580] ss:$8 sps:$4 sm:$0xff]  }
  0xd2   : > { %1721 = vmatprep.mubr.bf16.mxu1 %v9353_v47 }
  0xd3   : > { %1171 = vmatpush1.bf16.msra.mxu0 %v8049_v12  ;;  %v8142_v12 = vld [vmem:[#allocation4 + $0x6f4] ss:$8 sps:$4 sm:$0xff]  }
  0xd4   : > { %1692 = vmatpush1.bf16.msra.mxu1 %v8052_v13  ;;  %1172 = vmatprep.subr.bf16.mxu0 %v8057_v14  ;;  %v8145_v13 = vld [vmem:[#allocation4 + $0x774] ss:$8 sps:$4 sm:$0xff]   ;;  %v8140_v14 = vld [vmem:[#allocation4 + $0x6f0] ss:$8 sps:$4 sm:$0xff]  }
  0xd5   : > { %1693 = vmatprep.subr.bf16.mxu1 %v8060_v15  ;;  %v8143_v15 = vld [vmem:[#allocation4 + $0x770] ss:$8 sps:$4 sm:$0xff]  }
  0xd7   : > { %1173 = vmatpush1.bf16.msra.mxu0 %v8055_v17  ;;  %v8148_v17 = vld [vmem:[#allocation4 + $0x6e4] ss:$8 sps:$4 sm:$0xff]  }
  0xd8   : > { %1694 = vmatpush1.bf16.msra.mxu1 %v8058_v18  ;;  %1174 = vmatprep.subr.bf16.mxu0 %v8063_v19  ;;  %v8151_v18 = vld [vmem:[#allocation4 + $0x764] ss:$8 sps:$4 sm:$0xff]   ;;  %v8146_v19 = vld [vmem:[#allocation4 + $0x6e0] ss:$8 sps:$4 sm:$0xff]  }
  0xd9   : > { %1695 = vmatprep.subr.bf16.mxu1 %v8066_v20  ;;  %v8149_v20 = vld [vmem:[#allocation4 + $0x760] ss:$8 sps:$4 sm:$0xff]  }
  0xdb   : > { %1175 = vmatpush1.bf16.msra.mxu0 %v8061_v21  ;;  %v8154_v21 = vld [vmem:[#allocation4 + $0x6d4] ss:$8 sps:$4 sm:$0xff]  }
  0xdc   : > { %1696 = vmatpush1.bf16.msra.mxu1 %v8064_v22  ;;  %1176 = vmatprep.subr.bf16.mxu0 %v8069_v23  ;;  %v8157_v22 = vld [vmem:[#allocation4 + $0x754] ss:$8 sps:$4 sm:$0xff]   ;;  %v8152_v23 = vld [vmem:[#allocation4 + $0x6d0] ss:$8 sps:$4 sm:$0xff]  }
  0xdd   : > { %1697 = vmatprep.subr.bf16.mxu1 %v8072_v24  ;;  %v8155_v24 = vld [vmem:[#allocation4 + $0x750] ss:$8 sps:$4 sm:$0xff]  }
  0xdf   : > { %1177 = vmatpush1.bf16.msra.mxu0 %v8067_v25  ;;  %v8160_v25 = vld [vmem:[#allocation4 + $0x6c4] ss:$8 sps:$4 sm:$0xff]  }
  0xe0   : > { %1698 = vmatpush1.bf16.msra.mxu1 %v8070_v26  ;;  %1178 = vmatprep.subr.bf16.mxu0 %v8075_v27  ;;  %v8163_v26 = vld [vmem:[#allocation4 + $0x744] ss:$8 sps:$4 sm:$0xff]   ;;  %v8158_v27 = vld [vmem:[#allocation4 + $0x6c0] ss:$8 sps:$4 sm:$0xff]  }
  0xe1   : > { %1699 = vmatprep.subr.bf16.mxu1 %v8078_v28  ;;  %v8161_v28 = vld [vmem:[#allocation4 + $0x740] ss:$8 sps:$4 sm:$0xff]  }
  0xe3   : > { %1179 = vmatpush1.bf16.msra.mxu0 %v8073_v29  ;;  %v8166_v29 = vld [vmem:[#allocation4 + $0x6b4] ss:$8 sps:$4 sm:$0xff]  }
  0xe4   : > { %1700 = vmatpush1.bf16.msra.mxu1 %v8076_v30  ;;  %1180 = vmatprep.subr.bf16.mxu0 %v8081_v31  ;;  %v8169_v30 = vld [vmem:[#allocation4 + $0x734] ss:$8 sps:$4 sm:$0xff]   ;;  %v8164_v31 = vld [vmem:[#allocation4 + $0x6b0] ss:$8 sps:$4 sm:$0xff]  }
  0xe5   : > { %1701 = vmatprep.subr.bf16.mxu1 %v8084_v32  ;;  %v8167_v32 = vld [vmem:[#allocation4 + $0x730] ss:$8 sps:$4 sm:$0xff]  }
  0xe7   : > { %1181 = vmatpush1.bf16.msra.mxu0 %v8079_v33  ;;  %v8172_v33 = vld [vmem:[#allocation4 + $0x6a4] ss:$8 sps:$4 sm:$0xff]  }
  0xe8   : > { %1702 = vmatpush1.bf16.msra.mxu1 %v8082_v34  ;;  %1182 = vmatprep.subr.bf16.mxu0 %v8087_v35  ;;  %v8175_v34 = vld [vmem:[#allocation4 + $0x724] ss:$8 sps:$4 sm:$0xff]   ;;  %v8170_v35 = vld [vmem:[#allocation4 + $0x6a0] ss:$8 sps:$4 sm:$0xff]  }
  0xe9   : > { %1703 = vmatprep.subr.bf16.mxu1 %v8090_v36  ;;  %v8173_v36 = vld [vmem:[#allocation4 + $0x720] ss:$8 sps:$4 sm:$0xff]  }
  0xeb   : > { %1183 = vmatpush1.bf16.msra.mxu0 %v8085_v37  ;;  %v8178_v37 = vld [vmem:[#allocation4 + $0x694] ss:$8 sps:$4 sm:$0xff]  }
  0xec   : > { %1704 = vmatpush1.bf16.msra.mxu1 %v8088_v38  ;;  %1730 = vmatprep.subr.bf16.mxu0 %v8094_v39  ;;  %v8181_v38 = vld [vmem:[#allocation4 + $0x714] ss:$8 sps:$4 sm:$0xff]   ;;  %v8176_v39 = vld [vmem:[#allocation4 + $0x690] ss:$8 sps:$4 sm:$0xff]  }
  0xed   : > { %1705 = vmatprep.subr.bf16.mxu1 %v8097_v40  ;;  %v8179_v40 = vld [vmem:[#allocation4 + $0x710] ss:$8 sps:$4 sm:$0xff]  }
  0xee   : > { %1201 = vmatmul.mubr.bf16.vlgmr.msra.gmra.mxu0 %v9369_v41 }
  0xef   : > { %1731 = vmatpush1.bf16.msra.mxu0 %v8092_v42  ;;  %1762 = vmatprep.mubr.bf16.mxu0 %v9356_v51  ;;  %v8184_v42 = vld [vmem:[#allocation4 + $0x684] ss:$8 sps:$4 sm:$0xff]  }
  0xf0   : > { %1706 = vmatpush2.bf16.msra.mxu1 %v8095_v43  ;;  %1732 = vmatprep.subr.bf16.mxu0 %v8100_v44  ;;  %v8187_v43 = vld [vmem:[#allocation4 + $0x704] ss:$8 sps:$4 sm:$0xff]   ;;  %v8182_v44 = vld [vmem:[#allocation4 + $0x680] ss:$8 sps:$4 sm:$0xff]  }
  0xf1   : > { %1707 = vmatprep.subr.bf16.mxu1 %v8103_v45  ;;  %v8185_v45 = vld [vmem:[#allocation4 + $0x700] ss:$8 sps:$4 sm:$0xff]  }
  0xf3   : > { %1733 = vmatpush1.bf16.msra.mxu0 %v8098_v46  ;;  %v8190_v46 = vld [vmem:[#allocation4 + $0x2f4] ss:$8 sps:$4 sm:$0xff]  }
  0xf4   : > { %1708 = vmatpush2.bf16.msra.mxu1 %v8101_v48  ;;  %1734 = vmatprep.subr.bf16.mxu0 %v8106_v49  ;;  %v8193_v48 = vld [vmem:[#allocation4 + $0x3f4] ss:$8 sps:$4 sm:$0xff]   ;;  %v8188_v49 = vld [vmem:[#allocation4 + $0x2f0] ss:$8 sps:$4 sm:$0xff]  }
  0xf5   : > { %1709 = vmatprep.subr.bf16.mxu1 %v8109_v50  ;;  %v8191_v50 = vld [vmem:[#allocation4 + $0x3f0] ss:$8 sps:$4 sm:$0xff]  }
  0xf7   : > { %1735 = vmatpush1.bf16.msra.mxu0 %v8104_v52  ;;  %v8196_v52 = vld [vmem:[#allocation4 + $0x2e4] ss:$8 sps:$4 sm:$0xff]  }
  0xf8   : > { %1710 = vmatpush2.bf16.msra.mxu1 %v8107_v53  ;;  %1736 = vmatprep.subr.bf16.mxu0 %v8112_v54  ;;  %v8199_v53 = vld [vmem:[#allocation4 + $0x3e4] ss:$8 sps:$4 sm:$0xff]   ;;  %v8194_v54 = vld [vmem:[#allocation4 + $0x2e0] ss:$8 sps:$4 sm:$0xff]  }
  0xf9   : > { %1711 = vmatprep.subr.bf16.mxu1 %v8115_v55  ;;  %v8197_v55 = vld [vmem:[#allocation4 + $0x3e0] ss:$8 sps:$4 sm:$0xff]  }
  0xfb   : > { %1737 = vmatpush1.bf16.msra.mxu0 %v8110_v56  ;;  %v8202_v56 = vld [vmem:[#allocation4 + $0x2d4] ss:$8 sps:$4 sm:$0xff]  }
  0xfc   : > { %1712 = vmatpush2.bf16.msra.mxu1 %v8113_v57  ;;  %1738 = vmatprep.subr.bf16.mxu0 %v8118_v58  ;;  %v8205_v57 = vld [vmem:[#allocation4 + $0x3d4] ss:$8 sps:$4 sm:$0xff]   ;;  %v8200_v58 = vld [vmem:[#allocation4 + $0x2d0] ss:$8 sps:$4 sm:$0xff]  }
  0xfd   : > { %1713 = vmatprep.subr.bf16.mxu1 %v8121_v59  ;;  %v8203_v59 = vld [vmem:[#allocation4 + $0x3d0] ss:$8 sps:$4 sm:$0xff]  }
  0xff   : > { %1739 = vmatpush1.bf16.msra.mxu0 %v8116_v60  ;;  %v8208_v60 = vld [vmem:[#allocation4 + $0x2c4] ss:$8 sps:$4 sm:$0xff]  }
 0x100   : > { %1714 = vmatpush2.bf16.msra.mxu1 %v8119_v61  ;;  %1740 = vmatprep.subr.bf16.mxu0 %v8124_v62  ;;  %v8211_v61 = vld [vmem:[#allocation4 + $0x3c4] ss:$8 sps:$4 sm:$0xff]   ;;  %v8206_v62 = vld [vmem:[#allocation4 + $0x2c0] ss:$8 sps:$4 sm:$0xff]  }
 0x101   : > { %1715 = vmatprep.subr.bf16.mxu1 %v8127_v63  ;;  %v8214_v63 = vld [vmem:[#allocation4 + $0x2b4] ss:$8 sps:$4 sm:$0xff]  }
 0x103   : > { %1741 = vmatpush1.bf16.msra.mxu0 %v8122_v0  ;;  %v8217_v0 = vld [vmem:[#allocation4 + $0x3b4] ss:$8 sps:$4 sm:$0xff]  }
 0x104   : > { %1716 = vmatpush2.bf16.msra.mxu1 %v8125_v1  ;;  %1742 = vmatprep.subr.bf16.mxu0 %v8130_v2  ;;  %v8212_v1 = vld [vmem:[#allocation4 + $0x2b0] ss:$8 sps:$4 sm:$0xff]  }
 0x105   : > { %1717 = vmatprep.subr.bf16.mxu1 %v8133_v3  ;;  %v8215_v2 = vld [vmem:[#allocation4 + $0x3b0] ss:$8 sps:$4 sm:$0xff]   ;;  %v8220_v3 = vld [vmem:[#allocation4 + $0x2a4] ss:$8 sps:$4 sm:$0xff]  }
 0x107   : > { %1743 = vmatpush1.bf16.msra.mxu0 %v8128_v4  ;;  %v8221_v4 = vld [vmem:[#allocation4 + $0x3a0] ss:$8 sps:$4 sm:$0xff]  }
 0x108   : > { %1718 = vmatpush2.bf16.msra.mxu1 %v8131_v5  ;;  %1744 = vmatprep.subr.bf16.mxu0 %v8136_v8  ;;  %v8226_v5 = vld [vmem:[#allocation4 + $0x294] ss:$8 sps:$4 sm:$0xff]  }
 0x109   : > { %1719 = vmatprep.subr.bf16.mxu1 %v8139_v9  ;;  %v8229_v8 = vld [vmem:[#allocation4 + $0x394] ss:$8 sps:$4 sm:$0xff]   ;;  %v8224_v9 = vld [vmem:[#allocation4 + $0x290] ss:$8 sps:$4 sm:$0xff]  }
 0x10b   : > { %1745 = vmatpush1.bf16.msra.mxu0 %v8134_v10  ;;  %v8227_v10 = vld [vmem:[#allocation4 + $0x390] ss:$8 sps:$4 sm:$0xff]  }
 0x10c   : > { %1720 = vmatpush2.bf16.msra.mxu1 %v8137_v11  ;;  %1746 = vmatprep.subr.bf16.mxu0 %v8142_v12  ;;  %v8232_v11 = vld [vmem:[#allocation4 + $0x284] ss:$8 sps:$4 sm:$0xff]  }
 0x10d   : > { %1771 = vmatprep.subr.bf16.mxu1 %v8145_v13  ;;  %v8235_v12 = vld [vmem:[#allocation4 + $0x384] ss:$8 sps:$4 sm:$0xff]   ;;  %v8230_v13 = vld [vmem:[#allocation4 + $0x280] ss:$8 sps:$4 sm:$0xff]  }
 0x10f   : > { %1722 = vmatmul.mubr.bf16.vlgmr.msra.gmra.mxu1 %v9360_v6  ;;  %1747 = vmatpush2.bf16.msra.mxu0 %v8140_v14  ;;  %v8233_v14 = vld [vmem:[#allocation4 + $0x380] ss:$8 sps:$4 sm:$0xff]  }
 0x110   : > { %1772 = vmatpush1.bf16.msra.mxu1 %v8143_v15  ;;  %1748 = vmatprep.subr.bf16.mxu0 %v8148_v17  ;;  %v8238_v15 = vld [vmem:[#allocation4 + $0x374] ss:$8 sps:$4 sm:$0xff]  }
 0x111   : > { %1773 = vmatprep.subr.bf16.mxu1 %v8151_v18  ;;  %1803 = vmatprep.mubr.bf16.mxu1 %v9114_v16  ;;  %v8241_v17 = vld [vmem:[#allocation4 + $0x474] ss:$8 sps:$4 sm:$0xff]   ;;  %v8236_v18 = vld [vmem:[#allocation4 + $0x370] ss:$8 sps:$4 sm:$0xff]  }
 0x113   : > { %1749 = vmatpush2.bf16.msra.mxu0 %v8146_v19  ;;  %v8239_v19 = vld [vmem:[#allocation4 + $0x470] ss:$8 sps:$4 sm:$0xff]  }
 0x114   : > { %1774 = vmatpush1.bf16.msra.mxu1 %v8149_v20  ;;  %1750 = vmatprep.subr.bf16.mxu0 %v8154_v21  ;;  %v8244_v20 = vld [vmem:[#allocation4 + $0x364] ss:$8 sps:$4 sm:$0xff]  }
 0x115   : > { %1775 = vmatprep.subr.bf16.mxu1 %v8157_v22  ;;  %v8247_v21 = vld [vmem:[#allocation4 + $0x464] ss:$8 sps:$4 sm:$0xff]   ;;  %v8242_v22 = vld [vmem:[#allocation4 + $0x360] ss:$8 sps:$4 sm:$0xff]  }
 0x117   : > { %1751 = vmatpush2.bf16.msra.mxu0 %v8152_v23  ;;  %v8245_v23 = vld [vmem:[#allocation4 + $0x460] ss:$8 sps:$4 sm:$0xff]  }
 0x118   : > { %1776 = vmatpush1.bf16.msra.mxu1 %v8155_v24  ;;  %1752 = vmatprep.subr.bf16.mxu0 %v8160_v25  ;;  %v8250_v24 = vld [vmem:[#allocation4 + $0x354] ss:$8 sps:$4 sm:$0xff]  }
 0x119   : > { %1777 = vmatprep.subr.bf16.mxu1 %v8163_v26  ;;  %v8253_v25 = vld [vmem:[#allocation4 + $0x454] ss:$8 sps:$4 sm:$0xff]   ;;  %v8248_v26 = vld [vmem:[#allocation4 + $0x350] ss:$8 sps:$4 sm:$0xff]  }
 0x11b   : > { %1753 = vmatpush2.bf16.msra.mxu0 %v8158_v27  ;;  %v8251_v27 = vld [vmem:[#allocation4 + $0x450] ss:$8 sps:$4 sm:$0xff]  }
 0x11c   : > { %1778 = vmatpush1.bf16.msra.mxu1 %v8161_v28  ;;  %1754 = vmatprep.subr.bf16.mxu0 %v8166_v29  ;;  %v8256_v28 = vld [vmem:[#allocation4 + $0x344] ss:$8 sps:$4 sm:$0xff]  }
 0x11d   : > { %1779 = vmatprep.subr.bf16.mxu1 %v8169_v30  ;;  %v8259_v29 = vld [vmem:[#allocation4 + $0x444] ss:$8 sps:$4 sm:$0xff]   ;;  %v8254_v30 = vld [vmem:[#allocation4 + $0x340] ss:$8 sps:$4 sm:$0xff]  }
 0x11f   : > { %1755 = vmatpush2.bf16.msra.mxu0 %v8164_v31  ;;  %v8257_v31 = vld [vmem:[#allocation4 + $0x440] ss:$8 sps:$4 sm:$0xff]  }
 0x120   : > { %1780 = vmatpush1.bf16.msra.mxu1 %v8167_v32  ;;  %1756 = vmatprep.subr.bf16.mxu0 %v8172_v33  ;;  %v8262_v32 = vld [vmem:[#allocation4 + $0x334] ss:$8 sps:$4 sm:$0xff]  }
 0x121   : > { %1781 = vmatprep.subr.bf16.mxu1 %v8175_v34  ;;  %v8265_v33 = vld [vmem:[#allocation4 + $0x434] ss:$8 sps:$4 sm:$0xff]   ;;  %v8260_v34 = vld [vmem:[#allocation4 + $0x330] ss:$8 sps:$4 sm:$0xff]  }
 0x123   : > { %1757 = vmatpush2.bf16.msra.mxu0 %v8170_v35  ;;  %v8263_v35 = vld [vmem:[#allocation4 + $0x430] ss:$8 sps:$4 sm:$0xff]  }
 0x124   : > { %1782 = vmatpush1.bf16.msra.mxu1 %v8173_v36  ;;  %1758 = vmatprep.subr.bf16.mxu0 %v8178_v37  ;;  %v8268_v36 = vld [vmem:[#allocation4 + $0x324] ss:$8 sps:$4 sm:$0xff]  }
 0x125   : > { %1783 = vmatprep.subr.bf16.mxu1 %v8181_v38  ;;  %v8271_v37 = vld [vmem:[#allocation4 + $0x424] ss:$8 sps:$4 sm:$0xff]   ;;  %v8266_v38 = vld [vmem:[#allocation4 + $0x320] ss:$8 sps:$4 sm:$0xff]  }
 0x127   : > { %1759 = vmatpush2.bf16.msra.mxu0 %v8176_v39  ;;  %v8269_v39 = vld [vmem:[#allocation4 + $0x420] ss:$8 sps:$4 sm:$0xff]  }
 0x128   : > { %1784 = vmatpush1.bf16.msra.mxu1 %v8179_v40  ;;  %1760 = vmatprep.subr.bf16.mxu0 %v8184_v42  ;;  %v8274_v40 = vld [vmem:[#allocation4 + $0x314] ss:$8 sps:$4 sm:$0xff]  }
 0x129   : > { %1785 = vmatprep.subr.bf16.mxu1 %v8187_v43  ;;  %v8277_v42 = vld [vmem:[#allocation4 + $0x414] ss:$8 sps:$4 sm:$0xff]   ;;  %v8272_v43 = vld [vmem:[#allocation4 + $0x310] ss:$8 sps:$4 sm:$0xff]  }
 0x12b   : > { %1761 = vmatpush2.bf16.msra.mxu0 %v8182_v44  ;;  %v8275_v44 = vld [vmem:[#allocation4 + $0x410] ss:$8 sps:$4 sm:$0xff]  }
 0x12c   : > { %1786 = vmatpush1.bf16.msra.mxu1 %v8185_v45  ;;  %2224 = vmatprep.subr.bf16.mxu0 %v8190_v46  ;;  %v8280_v45 = vld [vmem:[#allocation4 + $0x304] ss:$8 sps:$4 sm:$0xff]  }
 0x12d   : > { %2265 = vmatprep.subr.bf16.mxu1 %v8193_v48  ;;  %v8283_v46 = vld [vmem:[#allocation4 + $0x404] ss:$8 sps:$4 sm:$0xff]   ;;  %v8278_v48 = vld [vmem:[#allocation4 + $0x300] ss:$8 sps:$4 sm:$0xff]  }
 0x12e   : > { %1763 = vmatmul.mubr.bf16.vlgmr.msra.gmra.mxu0 %v9362_v7 }
 0x12f   : > { %1804 = vmatmul.mubr.bf16.vlgmr.msra.gmra.mxu1 %v9369_v41  ;;  %2225 = vmatpush1.bf16.msra.mxu0 %v8188_v49  ;;  %v8209_v41 = vld [vmem:[#allocation4 + $0x3c0] ss:$8 sps:$4 sm:$0xff]  }
 0x130   : > { %2266 = vmatpush1.bf16.msra.mxu1 %v8191_v50  ;;  %2226 = vmatprep.subr.bf16.mxu0 %v8196_v52  ;;  %v8281_v49 = vld [vmem:[#allocation4 + $0x400] ss:$8 sps:$4 sm:$0xff]   ;;  %v8286_v50 = vld [vmem:[#allocation4 + $0x4f4] ss:$8 sps:$4 sm:$0xff]   ;;  %v8284_v52 = vld [vmem:[#allocation4 + $0x4f0] ss:$8 sps:$4 sm:$0xff]  }
 0x131   : > { %2267 = vmatprep.subr.bf16.mxu1 %v8199_v53  ;;  %2256 = vmatprep.mubr.bf16.mxu0 %v9353_v47  ;;  %v8223_v47 = vld [vmem:[#allocation4 + $0x3a4] ss:$8 sps:$4 sm:$0xff]  }
 0x132   : > { %2297 = vmatprep.mubr.bf16.mxu1 %v9356_v51  ;;  %v8218_v51 = vld [vmem:[#allocation4 + $0x2a0] ss:$8 sps:$4 sm:$0xff]   ;;  %v8289_v53 = vld [vmem:[#allocation4 + $0x4e4] ss:$8 sps:$4 sm:$0xff]  }
 0x133   : > { %2227 = vmatpush1.bf16.msra.mxu0 %v8194_v54  ;;  %v8287_v54 = vld [vmem:[#allocation4 + $0x4e0] ss:$8 sps:$4 sm:$0xff]  }
 0x134   : > { %2268 = vmatpush1.bf16.msra.mxu1 %v8197_v55  ;;  %2228 = vmatprep.subr.bf16.mxu0 %v8202_v56  ;;  %v8292_v55 = vld [vmem:[#allocation4 + $0x4d4] ss:$8 sps:$4 sm:$0xff]   ;;  %v8290_v56 = vld [vmem:[#allocation4 + $0x4d0] ss:$8 sps:$4 sm:$0xff]  }
 0x135   : > { %2269 = vmatprep.subr.bf16.mxu1 %v8205_v57  ;;  %v8295_v57 = vld [vmem:[#allocation4 + $0x4c4] ss:$8 sps:$4 sm:$0xff]  }
 0x137   : > { %2229 = vmatpush1.bf16.msra.mxu0 %v8200_v58  ;;  %v8293_v58 = vld [vmem:[#allocation4 + $0x4c0] ss:$8 sps:$4 sm:$0xff]  }
 0x138   : > { %2270 = vmatpush1.bf16.msra.mxu1 %v8203_v59  ;;  %2230 = vmatprep.subr.bf16.mxu0 %v8208_v60  ;;  %v8308_v59 = vld [vmem:[#allocation7 + $0xa8] ss:$12 sps:$4 sm:$0xff]   ;;  %v8310_v60 = vld [vmem:[#allocation7 + $0xac] ss:$12 sps:$4 sm:$0xff]  }
 0x139   : > { %2271 = vmatprep.subr.bf16.mxu1 %v8211_v61  ;;  %v8298_v61 = vld [vmem:[#allocation4 + $0x4b4] ss:$8 sps:$4 sm:$0xff]  }
 0x13b   : > { %2231 = vmatpush1.bf16.msra.mxu0 %v8206_v62  ;;  %v8313_v62 = vld [vmem:[#allocation7 + $0x94] ss:$12 sps:$4 sm:$0xff]  }
 0x13c   : > { %2272 = vmatpush1.bf16.msra.mxu1 %v8209_v41  ;;  %2232 = vmatprep.subr.bf16.mxu0 %v8214_v63  ;;  %v8296_v41 = vld [vmem:[#allocation4 + $0x4b0] ss:$8 sps:$4 sm:$0xff]   ;;  %v8316_v63 = vld [vmem:[#allocation7 + $0x7c] ss:$12 sps:$4 sm:$0xff]  }
 0x13d   : > { %2273 = vmatprep.subr.bf16.mxu1 %v8217_v0  ;;  %v8314_v0 = vld [vmem:[#allocation7 + $0x78] ss:$12 sps:$4 sm:$0xff]  }
 0x13f   : > { %2233 = vmatpush1.bf16.msra.mxu0 %v8212_v1  ;;  %v8299_v1 = vld [vmem:[#allocation4 + $0x4a0] ss:$8 sps:$4 sm:$0xff]  }
 0x140   : > { %2274 = vmatpush1.bf16.msra.mxu1 %v8215_v2  ;;  %2234 = vmatprep.subr.bf16.mxu0 %v8220_v3  ;;  %v8319_v2 = vld [vmem:[#allocation7 + $0x64] ss:$12 sps:$4 sm:$0xff]  }
 0x141   : > { %2275 = vmatprep.subr.bf16.mxu1 %v8223_v47  ;;  %v8304_v3 = vld [vmem:[#allocation4 + $0x494] ss:$8 sps:$4 sm:$0xff]   ;;  %v8317_v47 = vld [vmem:[#allocation7 + $0x60] ss:$12 sps:$4 sm:$0xff]  }
 0x143   : > { %2235 = vmatpush1.bf16.msra.mxu0 %v8218_v51  ;;  %v8302_v51 = vld [vmem:[#allocation4 + $0x490] ss:$8 sps:$4 sm:$0xff]  }
 0x144   : > { %2276 = vmatpush1.bf16.msra.mxu1 %v8221_v4  ;;  %2236 = vmatprep.subr.bf16.mxu0 %v8226_v5  ;;  %v8322_v4 = vld [vmem:[#allocation7 + $0x4c] ss:$12 sps:$4 sm:$0xff]  }
 0x145   : > { %2277 = vmatprep.subr.bf16.mxu1 %v8229_v8  ;;  %v8307_v5 = vld [vmem:[#allocation4 + $0x484] ss:$8 sps:$4 sm:$0xff]  }
 0x146   : > { %v8320_v8 = vld [vmem:[#allocation7 + $0x48] ss:$12 sps:$4 sm:$0xff]  }
 0x147   : > { %2237 = vmatpush1.bf16.msra.mxu0 %v8224_v9  ;;  %v8305_v9 = vld [vmem:[#allocation4 + $0x480] ss:$8 sps:$4 sm:$0xff]  }
 0x148   : > { %2278 = vmatpush1.bf16.msra.mxu1 %v8227_v10  ;;  %2238 = vmatprep.subr.bf16.mxu0 %v8232_v11 }
 0x149   : > { %2279 = vmatprep.subr.bf16.mxu1 %v8235_v12  ;;  %v8868_v12 = vld [vmem:[%s9334_s12 + $0x10] ss:$0 sps:$4 sm:$0xff]  }
 0x14b   : > { %2239 = vmatpush1.bf16.msra.mxu0 %v8230_v13 }
 0x14c   : > { %2280 = vmatpush1.bf16.msra.mxu1 %v8233_v14  ;;  %2240 = vmatprep.subr.bf16.mxu0 %v8238_v15 }
 0x14d   : > { %2281 = vmatprep.subr.bf16.mxu1 %v8241_v17 }
 0x14f   : > { %2241 = vmatpush2.bf16.msra.mxu0 %v8236_v18 }
 0x150   : > { %2282 = vmatpush2.bf16.msra.mxu1 %v8239_v19  ;;  %2242 = vmatprep.subr.bf16.mxu0 %v8244_v20 }
 0x151   : > { %2283 = vmatprep.subr.bf16.mxu1 %v8247_v21 }
 0x153   : > { %2243 = vmatpush2.bf16.msra.mxu0 %v8242_v22  ;;  %v8325_v22 = vld [vmem:[#allocation7 + $0x34] ss:$12 sps:$4 sm:$0xff]  }
 0x154   : > { %2284 = vmatpush2.bf16.msra.mxu1 %v8245_v23  ;;  %2244 = vmatprep.subr.bf16.mxu0 %v8250_v24  ;;  %v8323_v24 = vld [vmem:[#allocation7 + $0x30] ss:$12 sps:$4 sm:$0xff]  }
 0x155   : > { %2285 = vmatprep.subr.bf16.mxu1 %v8253_v25 }
 0x157   : > { %2245 = vmatpush2.bf16.msra.mxu0 %v8248_v26 }
 0x158   : > { %2286 = vmatpush2.bf16.msra.mxu1 %v8251_v27  ;;  %2246 = vmatprep.subr.bf16.mxu0 %v8256_v28  ;;  %v8328_v28 = vld [vmem:[#allocation7 + $0x1c] ss:$12 sps:$4 sm:$0xff]  }
 0x159   : > { %2287 = vmatprep.subr.bf16.mxu1 %v8259_v29 }
 0x15b   : > { %2247 = vmatpush2.bf16.msra.mxu0 %v8254_v30  ;;  %v8326_v30 = vld [vmem:[#allocation7 + $0x18] ss:$12 sps:$4 sm:$0xff]  }
 0x15c   : > { %2288 = vmatpush2.bf16.msra.mxu1 %v8257_v31  ;;  %2248 = vmatprep.subr.bf16.mxu0 %v8262_v32  ;;  %v8329_v32 = vld [vmem:[#allocation7] ss:$12 sps:$4 sm:$0xff]  }
 0x15d   : > { %2289 = vmatprep.subr.bf16.mxu1 %v8265_v33  ;;  %v8331_v33 = vld [vmem:[#allocation7 + $0x4] ss:$12 sps:$4 sm:$0xff]  }
 0x15f   : > { %2249 = vmatpush2.bf16.msra.mxu0 %v8260_v34  ;;  %v8334_v34 = vld [vmem:[#allocation7 + $0x16c] ss:$12 sps:$4 sm:$0xff]  }
 0x160   : > { %2290 = vmatpush2.bf16.msra.mxu1 %v8263_v35  ;;  %2250 = vmatprep.subr.bf16.mxu0 %v8268_v36  ;;  %v8335_v35 = vld [vmem:[#allocation7 + $0x170] ss:$12 sps:$4 sm:$0xff]  }
 0x161   : > { %2291 = vmatprep.subr.bf16.mxu1 %v8271_v37  ;;  %v8336_v36 = vld [vmem:[#allocation7 + $0xb0] ss:$12 sps:$4 sm:$0xff]   ;;  %v8340_v37 = vld [vmem:[#allocation7 + $0x158] ss:$12 sps:$4 sm:$0xff]  }
 0x163   : > { %2251 = vmatpush2.bf16.msra.mxu0 %v8266_v38  ;;  %v8332_v38 = vld [vmem:[#allocation7 + $0x168] ss:$12 sps:$4 sm:$0xff]  }
 0x164   : > { %2292 = vmatpush2.bf16.msra.mxu1 %v8269_v39  ;;  %2252 = vmatprep.subr.bf16.mxu0 %v8274_v40  ;;  %v8341_v39 = vld [vmem:[#allocation7 + $0x98] ss:$12 sps:$4 sm:$0xff]   ;;  %v8339_v40 = vld [vmem:[#allocation7 + $0x154] ss:$12 sps:$4 sm:$0xff]  }
 0x165   : > { %2293 = vmatprep.subr.bf16.mxu1 %v8277_v42  ;;  %v8345_v42 = vld [vmem:[#allocation7 + $0x140] ss:$12 sps:$4 sm:$0xff]  }
 0x167   : > { %2253 = vmatpush2.bf16.msra.mxu0 %v8272_v43  ;;  %v8337_v43 = vld [vmem:[#allocation7 + $0x150] ss:$12 sps:$4 sm:$0xff]  }
 0x168   : > { %2294 = vmatpush2.bf16.msra.mxu1 %v8275_v44  ;;  %2254 = vmatprep.subr.bf16.mxu0 %v8280_v45  ;;  %v8344_v44 = vld [vmem:[#allocation7 + $0x13c] ss:$12 sps:$4 sm:$0xff]   ;;  %v8346_v45 = vld [vmem:[#allocation7 + $0x80] ss:$12 sps:$4 sm:$0xff]  }
 0x169   : > { %2295 = vmatprep.subr.bf16.mxu1 %v8283_v46  ;;  %v8350_v46 = vld [vmem:[#allocation7 + $0x128] ss:$12 sps:$4 sm:$0xff]  }
 0x16b   : > { %2255 = vmatpush2.bf16.msra.mxu0 %v8278_v48  ;;  %v8342_v48 = vld [vmem:[#allocation7 + $0x138] ss:$12 sps:$4 sm:$0xff]  }
 0x16c   : > { %2296 = vmatpush2.bf16.msra.mxu1 %v8281_v49  ;;  %2306 = vmatprep.subr.bf16.mxu0 %v8286_v50  ;;  %v8351_v49 = vld [vmem:[#allocation7 + $0x68] ss:$12 sps:$4 sm:$0xff]   ;;  %v8349_v50 = vld [vmem:[#allocation7 + $0x124] ss:$12 sps:$4 sm:$0xff]  }
 0x16d   : > { %2765 = vmatprep.subr.bf16.mxu1 %v8310_v60  ;;  %v8357_v60 = vld [vmem:[#allocation7 + $0xf0] ss:$12 sps:$4 sm:$0xff]  }
 0x16e   : > { %2257 = vmatmul.mubr.bf16.vlgmr.msra.gmra.mxu0 %v9360_v6  ;;  %v8301_v6 = vld [vmem:[#allocation4 + $0x4a4] ss:$8 sps:$4 sm:$0xff]  }
 0x16f   : > { %2298 = vmatmul.mubr.bf16.vlgmr.msra.gmra.mxu1 %v9362_v7  ;;  %2307 = vmatpush1.bf16.msra.mxu0 %v8284_v52  ;;  %v8311_v7 = vld [vmem:[#allocation7 + $0x90] ss:$12 sps:$4 sm:$0xff]  }
 0x170   : > { %2338 = vmatprep.mubr.bf16.mxu0 %v9114_v16  ;;  %2308 = vmatprep.subr.bf16.mxu0 %v8289_v53  ;;  %v8355_v52 = vld [vmem:[#allocation7 + $0x110] ss:$12 sps:$4 sm:$0xff]   ;;  %v8347_v53 = vld [vmem:[#allocation7 + $0x120] ss:$12 sps:$4 sm:$0xff]  }
 0x171   : > { %2766 = vmatpush1.bf16.msra.mxu1 %v8308_v59 }
 0x172   : > { %2767 = vmatprep.subr.bf16.mxu1 %v8313_v62 }
 0x173   : > { %2309 = vmatpush1.bf16.msra.mxu0 %v8287_v54  ;;  %v8356_v54 = vld [vmem:[#allocation7 + $0x50] ss:$12 sps:$4 sm:$0xff]  }
 0x174   : > { %2310 = vmatprep.subr.bf16.mxu0 %v8292_v55  ;;  %v8354_v55 = vld [vmem:[#allocation7 + $0x10c] ss:$12 sps:$4 sm:$0xff]  }
 0x175   : > { %2768 = vmatpush1.bf16.msra.mxu1 %v8311_v7 }
 0x176   : > { %2769 = vmatprep.subr.bf16.mxu1 %v8316_v63  ;;  %v8362_v63 = vld [vmem:[#allocation7 + $0xd8] ss:$12 sps:$4 sm:$0xff]  }
 0x177   : > { %2311 = vmatpush1.bf16.msra.mxu0 %v8290_v56  ;;  %v8352_v56 = vld [vmem:[#allocation7 + $0x108] ss:$12 sps:$4 sm:$0xff]  }
 0x178   : > { %2312 = vmatprep.subr.bf16.mxu0 %v8295_v57  ;;  %v8359_v57 = vld [vmem:[#allocation7 + $0xf4] ss:$12 sps:$4 sm:$0xff]  }
 0x179   : > { %2770 = vmatpush1.bf16.msra.mxu1 %v8314_v0  ;;  %v8366_v0 = vld [vmem:[#allocation7 + $0x20] ss:$12 sps:$4 sm:$0xff]  }
 0x17a   : > { %2771 = vmatprep.subr.bf16.mxu1 %v8319_v2  ;;  %v8369_v2 = vld [vmem:[#allocation7 + $0xc4] ss:$12 sps:$4 sm:$0xff]  }
 0x17b   : > { %2313 = vmatpush1.bf16.msra.mxu0 %v8293_v58  ;;  %v8360_v58 = vld [vmem:[#allocation7 + $0xf8] ss:$12 sps:$4 sm:$0xff]  }
 0x17c   : > { %2314 = vmatprep.subr.bf16.mxu0 %v8298_v61  ;;  %v8361_v61 = vld [vmem:[#allocation7 + $0x38] ss:$12 sps:$4 sm:$0xff]  }
 0x17d   : > { %2772 = vmatpush1.bf16.msra.mxu1 %v8317_v47  ;;  %v8367_v47 = vld [vmem:[#allocation7 + $0xc0] ss:$12 sps:$4 sm:$0xff]  }
 0x17e   : > { %2773 = vmatprep.subr.bf16.mxu1 %v8322_v4  ;;  %v8374_v4 = vld [vmem:[#allocation7 + $0x3ac] ss:$12 sps:$4 sm:$0xff]  }
 0x17f   : > { %2315 = vmatpush1.bf16.msra.mxu0 %v8296_v41  ;;  %v8364_v41 = vld [vmem:[#allocation7 + $0xdc] ss:$12 sps:$4 sm:$0xff]  }
 0x180   : > { %2316 = vmatprep.subr.bf16.mxu0 %v8301_v6  ;;  %v8365_v6 = vld [vmem:[#allocation7 + $0xe0] ss:$12 sps:$4 sm:$0xff]  }
 0x181   : > { %2774 = vmatpush1.bf16.msra.mxu1 %v8320_v8 }
 0x182   : > { %2775 = vmatprep.subr.bf16.mxu1 %v8325_v22 }
 0x183   : > { %2317 = vmatpush1.bf16.msra.mxu0 %v8299_v1 }
 0x184   : > { %2318 = vmatprep.subr.bf16.mxu0 %v8304_v3  ;;  %v8370_v3 = vld [vmem:[#allocation7 + $0xc8] ss:$12 sps:$4 sm:$0xff]  }
 0x185   : > { %2776 = vmatpush1.bf16.msra.mxu1 %v8323_v24 }
 0x186   : > { %2777 = vmatprep.subr.bf16.mxu1 %v8328_v28 }
 0x187   : > { %2319 = vmatpush1.bf16.msra.mxu0 %v8302_v51  ;;  %v8371_v51 = vld [vmem:[#allocation7 + $0x8] ss:$12 sps:$4 sm:$0xff]  }
 0x188   : > { %2320 = vmatprep.subr.bf16.mxu0 %v8307_v5  ;;  %v8375_v5 = vld [vmem:[#allocation7 + $0x470] ss:$12 sps:$4 sm:$0xff]  }
 0x189   : > { %2778 = vmatpush1.bf16.msra.mxu1 %v8326_v30 }
 0x18a   : > { %2779 = vmatprep.subr.bf16.mxu1 %v8331_v33 }
 0x18b   : > { %2321 = vmatpush1.bf16.msra.mxu0 %v8305_v9 }
 0x18c   : > { %7430 = vmatprep.subr.bf16.mxu0 %v8335_v35 }
 0x18d   : > { %2780 = vmatpush1.bf16.msra.mxu1 %v8329_v32 }
 0x18e   : > { %v1120_v10 = vpop.f32.mrf.mxu0  ;;  %2339 = vmatmul.mubr.bf16.vlgmr.msra.gmra.mxu0 %v8868_v12  ;;  %2781 = vmatprep.subr.bf16.mxu1 %v8334_v34  ;;  %v1812_v34 = vld [vmem:[#allocation6] sm:$0x3] }
 0x18f   : > { %v1161_v11 = vpop.f32.mrf.mxu1  ;;  %7431 = vmatpush3.bf16.msra.mxu0 %v8336_v36 }
 0x190   : > { %v1162_v13 = vadd.f32 %v1161_v11, %v1120_v10  ;;  %v1122_v14 = vpop.f32.mrf.mxu0  ;;  %7432 = vmatprep.subr.bf16.mxu0 %v8340_v37 }
 0x191   : > { %v1163_v15 = vpop.f32.mrf.mxu1  ;;  %2782 = vmatpush2.bf16.msra.mxu1 %v8332_v38 }
 0x192   : > { %v1164_v17 = vadd.f32 %v1163_v15, %v1122_v14  ;;  %v1124_v18 = vpop.f32.mrf.mxu0  ;;  %2783 = vmatprep.subr.bf16.mxu1 %v8339_v40 }
 0x193   : > { %v1165_v19 = vpop.f32.mrf.mxu1  ;;  %7433 = vmatpush3.bf16.msra.mxu0 %v8341_v39 }
 0x194   : > { %v1125_v20 = vpop.f32.mrf.mxu0  ;;  %7434 = vmatprep.subr.bf16.mxu0 %v8345_v42 }
 0x195   : > { %v1166_v21 = vpop.f32.mrf.mxu1  ;;  %2784 = vmatpush2.bf16.msra.mxu1 %v8337_v43 }
 0x196   : > { %2785 = vmatprep.subr.bf16.mxu1 %v8344_v44 }
 0x197   : > { %7435 = vmatpush3.bf16.msra.mxu0 %v8346_v45 }
 0x198   : > { %7436 = vmatprep.subr.bf16.mxu0 %v8350_v46 }
 0x199   : > { %2786 = vmatpush2.bf16.msra.mxu1 %v8342_v48 }
 0x19a   : > { %2787 = vmatprep.subr.bf16.mxu1 %v8349_v50 }
 0x19b   : > { %7437 = vmatpush3.bf16.msra.mxu0 %v8351_v49 }
 0x19c   : > { %7438 = vmatprep.subr.bf16.mxu0 %v8355_v52 }
 0x19d   : > { %2788 = vmatpush2.bf16.msra.mxu1 %v8347_v53 }
 0x19e   : > { %2789 = vmatprep.subr.bf16.mxu1 %v8354_v55 }
 0x19f   : > { %7439 = vmatpush3.bf16.msra.mxu0 %v8356_v54 }
 0x1a0   : > { %7440 = vmatprep.subr.bf16.mxu0 %v8360_v58 }
 0x1a1   : > { %2790 = vmatpush2.bf16.msra.mxu1 %v8352_v56 }
 0x1a2   : > { %2791 = vmatprep.subr.bf16.mxu1 %v8359_v57 }
 0x1a3   : > { %7441 = vmatpush3.bf16.msra.mxu0 %v8361_v61 }
 0x1a4   : > { %7442 = vmatprep.subr.bf16.mxu0 %v8365_v6 }
 0x1a5   : > { %2792 = vmatpush2.bf16.msra.mxu1 %v8357_v60 }
 0x1a6   : > { %2793 = vmatprep.subr.bf16.mxu1 %v8364_v41 }
 0x1a7   : > { %7443 = vmatpush3.bf16.msra.mxu0 %v8366_v0  ;;  %v8372_v0 = vld [vmem:[#allocation7 + $0x3a8] ss:$12 sps:$4 sm:$0xff]  }
 0x1a8   : > { %7444 = vmatprep.subr.bf16.mxu0 %v8370_v3  ;;  %v8379_v3 = vld [vmem:[#allocation7 + $0x394] ss:$12 sps:$4 sm:$0xff]  }
 0x1a9   : > { %2794 = vmatpush2.bf16.msra.mxu1 %v8362_v63 }
 0x1aa   : > { %2795 = vmatprep.subr.bf16.mxu1 %v8369_v2 }
 0x1ab   : > { %7445 = vmatpush3.bf16.msra.mxu0 %v8371_v51  ;;  %v8377_v51 = vld [vmem:[#allocation7 + $0x390] ss:$12 sps:$4 sm:$0xff]  }
 0x1ac   : > { %3166 = vmatprep.subr.bf16.mxu0 %v8374_v4  ;;  %v8381_v4 = vld [vmem:[#allocation7 + $0x398] ss:$12 sps:$4 sm:$0xff]  }
 0x1ad   : > { %2796 = vmatpush2.bf16.msra.mxu1 %v8367_v47  ;;  %v8380_v47 = vld [vmem:[#allocation7 + $0x458] ss:$12 sps:$4 sm:$0xff]  }
 0x1ae   : > { %v1202_v23 = vpop.f32.mrf.mxu0  ;;  %7452 = vmatprep.subr.bf16.mxu1 %v8375_v5  ;;  %v8384_v5 = vld [vmem:[#allocation7 + $0x37c] ss:$12 sps:$4 sm:$0xff]  }
 0x1af   : > { %v9383_v25 = vadd.f32 %v1202_v23, %v1162_v13 }
 0x1b0   : > { %v1204_v26 = vpop.f32.mrf.mxu0 }
 0x1b1   : > { %v9385_v27 = vadd.f32 %v1204_v26, %v1164_v17  ;;  %v2349_v42 = vrot.slane %v9383_v25, 7 }
 0x1b2   : > { %v1206_v29 = vpop.f32.mrf.mxu0 }
 0x1b3   : > { %v2350_v45 = vrot.slane %v9385_v27, 7 }
 0x1b4   : > { %v1207_v31 = vpop.f32.mrf.mxu0 }
 0x1b5   : > { %v492_v31 = vlaneseq }
 0x1b7   : > { %v9387_v32 = vshrl.u32 %v492_v31, 7  ;;  %v8410_v31 = vld [vmem:[#allocation7 + $0x3c8] ss:$12 sps:$4 sm:$0xff]  }
 0x1b9   : > { %v9390_v33 = vsub.s32 0, %v9387_v32  ;;  %v9393_v35 = vsub.s32 1, %v9387_v32  ;;  %v498_v38 = vand.u32 7, %v9387_v32 }
 0x1bb   : > { %v1817_v36 = vrot.slane %v1812_v34, %v9390_v33  ;;  %v1821_v37 = vrot.slane %v1812_v34, %v9393_v35  ;;  %vm9399_vm0 = vcmp.gt.s32.totalorder %v498_v38, 0  ;;  %vm9404_vm1 = vcmp.lt.s32.totalorder %v498_v38, 7  ;;  %v8407_v34 = vld [vmem:[#allocation7 + $0x300] ss:$12 sps:$4 sm:$0xff]  }
 0x1bc   : > { %v2358_v53 = vsel %vm9399_vm0, %v2349_v42, 0.0  ;;  %v2359_v57 = vsel %vm9399_vm0, %v2350_v45, 0.0  ;;  %v8417_v38 = vld [vmem:[#allocation7 + $0x22c] ss:$12 sps:$4 sm:$0xff]   ;;  %v8420_v42 = vld [vmem:[#allocation7 + $0x454] ss:$12 sps:$4 sm:$0xff]  }
 0x1bd   : > { %v8418_v45 = vld [vmem:[#allocation7 + $0x450] ss:$12 sps:$4 sm:$0xff]  }
 0x1cf   : > { %v1723_v59 = vpop.f32.mrf.mxu1 }
 0x1d1   : > { %v1725_v62 = vpop.f32.mrf.mxu1 }
 0x1d3   : > { %v1727_v7 = vpop.f32.mrf.mxu1 }
 0x1d5   : > { %v1728_v1 = vpop.f32.mrf.mxu1 }
 0x1d6   : > { %v8376_v1 = vld [vmem:[#allocation7 + $0x3b0] ss:$12 sps:$4 sm:$0xff]  }
 0x1ee   : > { %v1764_v8 = vpop.f32.mrf.mxu0 }
 0x1ef   : > { %v1805_v9 = vpop.f32.mrf.mxu1  ;;  %v1765_v10 = vadd.f32 %v1764_v8, %v1723_v59  ;;  %v8385_v8 = vld [vmem:[#allocation7 + $0x440] ss:$12 sps:$4 sm:$0xff]  }
 0x1f0   : > { %v1766_v11 = vpop.f32.mrf.mxu0 }
 0x1f1   : > { %v1807_v12 = vpop.f32.mrf.mxu1  ;;  %v1767_v13 = vadd.f32 %v1766_v11, %v1725_v62  ;;  %v1806_v14 = vadd.f32 %v1805_v9, %v1765_v10  ;;  %v8382_v9 = vld [vmem:[#allocation7 + $0x378] ss:$12 sps:$4 sm:$0xff]   ;;  %v8386_v10 = vld [vmem:[#allocation7 + $0x380] ss:$12 sps:$4 sm:$0xff]  }
 0x1f2   : > { %v1768_v15 = vpop.f32.mrf.mxu0  ;;  %v8389_v11 = vld [vmem:[#allocation7 + $0x364] ss:$12 sps:$4 sm:$0xff]  }
 0x1f3   : > { %v1809_v17 = vpop.f32.mrf.mxu1  ;;  %v1808_v18 = vadd.f32 %v1807_v12, %v1767_v13  ;;  %v2364_v46 = vrot.slane %v1806_v14, 1  ;;  %v8390_v12 = vld [vmem:[#allocation7 + $0x428] ss:$12 sps:$4 sm:$0xff]   ;;  %v8387_v13 = vld [vmem:[#allocation7 + $0x360] ss:$12 sps:$4 sm:$0xff]  }
 0x1f4   : > { %v1769_v19 = vpop.f32.mrf.mxu0  ;;  %v8391_v14 = vld [vmem:[#allocation7 + $0x368] ss:$12 sps:$4 sm:$0xff]   ;;  %v8394_v15 = vld [vmem:[#allocation7 + $0x34c] ss:$12 sps:$4 sm:$0xff]   ;;  %v8395_v17 = vld [vmem:[#allocation7 + $0x410] ss:$12 sps:$4 sm:$0xff]  }
 0x1f5   : > { %v1810_v20 = vpop.f32.mrf.mxu1  ;;  %v2365_v54 = vrot.slane %v1808_v18, 1  ;;  %v2373_v27 = vsel %vm9404_vm1, %v2364_v46, 0.0  ;;  %v8392_v18 = vld [vmem:[#allocation7 + $0x348] ss:$12 sps:$4 sm:$0xff]   ;;  %v8396_v19 = vld [vmem:[#allocation7 + $0x350] ss:$12 sps:$4 sm:$0xff]  }
 0x1f6   : > { %v8399_v20 = vld [vmem:[#allocation7 + $0x334] ss:$12 sps:$4 sm:$0xff]   ;;  %v8421_v46 = vld [vmem:[#allocation7 + $0x210] ss:$12 sps:$4 sm:$0xff]  }
 0x1f7   : > { %v2374_v61 = vsel %vm9404_vm1, %v2365_v54, 0.0  ;;  %v8432_v54 = vld [vmem:[#allocation7 + $0x424] ss:$12 sps:$4 sm:$0xff]  }
 0x22e   : > { %v2258_v21 = vpop.f32.mrf.mxu0 }
 0x22f   : > { %v2299_v22 = vpop.f32.mrf.mxu1  ;;  %v2259_v39 = vadd.f32 %v2258_v21, %v1817_v36  ;;  %v8400_v21 = vld [vmem:[#allocation7 + $0x3f8] ss:$12 sps:$4 sm:$0xff]   ;;  %v8411_v36 = vld [vmem:[#allocation7 + $0x308] ss:$12 sps:$4 sm:$0xff]  }
 0x230   : > { %v2260_v23 = vpop.f32.mrf.mxu0 }
 0x231   : > { %v2301_v24 = vpop.f32.mrf.mxu1  ;;  %v2261_v40 = vadd.f32 %v2260_v23, %v1821_v37  ;;  %v2300_v44 = vadd.f32 %v2299_v22, %v2259_v39  ;;  %v8397_v22 = vld [vmem:[#allocation7 + $0x330] ss:$12 sps:$4 sm:$0xff]   ;;  %v8401_v23 = vld [vmem:[#allocation7 + $0x338] ss:$12 sps:$4 sm:$0xff]   ;;  %v8412_v39 = vld [vmem:[#allocation7 + $0x468] ss:$12 sps:$4 sm:$0xff]  }
 0x232   : > { %v2262_v26 = vpop.f32.mrf.mxu0  ;;  %v8414_v37 = vld [vmem:[#allocation7 + $0x46c] ss:$12 sps:$4 sm:$0xff]  }
 0x233   : > { %v2303_v28 = vpop.f32.mrf.mxu1  ;;  %v2302_v50 = vadd.f32 %v2301_v24, %v2261_v40  ;;  %v8404_v24 = vld [vmem:[#allocation7 + $0x31c] ss:$12 sps:$4 sm:$0xff]   ;;  %v8405_v26 = vld [vmem:[#allocation7 + $0x3e0] ss:$12 sps:$4 sm:$0xff]  }
 0x234   : > { %v2263_v29 = vpop.f32.mrf.mxu0  ;;  %v8402_v28 = vld [vmem:[#allocation7 + $0x318] ss:$12 sps:$4 sm:$0xff]   ;;  %v8415_v40 = vld [vmem:[#allocation7 + $0x228] ss:$12 sps:$4 sm:$0xff]  }
 0x235   : > { %v2304_v30 = vpop.f32.mrf.mxu1  ;;  %v8406_v29 = vld [vmem:[#allocation7 + $0x320] ss:$12 sps:$4 sm:$0xff]  }
 0x236   : > { %v8409_v30 = vld [vmem:[#allocation7 + $0x304] ss:$12 sps:$4 sm:$0xff]  }
 0x24e   : > { %v2340_v48 = vpop.f32.mrf.mxu0 }
 0x24f   : > { %v2341_v52 = vadd.f32 %v2340_v48, %v2300_v44  ;;  %v8423_v44 = vld [vmem:[#allocation7 + $0x214] ss:$12 sps:$4 sm:$0xff]   ;;  %v8426_v48 = vld [vmem:[#allocation7 + $0x43c] ss:$12 sps:$4 sm:$0xff]  }
 0x250   : > { %v2342_v25 = vpop.f32.mrf.mxu0 }
 0x251   : > { %v2360_v55 = vadd.f32 %v2358_v53, %v2341_v52  ;;  %v2343_v56 = vadd.f32 %v2342_v25, %v2302_v50  ;;  %v8429_v50 = vld [vmem:[#allocation7 + $0x1fc] ss:$12 sps:$4 sm:$0xff]   ;;  %v8424_v52 = vld [vmem:[#allocation7 + $0x438] ss:$12 sps:$4 sm:$0xff]  }
 0x252   : > { %v2344_v58 = vpop.f32.mrf.mxu0  ;;  %v8427_v53 = vld [vmem:[#allocation7 + $0x1f8] ss:$12 sps:$4 sm:$0xff]  }
 0x253   : > { %v2375_v59 = vadd.f32 %v2373_v27, %v2360_v55  ;;  %v2361_v60 = vadd.f32 %v2359_v57, %v2343_v56  ;;  %v8435_v25 = vld [vmem:[#allocation7 + $0x1e4] ss:$12 sps:$4 sm:$0xff]   ;;  %v8430_v55 = vld [vmem:[#allocation7 + $0x420] ss:$12 sps:$4 sm:$0xff]   ;;  %v8436_v58 = vld [vmem:[#allocation7 + $0x408] ss:$12 sps:$4 sm:$0xff]  }
 0x254   : > { %v2345_v62 = vpop.f32.mrf.mxu0  ;;  %v8433_v56 = vld [vmem:[#allocation7 + $0x1e0] ss:$12 sps:$4 sm:$0xff]  }
 0x255   : > { %v2376_v41 = vadd.f32 %v2374_v61, %v2361_v60  ;;  %v2377_v6 = vmax.f32 %v2375_v59, 0.0  ;;  %v8438_v57 = vld [vmem:[#allocation7 + $0x40c] ss:$12 sps:$4 sm:$0xff]   ;;  %v8439_v59 = vld [vmem:[#allocation7 + $0x1c8] ss:$12 sps:$4 sm:$0xff]  }
 0x256   : > { %v8441_v27 = vld [vmem:[#allocation7 + $0x1cc] ss:$12 sps:$4 sm:$0xff]   ;;  %v8444_v60 = vld [vmem:[#allocation7 + $0x3f4] ss:$12 sps:$4 sm:$0xff]   ;;  %v8442_v62 = vld [vmem:[#allocation7 + $0x3f0] ss:$12 sps:$4 sm:$0xff]  }
 0x257   : > { %v2378_v7 = vmax.f32 %v2376_v41, 0.0  ;;  %v9418_v2 = vpack.c.bf16 %v2377_v6, %v2377_v6  ;;  %v8447_v61 = vld [vmem:[#allocation7 + $0x1b4] ss:$12 sps:$4 sm:$0xff]   ;;  %v8445_v41 = vld [vmem:[#allocation7 + $0x1b0] ss:$12 sps:$4 sm:$0xff]  }
 0x258   : > { %v8450_v6 = vld [vmem:[#allocation7 + $0x3dc] ss:$12 sps:$4 sm:$0xff]  }
 0x259   : > { %v9416_v63 = vpack.c.bf16 %v2378_v7, %v2378_v7  ;;  %v8453_v7 = vld [vmem:[#allocation7 + $0x19c] ss:$12 sps:$4 sm:$0xff]  }
 0x25b   : > { %2797 = vmatprep.mubr.bf16.mxu1 %v9416_v63  ;;  %2838 = vmatprep.mubr.bf16.mxu0 %v9416_v63 }
 0x25c   : > { %2798 = vmatmul.mubr.bf16.vlgmr.msra.gmra.mxu1 %v9418_v2  ;;  %2839 = vmatmul.mubr.bf16.vlgmr.msra.gmra.mxu0 %v9418_v2 }
 0x25d   : > { %3167 = vmatpush1.bf16.msra.mxu0 %v8372_v0  ;;  %7453 = vmatpush3.bf16.msra.mxu1 %v8376_v1  ;;  %v8448_v0 = vld [vmem:[#allocation7 + $0x3d8] ss:$12 sps:$4 sm:$0xff]  }
 0x25e   : > { %3198 = vmatprep.mubr.bf16.mxu0 %v9416_v63  ;;  %3239 = vmatprep.mubr.bf16.mxu1 %v9416_v63  ;;  %v8451_v1 = vld [vmem:[#allocation7 + $0x198] ss:$12 sps:$4 sm:$0xff]  }
 0x25f   : > { %3168 = vmatprep.subr.bf16.mxu0 %v8379_v3  ;;  %7454 = vmatprep.subr.bf16.mxu1 %v8380_v47  ;;  %v8456_v3 = vld [vmem:[#allocation7 + $0x3c4] ss:$12 sps:$4 sm:$0xff]  }
 0x260   : > { %v8459_v47 = vld [vmem:[#allocation7 + $0x184] ss:$12 sps:$4 sm:$0xff]  }
 0x261   : > { %3169 = vmatpush1.bf16.msra.mxu0 %v8377_v51  ;;  %7455 = vmatpush3.bf16.msra.mxu1 %v8381_v4  ;;  %v8454_v51 = vld [vmem:[#allocation7 + $0x3c0] ss:$12 sps:$4 sm:$0xff]  }
 0x262   : > { %3170 = vmatprep.subr.bf16.mxu0 %v8384_v5  ;;  %7456 = vmatprep.subr.bf16.mxu1 %v8385_v8  ;;  %v8457_v4 = vld [vmem:[#allocation7 + $0x180] ss:$12 sps:$4 sm:$0xff]   ;;  %v8463_v8 = vld [vmem:[#allocation7 + $0x2f0] ss:$12 sps:$4 sm:$0xff]  }
 0x263   : > { %v8462_v5 = vld [vmem:[#allocation7 + $0x2ec] ss:$12 sps:$4 sm:$0xff]  }
 0x265   : > { %3171 = vmatpush1.bf16.msra.mxu0 %v8382_v9  ;;  %7457 = vmatpush3.bf16.msra.mxu1 %v8386_v10  ;;  %v8460_v9 = vld [vmem:[#allocation7 + $0x2e8] ss:$12 sps:$4 sm:$0xff]   ;;  %v8464_v10 = vld [vmem:[#allocation7 + $0x230] ss:$12 sps:$4 sm:$0xff]  }
 0x266   : > { %3172 = vmatprep.subr.bf16.mxu0 %v8389_v11  ;;  %7458 = vmatprep.subr.bf16.mxu1 %v8390_v12  ;;  %v8467_v11 = vld [vmem:[#allocation7 + $0x2d4] ss:$12 sps:$4 sm:$0xff]   ;;  %v8468_v12 = vld [vmem:[#allocation7 + $0x2d8] ss:$12 sps:$4 sm:$0xff]  }
 0x269   : > { %3173 = vmatpush1.bf16.msra.mxu0 %v8387_v13  ;;  %7459 = vmatpush3.bf16.msra.mxu1 %v8391_v14  ;;  %v8465_v13 = vld [vmem:[#allocation7 + $0x2d0] ss:$12 sps:$4 sm:$0xff]   ;;  %v8469_v14 = vld [vmem:[#allocation7 + $0x218] ss:$12 sps:$4 sm:$0xff]  }
 0x26a   : > { %3174 = vmatprep.subr.bf16.mxu0 %v8394_v15  ;;  %7460 = vmatprep.subr.bf16.mxu1 %v8395_v17  ;;  %v8472_v15 = vld [vmem:[#allocation7 + $0x2bc] ss:$12 sps:$4 sm:$0xff]   ;;  %v8473_v17 = vld [vmem:[#allocation7 + $0x2c0] ss:$12 sps:$4 sm:$0xff]  }
 0x26d   : > { %3175 = vmatpush1.bf16.msra.mxu0 %v8392_v18  ;;  %7461 = vmatpush3.bf16.msra.mxu1 %v8396_v19  ;;  %v8470_v18 = vld [vmem:[#allocation7 + $0x2b8] ss:$12 sps:$4 sm:$0xff]   ;;  %v8474_v19 = vld [vmem:[#allocation7 + $0x200] ss:$12 sps:$4 sm:$0xff]  }
 0x26e   : > { %3176 = vmatprep.subr.bf16.mxu0 %v8399_v20  ;;  %7462 = vmatprep.subr.bf16.mxu1 %v8400_v21  ;;  %v8477_v20 = vld [vmem:[#allocation7 + $0x2a4] ss:$12 sps:$4 sm:$0xff]   ;;  %v8478_v21 = vld [vmem:[#allocation7 + $0x2a8] ss:$12 sps:$4 sm:$0xff]  }
 0x271   : > { %3177 = vmatpush1.bf16.msra.mxu0 %v8397_v22  ;;  %7463 = vmatpush3.bf16.msra.mxu1 %v8401_v23  ;;  %v8475_v22 = vld [vmem:[#allocation7 + $0x2a0] ss:$12 sps:$4 sm:$0xff]   ;;  %v8479_v23 = vld [vmem:[#allocation7 + $0x1e8] ss:$12 sps:$4 sm:$0xff]  }
 0x272   : > { %3178 = vmatprep.subr.bf16.mxu0 %v8404_v24  ;;  %7464 = vmatprep.subr.bf16.mxu1 %v8405_v26  ;;  %v8482_v24 = vld [vmem:[#allocation7 + $0x28c] ss:$12 sps:$4 sm:$0xff]   ;;  %v8480_v26 = vld [vmem:[#allocation7 + $0x288] ss:$12 sps:$4 sm:$0xff]  }
 0x275   : > { %3179 = vmatpush1.bf16.msra.mxu0 %v8402_v28  ;;  %7465 = vmatpush3.bf16.msra.mxu1 %v8406_v29  ;;  %v8484_v28 = vld [vmem:[#allocation7 + $0x1d0] ss:$12 sps:$4 sm:$0xff]   ;;  %v8487_v29 = vld [vmem:[#allocation7 + $0x274] ss:$12 sps:$4 sm:$0xff]  }
 0x276   : > { %3180 = vmatprep.subr.bf16.mxu0 %v8409_v30  ;;  %7466 = vmatprep.subr.bf16.mxu1 %v8410_v31  ;;  %v8488_v30 = vld [vmem:[#allocation7 + $0x278] ss:$12 sps:$4 sm:$0xff]   ;;  %v8485_v31 = vld [vmem:[#allocation7 + $0x270] ss:$12 sps:$4 sm:$0xff]  }
 0x279   : > { %3181 = vmatpush1.bf16.msra.mxu0 %v8407_v34  ;;  %7467 = vmatpush3.bf16.msra.mxu1 %v8411_v36  ;;  %v8489_v34 = vld [vmem:[#allocation7 + $0x1b8] ss:$12 sps:$4 sm:$0xff]   ;;  %v8492_v36 = vld [vmem:[#allocation7 + $0x25c] ss:$12 sps:$4 sm:$0xff]  }
 0x27a   : > { %3182 = vmatprep.subr.bf16.mxu0 %v8414_v37  ;;  %3520 = vmatprep.subr.bf16.mxu1 %v8417_v38  ;;  %v8493_v37 = vld [vmem:[#allocation7 + $0x260] ss:$12 sps:$4 sm:$0xff]   ;;  %v8490_v38 = vld [vmem:[#allocation7 + $0x258] ss:$12 sps:$4 sm:$0xff]  }
 0x27c   : > { %3240 = vmatmul.mubr.bf16.vlgmr.msra.gmra.mxu1 %v9418_v2 }
 0x27d   : > { %3183 = vmatpush2.bf16.msra.mxu0 %v8412_v39  ;;  %3521 = vmatpush1.bf16.msra.mxu1 %v8415_v40  ;;  %v8494_v39 = vld [vmem:[#allocation7 + $0x1a0] ss:$12 sps:$4 sm:$0xff]   ;;  %v8497_v40 = vld [vmem:[#allocation7 + $0x244] ss:$12 sps:$4 sm:$0xff]  }
 0x27e   : > { %3552 = vmatprep.mubr.bf16.mxu1 %v9416_v63  ;;  %3184 = vmatprep.subr.bf16.mxu0 %v8420_v42  ;;  %v8498_v42 = vld [vmem:[#allocation7 + $0x248] ss:$12 sps:$4 sm:$0xff]  }
 0x27f   : > { %3522 = vmatprep.subr.bf16.mxu1 %v8423_v44  ;;  %v8495_v44 = vld [vmem:[#allocation7 + $0x240] ss:$12 sps:$4 sm:$0xff]  }
 0x281   : > { %3185 = vmatpush2.bf16.msra.mxu0 %v8418_v45  ;;  %3523 = vmatpush1.bf16.msra.mxu1 %v8421_v46  ;;  %v8499_v45 = vld [vmem:[#allocation7 + $0x188] ss:$12 sps:$4 sm:$0xff]  }
 0x282   : > { %3186 = vmatprep.subr.bf16.mxu0 %v8426_v48  ;;  %3524 = vmatprep.subr.bf16.mxu1 %v8429_v50  ;;  %v8500_v46 = vld [vmem:[#allocation9 + $0xa8] ss:$12 sps:$4 sm:$0xff]   ;;  %v8502_v48 = vld [vmem:[#allocation9 + $0xac] ss:$12 sps:$4 sm:$0xff]  }
 0x283   : > { %v8505_v50 = vld [vmem:[#allocation9 + $0x94] ss:$12 sps:$4 sm:$0xff]  }
 0x285   : > { %3187 = vmatpush2.bf16.msra.mxu0 %v8424_v52  ;;  %3525 = vmatpush1.bf16.msra.mxu1 %v8427_v53  ;;  %v8503_v52 = vld [vmem:[#allocation9 + $0x90] ss:$12 sps:$4 sm:$0xff]  }
 0x286   : > { %3188 = vmatprep.subr.bf16.mxu0 %v8432_v54  ;;  %3526 = vmatprep.subr.bf16.mxu1 %v8435_v25  ;;  %v8508_v53 = vld [vmem:[#allocation9 + $0x7c] ss:$12 sps:$4 sm:$0xff]   ;;  %v8506_v54 = vld [vmem:[#allocation9 + $0x78] ss:$12 sps:$4 sm:$0xff]  }
 0x287   : > { %v8511_v25 = vld [vmem:[#allocation9 + $0x64] ss:$12 sps:$4 sm:$0xff]  }
 0x289   : > { %3189 = vmatpush2.bf16.msra.mxu0 %v8430_v55  ;;  %3527 = vmatpush1.bf16.msra.mxu1 %v8433_v56  ;;  %v8509_v55 = vld [vmem:[#allocation9 + $0x60] ss:$12 sps:$4 sm:$0xff]  }
 0x28a   : > { %3190 = vmatprep.subr.bf16.mxu0 %v8438_v57  ;;  %3528 = vmatprep.subr.bf16.mxu1 %v8441_v27  ;;  %v8514_v56 = vld [vmem:[#allocation9 + $0x4c] ss:$12 sps:$4 sm:$0xff]   ;;  %v8517_v57 = vld [vmem:[#allocation9 + $0x34] ss:$12 sps:$4 sm:$0xff]   ;;  %v8515_v27 = vld [vmem:[#allocation9 + $0x30] ss:$12 sps:$4 sm:$0xff]  }
 0x28d   : > { %3191 = vmatpush2.bf16.msra.mxu0 %v8436_v58  ;;  %3529 = vmatpush1.bf16.msra.mxu1 %v8439_v59  ;;  %v8520_v58 = vld [vmem:[#allocation9 + $0x1c] ss:$12 sps:$4 sm:$0xff]   ;;  %v8518_v59 = vld [vmem:[#allocation9 + $0x18] ss:$12 sps:$4 sm:$0xff]  }
 0x28e   : > { %3192 = vmatprep.subr.bf16.mxu0 %v8444_v60  ;;  %3530 = vmatprep.subr.bf16.mxu1 %v8447_v61  ;;  %v8523_v60 = vld [vmem:[#allocation9 + $0x4] ss:$12 sps:$4 sm:$0xff]   ;;  %v8521_v61 = vld [vmem:[#allocation9] ss:$12 sps:$4 sm:$0xff]  }
 0x291   : > { %3193 = vmatpush2.bf16.msra.mxu0 %v8442_v62  ;;  %3531 = vmatpush1.bf16.msra.mxu1 %v8445_v41  ;;  %v8527_v62 = vld [vmem:[#allocation9 + $0x228] ss:$12 sps:$4 sm:$0xff]   ;;  %v8529_v41 = vld [vmem:[#allocation9 + $0x22c] ss:$12 sps:$4 sm:$0xff]  }
 0x292   : > { %3194 = vmatprep.subr.bf16.mxu0 %v8450_v6  ;;  %3532 = vmatprep.subr.bf16.mxu1 %v8453_v7  ;;  %v8526_v6 = vld [vmem:[#allocation9 + $0x16c] ss:$12 sps:$4 sm:$0xff]   ;;  %v8535_v7 = vld [vmem:[#allocation9 + $0x214] ss:$12 sps:$4 sm:$0xff]  }
 0x295   : > { %3195 = vmatpush2.bf16.msra.mxu0 %v8448_v0  ;;  %3533 = vmatpush1.bf16.msra.mxu1 %v8451_v1  ;;  %v8533_v0 = vld [vmem:[#allocation9 + $0x210] ss:$12 sps:$4 sm:$0xff]   ;;  %v8524_v1 = vld [vmem:[#allocation9 + $0x168] ss:$12 sps:$4 sm:$0xff]  }
 0x296   : > { %3196 = vmatprep.subr.bf16.mxu0 %v8456_v3  ;;  %3534 = vmatprep.subr.bf16.mxu1 %v8459_v47  ;;  %v8541_v3 = vld [vmem:[#allocation9 + $0x1fc] ss:$12 sps:$4 sm:$0xff]   ;;  %v8532_v47 = vld [vmem:[#allocation9 + $0x154] ss:$12 sps:$4 sm:$0xff]  }
 0x299   : > { %3197 = vmatpush2.bf16.msra.mxu0 %v8454_v51  ;;  %3535 = vmatpush1.bf16.msra.mxu1 %v8457_v4  ;;  %v8539_v51 = vld [vmem:[#allocation9 + $0x1f8] ss:$12 sps:$4 sm:$0xff]   ;;  %v8530_v4 = vld [vmem:[#allocation9 + $0x150] ss:$12 sps:$4 sm:$0xff]  }
 0x29a   : > { %3536 = vmatprep.subr.bf16.mxu1 %v8462_v5  ;;  %7474 = vmatprep.subr.bf16.mxu0 %v8463_v8  ;;  %v8547_v5 = vld [vmem:[#allocation9 + $0x1e4] ss:$12 sps:$4 sm:$0xff]   ;;  %v8538_v8 = vld [vmem:[#allocation9 + $0x13c] ss:$12 sps:$4 sm:$0xff]  }
 0x29c   : > { %3199 = vmatmul.mubr.bf16.vlgmr.msra.gmra.mxu0 %v9418_v2 }
 0x29d   : > { %3537 = vmatpush2.bf16.msra.mxu1 %v8460_v9  ;;  %7475 = vmatpush3.bf16.msra.mxu0 %v8464_v10  ;;  %v8545_v9 = vld [vmem:[#allocation9 + $0x1e0] ss:$12 sps:$4 sm:$0xff]   ;;  %v8536_v10 = vld [vmem:[#allocation9 + $0x138] ss:$12 sps:$4 sm:$0xff]  }
 0x29e   : > { %3593 = vmatprep.mubr.bf16.mxu0 %v9416_v63  ;;  %3538 = vmatprep.subr.bf16.mxu1 %v8467_v11  ;;  %v8483_v63 = vld [vmem:[#allocation7 + $0x290] ss:$12 sps:$4 sm:$0xff]   ;;  %v8553_v11 = vld [vmem:[#allocation9 + $0x1cc] ss:$12 sps:$4 sm:$0xff]  }
 0x29f   : > { %7476 = vmatprep.subr.bf16.mxu0 %v8468_v12  ;;  %v8544_v12 = vld [vmem:[#allocation9 + $0x124] ss:$12 sps:$4 sm:$0xff]  }
 0x2a1   : > { %3539 = vmatpush2.bf16.msra.mxu1 %v8465_v13  ;;  %7477 = vmatpush3.bf16.msra.mxu0 %v8469_v14  ;;  %v8551_v13 = vld [vmem:[#allocation9 + $0x1c8] ss:$12 sps:$4 sm:$0xff]   ;;  %v8542_v14 = vld [vmem:[#allocation9 + $0x120] ss:$12 sps:$4 sm:$0xff]  }
 0x2a2   : > { %3540 = vmatprep.subr.bf16.mxu1 %v8472_v15  ;;  %7478 = vmatprep.subr.bf16.mxu0 %v8473_v17  ;;  %v8550_v15 = vld [vmem:[#allocation9 + $0x10c] ss:$12 sps:$4 sm:$0xff]   ;;  %v8548_v17 = vld [vmem:[#allocation9 + $0x108] ss:$12 sps:$4 sm:$0xff]  }
 0x2a5   : > { %3541 = vmatpush2.bf16.msra.mxu1 %v8470_v18  ;;  %7479 = vmatpush3.bf16.msra.mxu0 %v8474_v19  ;;  %v8556_v18 = vld [vmem:[#allocation9 + $0xf4] ss:$12 sps:$4 sm:$0xff]   ;;  %v8554_v19 = vld [vmem:[#allocation9 + $0xf0] ss:$12 sps:$4 sm:$0xff]  }
 0x2a6   : > { %3542 = vmatprep.subr.bf16.mxu1 %v8477_v20  ;;  %7480 = vmatprep.subr.bf16.mxu0 %v8478_v21  ;;  %v8559_v20 = vld [vmem:[#allocation9 + $0x1b4] ss:$12 sps:$4 sm:$0xff]   ;;  %v8557_v21 = vld [vmem:[#allocation9 + $0x1b0] ss:$12 sps:$4 sm:$0xff]  }
 0x2a9   : > { %3543 = vmatpush2.bf16.msra.mxu1 %v8475_v22  ;;  %7481 = vmatpush3.bf16.msra.mxu0 %v8479_v23  ;;  %v8562_v22 = vld [vmem:[#allocation9 + $0xdc] ss:$12 sps:$4 sm:$0xff]   ;;  %v8560_v23 = vld [vmem:[#allocation9 + $0xd8] ss:$12 sps:$4 sm:$0xff]  }
 0x2aa   : > { %3544 = vmatprep.subr.bf16.mxu1 %v8482_v24  ;;  %7482 = vmatprep.subr.bf16.mxu0 %v8483_v63  ;;  %v8565_v24 = vld [vmem:[#allocation9 + $0x19c] ss:$12 sps:$4 sm:$0xff]   ;;  %v8563_v63 = vld [vmem:[#allocation9 + $0x198] ss:$12 sps:$4 sm:$0xff]  }
 0x2ad   : > { %3545 = vmatpush2.bf16.msra.mxu1 %v8480_v26  ;;  %7483 = vmatpush3.bf16.msra.mxu0 %v8484_v28  ;;  %v8568_v26 = vld [vmem:[#allocation9 + $0xc4] ss:$12 sps:$4 sm:$0xff]   ;;  %v8566_v28 = vld [vmem:[#allocation9 + $0xc0] ss:$12 sps:$4 sm:$0xff]  }
 0x2ae   : > { %3546 = vmatprep.subr.bf16.mxu1 %v8487_v29  ;;  %7484 = vmatprep.subr.bf16.mxu0 %v8488_v30  ;;  %v8571_v29 = vld [vmem:[#allocation9 + $0x184] ss:$12 sps:$4 sm:$0xff]   ;;  %v8569_v30 = vld [vmem:[#allocation9 + $0x180] ss:$12 sps:$4 sm:$0xff]  }
 0x2b1   : > { %3547 = vmatpush2.bf16.msra.mxu1 %v8485_v31  ;;  %7485 = vmatpush3.bf16.msra.mxu0 %v8489_v34  ;;  %v8572_v31 = vld [vmem:[#allocation9 + $0x170] ss:$12 sps:$4 sm:$0xff]   ;;  %v9115_v34 = vmov 0.0  }
 0x2b2   : > { %3548 = vmatprep.subr.bf16.mxu1 %v8492_v36  ;;  %7486 = vmatprep.subr.bf16.mxu0 %v8493_v37 }
 0x2b5   : > { %3549 = vmatpush2.bf16.msra.mxu1 %v8490_v38  ;;  %7487 = vmatpush3.bf16.msra.mxu0 %v8494_v39 }
 0x2b6   : > { %3550 = vmatprep.subr.bf16.mxu1 %v8497_v40  ;;  %7488 = vmatprep.subr.bf16.mxu0 %v8498_v42 }
 0x2b9   : > { %3551 = vmatpush2.bf16.msra.mxu1 %v8495_v44  ;;  %7489 = vmatpush3.bf16.msra.mxu0 %v8499_v45 }
 0x2ba   : > { %4219 = vmatprep.subr.bf16.mxu0 %v8502_v48  ;;  %4260 = vmatprep.subr.bf16.mxu1 %v8529_v41 }
 0x2bc   : > { %3553 = vmatmul.mubr.bf16.vlgmr.msra.gmra.mxu1 %v9418_v2  ;;  %3594 = vmatmul.mubr.bf16.vlgmr.msra.gmra.mxu0 %v9418_v2  ;;  %v8512_v2 = vld [vmem:[#allocation9 + $0x48] ss:$12 sps:$4 sm:$0xff]  }
 0x2bd   : > { %4292 = vmatprep.mubr.bf16.mxu1 %v9114_v16  ;;  %4220 = vmatpush1.bf16.msra.mxu0 %v8500_v46 }
 0x2be   : > { %4221 = vmatprep.subr.bf16.mxu0 %v8505_v50  ;;  %4261 = vmatpush1.bf16.msra.mxu1 %v8527_v62 }
 0x2bf   : > { %4262 = vmatprep.subr.bf16.mxu1 %v8535_v7 }
 0x2c1   : > { %4222 = vmatpush1.bf16.msra.mxu0 %v8503_v52 }
 0x2c2   : > { %4223 = vmatprep.subr.bf16.mxu0 %v8508_v53  ;;  %4263 = vmatpush1.bf16.msra.mxu1 %v8533_v0 }
 0x2c3   : > { %4264 = vmatprep.subr.bf16.mxu1 %v8541_v3 }
 0x2c5   : > { %4224 = vmatpush1.bf16.msra.mxu0 %v8506_v54 }
 0x2c6   : > { %4225 = vmatprep.subr.bf16.mxu0 %v8511_v25  ;;  %4265 = vmatpush1.bf16.msra.mxu1 %v8539_v51 }
 0x2c7   : > { %4266 = vmatprep.subr.bf16.mxu1 %v8547_v5 }
 0x2c9   : > { %4226 = vmatpush1.bf16.msra.mxu0 %v8509_v55 }
 0x2ca   : > { %4227 = vmatprep.subr.bf16.mxu0 %v8514_v56  ;;  %4267 = vmatpush1.bf16.msra.mxu1 %v8545_v9 }
 0x2cb   : > { %4268 = vmatprep.subr.bf16.mxu1 %v8553_v11 }
 0x2cd   : > { %4228 = vmatpush1.bf16.msra.mxu0 %v8512_v2 }
 0x2ce   : > { %4229 = vmatprep.subr.bf16.mxu0 %v8517_v57  ;;  %4269 = vmatpush1.bf16.msra.mxu1 %v8551_v13  ;;  %v3247_v57 = vld [vmem:[%s9622_s4] sm:$0x7] }
 0x2cf   : > { %4270 = vmatprep.subr.bf16.mxu1 %v8559_v20 }
 0x2d1   : > { %4230 = vmatpush1.bf16.msra.mxu0 %v8515_v27  ;;  %v3252_v27 = vrot.slane %v3247_v57, %v9390_v33 }
 0x2d2   : > { %4231 = vmatprep.subr.bf16.mxu0 %v8520_v58  ;;  %4271 = vmatpush1.bf16.msra.mxu1 %v8557_v21  ;;  %v3259_v58 = vsub.s32 2, %v9387_v32 }
 0x2d3   : > { %4272 = vmatprep.subr.bf16.mxu1 %v8565_v24 }
 0x2d4   : > { %v3260_v0 = vrot.slane %v3247_v57, %v3259_v58 }
 0x2d5   : > { %4232 = vmatpush1.bf16.msra.mxu0 %v8518_v59 }
 0x2d6   : > { %4233 = vmatprep.subr.bf16.mxu0 %v8523_v60  ;;  %4273 = vmatpush1.bf16.msra.mxu1 %v8563_v63  ;;  %v3256_v60 = vrot.slane %v3247_v57, %v9393_v35  ;;  %v8589_v57 = vld [vmem:[#allocation9 + $0x38] ss:$12 sps:$4 sm:$0xff]  }
 0x2d7   : > { %4274 = vmatprep.subr.bf16.mxu1 %v8571_v29 }
 0x2d9   : > { %4234 = vmatpush1.bf16.msra.mxu0 %v8521_v61 }
 0x2da   : > { %4235 = vmatprep.subr.bf16.mxu0 %v8526_v6  ;;  %4275 = vmatpush1.bf16.msra.mxu1 %v8569_v30 }
 0x2db   : > { %7496 = vmatprep.subr.bf16.mxu1 %v8572_v31 }
 0x2dd   : > { %4236 = vmatpush2.bf16.msra.mxu0 %v8524_v1 }
 0x2de   : > { %4237 = vmatprep.subr.bf16.mxu0 %v8532_v47 }
 0x2e1   : > { %4238 = vmatpush2.bf16.msra.mxu0 %v8530_v4 }
 0x2e2   : > { %4239 = vmatprep.subr.bf16.mxu0 %v8538_v8 }
 0x2e5   : > { %4240 = vmatpush2.bf16.msra.mxu0 %v8536_v10 }
 0x2e6   : > { %4241 = vmatprep.subr.bf16.mxu0 %v8544_v12 }
 0x2e9   : > { %4242 = vmatpush2.bf16.msra.mxu0 %v8542_v14 }
 0x2ea   : > { %4243 = vmatprep.subr.bf16.mxu0 %v8550_v15 }
 0x2ed   : > { %4244 = vmatpush2.bf16.msra.mxu0 %v8548_v17 }
 0x2ee   : > { %4245 = vmatprep.subr.bf16.mxu0 %v8556_v18 }
 0x2f1   : > { %4246 = vmatpush2.bf16.msra.mxu0 %v8554_v19 }
 0x2f2   : > { %4247 = vmatprep.subr.bf16.mxu0 %v8562_v22 }
 0x2f5   : > { %4248 = vmatpush2.bf16.msra.mxu0 %v8560_v23 }
 0x2f6   : > { %4249 = vmatprep.subr.bf16.mxu0 %v8568_v26 }
 0x2f9   : > { %4250 = vmatpush2.bf16.msra.mxu0 %v8566_v28 }
 0x2fa   : > { %7691 = vmatprep.subr.bf16.mxu0 %v9115_v34 }
 0x31c   : > { %v2799_v36 = vpop.f32.mrf.mxu1  ;;  %v7446_v37 = vpop.f32.mrf.mxu0 }
 0x31d   : > { %v3604_v59 = vrot.slane %v2799_v36, 7  ;;  %v8573_v36 = vld [vmem:[#allocation9 + $0x230] ss:$12 sps:$4 sm:$0xff]  }
 0x31e   : > { %v2801_v38 = vpop.f32.mrf.mxu1  ;;  %v7447_v39 = vpop.f32.mrf.mxu0 }
 0x31f   : > { %v7448_v40 = vadd.f32 %v7447_v39, %v7446_v37  ;;  %v3605_v61 = vrot.slane %v2801_v38, 7  ;;  %v3613_v1 = vsel %vm9399_vm0, %v3604_v59, 0.0  ;;  %v8574_v38 = vld [vmem:[#allocation9 + $0xb0] ss:$12 sps:$4 sm:$0xff]   ;;  %v8591_v59 = vld [vmem:[#allocation9 + $0x1a0] ss:$12 sps:$4 sm:$0xff]  }
 0x320   : > { %v2803_v42 = vpop.f32.mrf.mxu1  ;;  %v7449_v44 = vpop.f32.mrf.mxu0 }
 0x321   : > { %v3606_v3 = vrot.slane %v7448_v40, 7  ;;  %v3614_v10 = vsel %vm9399_vm0, %v3605_v61, 0.0  ;;  %v8575_v40 = vld [vmem:[#allocation9 + $0x158] ss:$12 sps:$4 sm:$0xff]   ;;  %v8593_v61 = vld [vmem:[#allocation9 + $0xc8] ss:$12 sps:$4 sm:$0xff]  }
 0x322   : > { %v2804_v45 = vpop.f32.mrf.mxu1  ;;  %v7450_v46 = vpop.f32.mrf.mxu0  ;;  %v8576_v42 = vld [vmem:[#allocation9 + $0x218] ss:$12 sps:$4 sm:$0xff]  }
 0x323   : > { %v3615_v19 = vsel %vm9399_vm0, %v3606_v3, 0.0  ;;  %v8577_v44 = vld [vmem:[#allocation9 + $0x98] ss:$12 sps:$4 sm:$0xff]   ;;  %v8578_v45 = vld [vmem:[#allocation9 + $0x140] ss:$12 sps:$4 sm:$0xff]  }
 0x324   : > { %v8579_v46 = vld [vmem:[#allocation9 + $0x200] ss:$12 sps:$4 sm:$0xff]  }
 0x325   : > { %v8604_v3 = vld [vmem:[#allocation9 + $0x694] ss:$12 sps:$4 sm:$0xff]  }
 0x33c   : > { %v7468_v48 = vpop.f32.mrf.mxu1 }
 0x33e   : > { %v7469_v50 = vpop.f32.mrf.mxu1 }
 0x33f   : > { %v7470_v52 = vadd.f32 %v7469_v50, %v7468_v48  ;;  %v8580_v48 = vld [vmem:[#allocation9 + $0x80] ss:$12 sps:$4 sm:$0xff]   ;;  %v8581_v50 = vld [vmem:[#allocation9 + $0x128] ss:$12 sps:$4 sm:$0xff]  }
 0x340   : > { %v7471_v53 = vpop.f32.mrf.mxu1 }
 0x341   : > { %v3624_v11 = vrot.slane %v7470_v52, 1  ;;  %v8582_v52 = vld [vmem:[#allocation9 + $0x1e8] ss:$12 sps:$4 sm:$0xff]  }
 0x342   : > { %v7472_v54 = vpop.f32.mrf.mxu1  ;;  %v8583_v53 = vld [vmem:[#allocation9 + $0x68] ss:$12 sps:$4 sm:$0xff]  }
 0x343   : > { %v3633_v63 = vsel %vm9404_vm1, %v3624_v11, 0.0  ;;  %v8584_v54 = vld [vmem:[#allocation9 + $0x110] ss:$12 sps:$4 sm:$0xff]  }
 0x344   : > { %v8616_v11 = vld [vmem:[#allocation9 + $0x664] ss:$12 sps:$4 sm:$0xff]  }
 0x35c   : > { %v3200_v25 = vpop.f32.mrf.mxu0 }
 0x35d   : > { %v3622_v62 = vrot.slane %v3200_v25, 1  ;;  %v8585_v25 = vld [vmem:[#allocation9 + $0x1d0] ss:$12 sps:$4 sm:$0xff]  }
 0x35e   : > { %v3202_v55 = vpop.f32.mrf.mxu0 }
 0x35f   : > { %v3623_v47 = vrot.slane %v3202_v55, 1  ;;  %v3631_v12 = vsel %vm9404_vm1, %v3622_v62, 0.0  ;;  %v8586_v55 = vld [vmem:[#allocation9 + $0x50] ss:$12 sps:$4 sm:$0xff]   ;;  %v8594_v62 = vld [vmem:[#allocation9 + $0x188] ss:$12 sps:$4 sm:$0xff]  }
 0x360   : > { %v3204_v56 = vpop.f32.mrf.mxu0 }
 0x361   : > { %v3632_v20 = vsel %vm9404_vm1, %v3623_v47, 0.0  ;;  %v8587_v56 = vld [vmem:[#allocation9 + $0xf8] ss:$12 sps:$4 sm:$0xff]   ;;  %v8607_v47 = vld [vmem:[#allocation9 + $0x514] ss:$12 sps:$4 sm:$0xff]  }
 0x362   : > { %v3205_v2 = vpop.f32.mrf.mxu0 }
 0x363   : > { %v8588_v2 = vld [vmem:[#allocation9 + $0x1b8] ss:$12 sps:$4 sm:$0xff]  }
 0x37c   : > { %v3554_v41 = vpop.f32.mrf.mxu1  ;;  %v7490_v6 = vpop.f32.mrf.mxu0 }
 0x37d   : > { %v3555_v7 = vadd.f32 %v3554_v41, %v3252_v27  ;;  %v8590_v27 = vld [vmem:[#allocation9 + $0xe0] ss:$12 sps:$4 sm:$0xff]   ;;  %v8595_v41 = vld [vmem:[#allocation9 + $0x8] ss:$12 sps:$4 sm:$0xff]  }
 0x37e   : > { %v3556_v51 = vpop.f32.mrf.mxu1  ;;  %v7491_v4 = vpop.f32.mrf.mxu0 }
 0x37f   : > { %v3616_v5 = vadd.f32 %v3613_v1, %v3555_v7  ;;  %v3557_v8 = vadd.f32 %v3556_v51, %v3256_v60  ;;  %v7492_v9 = vadd.f32 %v7491_v4, %v7490_v6  ;;  %v8592_v60 = vld [vmem:[#allocation9 + $0x20] ss:$12 sps:$4 sm:$0xff]   ;;  %v8599_v1 = vld [vmem:[#allocation9 + $0x528] ss:$12 sps:$4 sm:$0xff]   ;;  %v8602_v51 = vld [vmem:[#allocation9 + $0x690] ss:$12 sps:$4 sm:$0xff]  }
 0x380   : > { %v3558_v13 = vpop.f32.mrf.mxu1  ;;  %v7493_v14 = vpop.f32.mrf.mxu0  ;;  %v8598_v6 = vld [vmem:[#allocation9 + $0x6ac] ss:$12 sps:$4 sm:$0xff]   ;;  %v8605_v4 = vld [vmem:[#allocation9 + $0x510] ss:$12 sps:$4 sm:$0xff]  }
 0x381   : > { %v3634_v15 = vadd.f32 %v3631_v12, %v3616_v5  ;;  %v3617_v17 = vadd.f32 %v3614_v10, %v3557_v8  ;;  %v3596_v18 = vadd.f32 %v7492_v9, %v3260_v0  ;;  %v8601_v7 = vld [vmem:[#allocation9 + $0x52c] ss:$12 sps:$4 sm:$0xff]   ;;  %v8596_v0 = vld [vmem:[#allocation9 + $0x6a8] ss:$12 sps:$4 sm:$0xff]   ;;  %v8619_v12 = vld [vmem:[#allocation9 + $0x4e4] ss:$12 sps:$4 sm:$0xff]  }
 0x382   : > { %v3559_v21 = vpop.f32.mrf.mxu1  ;;  %v7494_v22 = vpop.f32.mrf.mxu0  ;;  %v8610_v5 = vld [vmem:[#allocation9 + $0x67c] ss:$12 sps:$4 sm:$0xff]   ;;  %v8608_v9 = vld [vmem:[#allocation9 + $0x678] ss:$12 sps:$4 sm:$0xff]   ;;  %v8614_v13 = vld [vmem:[#allocation9 + $0x660] ss:$12 sps:$4 sm:$0xff]  }
 0x383   : > { %v3635_v23 = vadd.f32 %v3632_v20, %v3617_v17  ;;  %v3618_v24 = vadd.f32 %v3615_v19, %v3596_v18  ;;  %v3637_v26 = vmax.f32 %v3634_v15, 0.0  ;;  %v8613_v8 = vld [vmem:[#allocation9 + $0x4fc] ss:$12 sps:$4 sm:$0xff]   ;;  %v8611_v10 = vld [vmem:[#allocation9 + $0x4f8] ss:$12 sps:$4 sm:$0xff]  }
 0x384   : > { %v8617_v14 = vld [vmem:[#allocation9 + $0x4e0] ss:$12 sps:$4 sm:$0xff]   ;;  %v8620_v18 = vld [vmem:[#allocation9 + $0x648] ss:$12 sps:$4 sm:$0xff]   ;;  %v8626_v22 = vld [vmem:[#allocation9 + $0x630] ss:$12 sps:$4 sm:$0xff]  }
 0x385   : > { %v3638_v28 = vmax.f32 %v3635_v23, 0.0  ;;  %v3636_v29 = vadd.f32 %v3633_v63, %v3618_v24  ;;  %v9456_v37 = vpack.c.bf16 %v3637_v26, %v3637_v26  ;;  %v8622_v15 = vld [vmem:[#allocation9 + $0x64c] ss:$12 sps:$4 sm:$0xff]   ;;  %v8623_v19 = vld [vmem:[#allocation9 + $0x4c8] ss:$12 sps:$4 sm:$0xff]  }
 0x386   : > { %v8625_v17 = vld [vmem:[#allocation9 + $0x4cc] ss:$12 sps:$4 sm:$0xff]   ;;  %v8628_v20 = vld [vmem:[#allocation9 + $0x634] ss:$12 sps:$4 sm:$0xff]   ;;  %v8629_v23 = vld [vmem:[#allocation9 + $0x4b0] ss:$12 sps:$4 sm:$0xff]  }
 0x387   : > { %v9454_v30 = vpack.c.bf16 %v3638_v28, %v3638_v28  ;;  %v3639_v31 = vmax.f32 %v3636_v29, 0.0  ;;  %v8631_v21 = vld [vmem:[#allocation9 + $0x4b4] ss:$12 sps:$4 sm:$0xff]   ;;  %v8634_v24 = vld [vmem:[#allocation9 + $0x61c] ss:$12 sps:$4 sm:$0xff]  }
 0x388   : > { %v8637_v63 = vld [vmem:[#allocation9 + $0x49c] ss:$12 sps:$4 sm:$0xff]   ;;  %v8632_v26 = vld [vmem:[#allocation9 + $0x618] ss:$12 sps:$4 sm:$0xff]  }
 0x389   : > { %v9458_v39 = vpack.c.bf16 %v3639_v31, %v3639_v31  ;;  %4251 = vmatprep.mubr.bf16.mxu0 %v9454_v30  ;;  %v8635_v28 = vld [vmem:[#allocation9 + $0x498] ss:$12 sps:$4 sm:$0xff]  }
 0x38a   : > { %4252 = vmatmul.mubr.bf16.vlgmr.msra.gmra.mxu0 %v9456_v37  ;;  %v8640_v29 = vld [vmem:[#allocation9 + $0x604] ss:$12 sps:$4 sm:$0xff]  }
 0x38b   : > { %7692 = vmatpush3.bf16.msra.mxu0 %v8573_v36  ;;  %4293 = vmatmul.mubr.bf16.vlgmr.msra.gmra.mxu1 %v9458_v39  ;;  %v8643_v31 = vld [vmem:[#allocation9 + $0x484] ss:$12 sps:$4 sm:$0xff]   ;;  %v8638_v36 = vld [vmem:[#allocation9 + $0x600] ss:$12 sps:$4 sm:$0xff]  }
 0x38c   : > { %7497 = vmatpush3.bf16.msra.mxu1 %v8574_v38  ;;  %4333 = vmatprep.mubr.bf16.mxu1 %v9454_v30  ;;  %v8641_v38 = vld [vmem:[#allocation9 + $0x480] ss:$12 sps:$4 sm:$0xff]  }
 0x38d   : > { %7693 = vmatprep.subr.bf16.mxu0 %v9115_v34  ;;  %7498 = vmatprep.subr.bf16.mxu1 %v8575_v40  ;;  %v8644_v40 = vld [vmem:[#allocation9 + $0x5f0] ss:$12 sps:$4 sm:$0xff]  }
 0x38e   : > { %7707 = vmatprep.mubr.msk.bf16.mxu0 %vm9116_vm2, %v9115_v34 }
 0x38f   : > { %7694 = vmatpush3.bf16.msra.mxu0 %v8576_v42  ;;  %v8647_v42 = vld [vmem:[#allocation9 + $0x5ec] ss:$12 sps:$4 sm:$0xff]  }
 0x390   : > { %7499 = vmatpush3.bf16.msra.mxu1 %v8577_v44  ;;  %7695 = vmatprep.subr.bf16.mxu0 %v9115_v34  ;;  %v8648_v44 = vld [vmem:[#allocation9 + $0x530] ss:$12 sps:$4 sm:$0xff]  }
 0x391   : > { %7500 = vmatprep.subr.bf16.mxu1 %v8578_v45  ;;  %v8645_v45 = vld [vmem:[#allocation9 + $0x5e8] ss:$12 sps:$4 sm:$0xff]  }
 0x393   : > { %7696 = vmatpush3.bf16.msra.mxu0 %v8579_v46  ;;  %v8649_v46 = vld [vmem:[#allocation9 + $0x5d8] ss:$12 sps:$4 sm:$0xff]  }
 0x394   : > { %7501 = vmatpush3.bf16.msra.mxu1 %v8580_v48  ;;  %7697 = vmatprep.subr.bf16.mxu0 %v9115_v34  ;;  %v8652_v48 = vld [vmem:[#allocation9 + $0x5d4] ss:$12 sps:$4 sm:$0xff]  }
 0x395   : > { %7502 = vmatprep.subr.bf16.mxu1 %v8581_v50  ;;  %v8653_v50 = vld [vmem:[#allocation9 + $0x518] ss:$12 sps:$4 sm:$0xff]  }
 0x397   : > { %7698 = vmatpush3.bf16.msra.mxu0 %v8582_v52  ;;  %v8650_v52 = vld [vmem:[#allocation9 + $0x5d0] ss:$12 sps:$4 sm:$0xff]  }
 0x398   : > { %7503 = vmatpush3.bf16.msra.mxu1 %v8583_v53  ;;  %7699 = vmatprep.subr.bf16.mxu0 %v9115_v34  ;;  %v8654_v53 = vld [vmem:[#allocation9 + $0x5c0] ss:$12 sps:$4 sm:$0xff]  }
 0x399   : > { %7504 = vmatprep.subr.bf16.mxu1 %v8584_v54  ;;  %v8657_v54 = vld [vmem:[#allocation9 + $0x5bc] ss:$12 sps:$4 sm:$0xff]  }
 0x39b   : > { %7700 = vmatpush3.bf16.msra.mxu0 %v8585_v25  ;;  %v8658_v25 = vld [vmem:[#allocation9 + $0x500] ss:$12 sps:$4 sm:$0xff]  }
 0x39c   : > { %7505 = vmatpush3.bf16.msra.mxu1 %v8586_v55  ;;  %7701 = vmatprep.subr.bf16.mxu0 %v9115_v34  ;;  %v8655_v55 = vld [vmem:[#allocation9 + $0x5b8] ss:$12 sps:$4 sm:$0xff]  }
 0x39d   : > { %7506 = vmatprep.subr.bf16.mxu1 %v8587_v56  ;;  %v8659_v56 = vld [vmem:[#allocation9 + $0x5a8] ss:$12 sps:$4 sm:$0xff]  }
 0x39f   : > { %7702 = vmatpush3.bf16.msra.mxu0 %v8588_v2  ;;  %v8662_v2 = vld [vmem:[#allocation9 + $0x5a4] ss:$12 sps:$4 sm:$0xff]  }
 0x3a0   : > { %7507 = vmatpush3.bf16.msra.mxu1 %v8589_v57  ;;  %7703 = vmatprep.subr.bf16.mxu0 %v9115_v34  ;;  %v8663_v57 = vld [vmem:[#allocation9 + $0x4e8] ss:$12 sps:$4 sm:$0xff]  }
 0x3a1   : > { %7508 = vmatprep.subr.bf16.mxu1 %v8590_v27  ;;  %v8660_v27 = vld [vmem:[#allocation9 + $0x5a0] ss:$12 sps:$4 sm:$0xff]  }
 0x3a3   : > { %7704 = vmatpush3.bf16.msra.mxu0 %v8591_v59  ;;  %v8664_v59 = vld [vmem:[#allocation9 + $0x590] ss:$12 sps:$4 sm:$0xff]  }
 0x3a4   : > { %7509 = vmatpush3.bf16.msra.mxu1 %v8592_v60  ;;  %7705 = vmatprep.subr.bf16.mxu0 %v9115_v34  ;;  %v8667_v60 = vld [vmem:[#allocation9 + $0x58c] ss:$12 sps:$4 sm:$0xff]  }
 0x3a5   : > { %7510 = vmatprep.subr.bf16.mxu1 %v8593_v61  ;;  %v8668_v61 = vld [vmem:[#allocation9 + $0x4d0] ss:$12 sps:$4 sm:$0xff]  }
 0x3a7   : > { %7706 = vmatpush3.bf16.msra.mxu0 %v8594_v62  ;;  %v8665_v62 = vld [vmem:[#allocation9 + $0x588] ss:$12 sps:$4 sm:$0xff]  }
 0x3a8   : > { %7511 = vmatpush3.bf16.msra.mxu1 %v8595_v41  ;;  %4902 = vmatprep.subr.bf16.mxu0 %v8598_v6  ;;  %v8669_v41 = vld [vmem:[#allocation9 + $0x578] ss:$12 sps:$4 sm:$0xff]   ;;  %v8672_v6 = vld [vmem:[#allocation9 + $0x574] ss:$12 sps:$4 sm:$0xff]  }
 0x3a9   : > { %4861 = vmatprep.subr.bf16.mxu1 %v8601_v7  ;;  %v8673_v7 = vld [vmem:[#allocation9 + $0x4b8] ss:$12 sps:$4 sm:$0xff]  }
 0x3aa   : > { %7708 = vmatmul.mubr.bf16.vlgmr.msra.gmra.mxu0 %v9458_v39 }
 0x3ab   : > { %4334 = vmatmul.mubr.bf16.vlgmr.msra.gmra.mxu1 %v9456_v37  ;;  %4903 = vmatpush1.bf16.msra.mxu0 %v8596_v0  ;;  %v8670_v0 = vld [vmem:[#allocation9 + $0x570] ss:$12 sps:$4 sm:$0xff]  }
 0x3ac   : > { %4862 = vmatpush1.bf16.msra.mxu1 %v8599_v1  ;;  %4893 = vmatprep.mubr.bf16.mxu1 %v9454_v30  ;;  %v8674_v1 = vld [vmem:[#allocation9 + $0x560] ss:$12 sps:$4 sm:$0xff]  }
 0x3ad   : > { %4904 = vmatprep.subr.bf16.mxu0 %v8604_v3  ;;  %4863 = vmatprep.subr.bf16.mxu1 %v8607_v47  ;;  %v8677_v3 = vld [vmem:[#allocation9 + $0x55c] ss:$12 sps:$4 sm:$0xff]   ;;  %v8678_v47 = vld [vmem:[#allocation9 + $0x4a0] ss:$12 sps:$4 sm:$0xff]  }
 0x3ae   : > { %4934 = vmatprep.mubr.bf16.mxu0 %v9114_v16 }
 0x3af   : > { %4905 = vmatpush1.bf16.msra.mxu0 %v8602_v51  ;;  %v8675_v51 = vld [vmem:[#allocation9 + $0x558] ss:$12 sps:$4 sm:$0xff]  }
 0x3b0   : > { %4864 = vmatpush1.bf16.msra.mxu1 %v8605_v4  ;;  %4906 = vmatprep.subr.bf16.mxu0 %v8610_v5  ;;  %v8679_v4 = vld [vmem:[#allocation9 + $0x548] ss:$12 sps:$4 sm:$0xff]   ;;  %v8682_v5 = vld [vmem:[#allocation9 + $0x544] ss:$12 sps:$4 sm:$0xff]  }
 0x3b1   : > { %4865 = vmatprep.subr.bf16.mxu1 %v8613_v8  ;;  %v8683_v8 = vld [vmem:[#allocation9 + $0x488] ss:$12 sps:$4 sm:$0xff]  }
 0x3b3   : > { %4907 = vmatpush1.bf16.msra.mxu0 %v8608_v9  ;;  %v8680_v9 = vld [vmem:[#allocation9 + $0x540] ss:$12 sps:$4 sm:$0xff]  }
 0x3b4   : > { %4866 = vmatpush1.bf16.msra.mxu1 %v8611_v10  ;;  %4908 = vmatprep.subr.bf16.mxu0 %v8616_v11  ;;  %v8686_v10 = vld [vmem:[#allocation9 + $0x2ec] ss:$12 sps:$4 sm:$0xff]   ;;  %v8684_v11 = vld [vmem:[#allocation9 + $0x2e8] ss:$12 sps:$4 sm:$0xff]  }
 0x3b5   : > { %4867 = vmatprep.subr.bf16.mxu1 %v8619_v12  ;;  %v8687_v12 = vld [vmem:[#allocation9 + $0x6b0] ss:$12 sps:$4 sm:$0xff]  }
 0x3b7   : > { %4909 = vmatpush1.bf16.msra.mxu0 %v8614_v13  ;;  %v8690_v13 = vld [vmem:[#allocation9 + $0x2d4] ss:$12 sps:$4 sm:$0xff]  }
 0x3b8   : > { %4868 = vmatpush1.bf16.msra.mxu1 %v8617_v14  ;;  %4910 = vmatprep.subr.bf16.mxu0 %v8622_v15  ;;  %v8688_v14 = vld [vmem:[#allocation9 + $0x2d0] ss:$12 sps:$4 sm:$0xff]   ;;  %v8691_v15 = vld [vmem:[#allocation9 + $0x698] ss:$12 sps:$4 sm:$0xff]  }
 0x3b9   : > { %4869 = vmatprep.subr.bf16.mxu1 %v8625_v17  ;;  %v8694_v17 = vld [vmem:[#allocation9 + $0x2bc] ss:$12 sps:$4 sm:$0xff]  }
 0x3bb   : > { %4911 = vmatpush1.bf16.msra.mxu0 %v8620_v18  ;;  %v8692_v18 = vld [vmem:[#allocation9 + $0x2b8] ss:$12 sps:$4 sm:$0xff]  }
 0x3bc   : > { %4870 = vmatpush1.bf16.msra.mxu1 %v8623_v19  ;;  %4912 = vmatprep.subr.bf16.mxu0 %v8628_v20  ;;  %v8695_v19 = vld [vmem:[#allocation9 + $0x680] ss:$12 sps:$4 sm:$0xff]   ;;  %v8698_v20 = vld [vmem:[#allocation9 + $0x2a4] ss:$12 sps:$4 sm:$0xff]  }
 0x3bd   : > { %4871 = vmatprep.subr.bf16.mxu1 %v8631_v21  ;;  %v8696_v21 = vld [vmem:[#allocation9 + $0x2a0] ss:$12 sps:$4 sm:$0xff]  }
 0x3bf   : > { %4913 = vmatpush1.bf16.msra.mxu0 %v8626_v22  ;;  %v8699_v22 = vld [vmem:[#allocation9 + $0x668] ss:$12 sps:$4 sm:$0xff]  }
 0x3c0   : > { %4872 = vmatpush1.bf16.msra.mxu1 %v8629_v23  ;;  %4914 = vmatprep.subr.bf16.mxu0 %v8634_v24  ;;  %v8702_v23 = vld [vmem:[#allocation9 + $0x28c] ss:$12 sps:$4 sm:$0xff]   ;;  %v8700_v24 = vld [vmem:[#allocation9 + $0x288] ss:$12 sps:$4 sm:$0xff]  }
 0x3c1   : > { %4873 = vmatprep.subr.bf16.mxu1 %v8637_v63  ;;  %v8703_v63 = vld [vmem:[#allocation9 + $0x650] ss:$12 sps:$4 sm:$0xff]  }
 0x3c3   : > { %4915 = vmatpush1.bf16.msra.mxu0 %v8632_v26  ;;  %v8706_v26 = vld [vmem:[#allocation9 + $0x274] ss:$12 sps:$4 sm:$0xff]  }
 0x3c4   : > { %4874 = vmatpush1.bf16.msra.mxu1 %v8635_v28  ;;  %4916 = vmatprep.subr.bf16.mxu0 %v8640_v29  ;;  %v8704_v28 = vld [vmem:[#allocation9 + $0x270] ss:$12 sps:$4 sm:$0xff]   ;;  %v8707_v29 = vld [vmem:[#allocation9 + $0x638] ss:$12 sps:$4 sm:$0xff]  }
 0x3c5   : > { %4875 = vmatprep.subr.bf16.mxu1 %v8643_v31  ;;  %v8710_v31 = vld [vmem:[#allocation9 + $0x25c] ss:$12 sps:$4 sm:$0xff]  }
 0x3c7   : > { %4917 = vmatpush1.bf16.msra.mxu0 %v8638_v36  ;;  %v8708_v36 = vld [vmem:[#allocation9 + $0x258] ss:$12 sps:$4 sm:$0xff]  }
 0x3c8   : > { %4876 = vmatpush1.bf16.msra.mxu1 %v8641_v38  ;;  %7527 = vmatprep.subr.bf16.mxu0 %v8644_v40  ;;  %v8711_v38 = vld [vmem:[#allocation9 + $0x620] ss:$12 sps:$4 sm:$0xff]   ;;  %v8714_v40 = vld [vmem:[#allocation9 + $0x244] ss:$12 sps:$4 sm:$0xff]  }
 0x3c9   : > { %4877 = vmatprep.subr.bf16.mxu1 %v8647_v42  ;;  %v8712_v42 = vld [vmem:[#allocation9 + $0x240] ss:$12 sps:$4 sm:$0xff]  }
 0x3ca   : > { %4935 = vmatmul.mubr.bf16.vlgmr.msra.gmra.mxu0 %v9458_v39 }
 0x3cb   : > { %7528 = vmatpush3.bf16.msra.mxu0 %v8648_v44  ;;  %4975 = vmatprep.mubr.bf16.mxu0 %v9454_v30  ;;  %v8715_v44 = vld [vmem:[#allocation9 + $0x608] ss:$12 sps:$4 sm:$0xff]  }
 0x3cc   : > { %4878 = vmatpush2.bf16.msra.mxu1 %v8645_v45  ;;  %7529 = vmatprep.subr.bf16.mxu0 %v8649_v46  ;;  %v8718_v45 = vld [vmem:[#allocation9 + $0x3ac] ss:$12 sps:$4 sm:$0xff]  }
 0x3cd   : > { %4879 = vmatprep.subr.bf16.mxu1 %v8652_v48  ;;  %v8721_v46 = vld [vmem:[#allocation9 + $0x46c] ss:$12 sps:$4 sm:$0xff]   ;;  %v8716_v48 = vld [vmem:[#allocation9 + $0x3a8] ss:$12 sps:$4 sm:$0xff]  }
 0x3cf   : > { %7530 = vmatpush3.bf16.msra.mxu0 %v8653_v50  ;;  %v8719_v50 = vld [vmem:[#allocation9 + $0x468] ss:$12 sps:$4 sm:$0xff]  }
 0x3d0   : > { %4880 = vmatpush2.bf16.msra.mxu1 %v8650_v52  ;;  %7531 = vmatprep.subr.bf16.mxu0 %v8654_v53  ;;  %v8724_v52 = vld [vmem:[#allocation9 + $0x394] ss:$12 sps:$4 sm:$0xff]  }
 0x3d1   : > { %4881 = vmatprep.subr.bf16.mxu1 %v8657_v54  ;;  %v8727_v53 = vld [vmem:[#allocation9 + $0x454] ss:$12 sps:$4 sm:$0xff]   ;;  %v8722_v54 = vld [vmem:[#allocation9 + $0x390] ss:$12 sps:$4 sm:$0xff]  }
 0x3d3   : > { %7532 = vmatpush3.bf16.msra.mxu0 %v8658_v25  ;;  %v8725_v25 = vld [vmem:[#allocation9 + $0x450] ss:$12 sps:$4 sm:$0xff]  }
 0x3d4   : > { %4882 = vmatpush2.bf16.msra.mxu1 %v8655_v55  ;;  %7533 = vmatprep.subr.bf16.mxu0 %v8659_v56  ;;  %v8730_v55 = vld [vmem:[#allocation9 + $0x37c] ss:$12 sps:$4 sm:$0xff]  }
 0x3d5   : > { %4883 = vmatprep.subr.bf16.mxu1 %v8662_v2  ;;  %v8733_v56 = vld [vmem:[#allocation9 + $0x43c] ss:$12 sps:$4 sm:$0xff]   ;;  %v8728_v2 = vld [vmem:[#allocation9 + $0x378] ss:$12 sps:$4 sm:$0xff]  }
 0x3d7   : > { %7534 = vmatpush3.bf16.msra.mxu0 %v8663_v57  ;;  %v8731_v57 = vld [vmem:[#allocation9 + $0x438] ss:$12 sps:$4 sm:$0xff]  }
 0x3d8   : > { %4884 = vmatpush2.bf16.msra.mxu1 %v8660_v27  ;;  %7535 = vmatprep.subr.bf16.mxu0 %v8664_v59  ;;  %v8736_v27 = vld [vmem:[#allocation9 + $0x364] ss:$12 sps:$4 sm:$0xff]  }
 0x3d9   : > { %4885 = vmatprep.subr.bf16.mxu1 %v8667_v60  ;;  %v8739_v59 = vld [vmem:[#allocation9 + $0x424] ss:$12 sps:$4 sm:$0xff]   ;;  %v8734_v60 = vld [vmem:[#allocation9 + $0x360] ss:$12 sps:$4 sm:$0xff]  }
 0x3db   : > { %7536 = vmatpush3.bf16.msra.mxu0 %v8668_v61  ;;  %v8737_v61 = vld [vmem:[#allocation9 + $0x420] ss:$12 sps:$4 sm:$0xff]  }
 0x3dc   : > { %4886 = vmatpush2.bf16.msra.mxu1 %v8665_v62  ;;  %7537 = vmatprep.subr.bf16.mxu0 %v8669_v41  ;;  %v8742_v62 = vld [vmem:[#allocation9 + $0x34c] ss:$12 sps:$4 sm:$0xff]  }
 0x3dd   : > { %4887 = vmatprep.subr.bf16.mxu1 %v8672_v6  ;;  %v8745_v41 = vld [vmem:[#allocation9 + $0x40c] ss:$12 sps:$4 sm:$0xff]   ;;  %v8740_v6 = vld [vmem:[#allocation9 + $0x348] ss:$12 sps:$4 sm:$0xff]  }
 0x3df   : > { %7538 = vmatpush3.bf16.msra.mxu0 %v8673_v7  ;;  %v8748_v7 = vld [vmem:[#allocation9 + $0x334] ss:$12 sps:$4 sm:$0xff]  }
 0x3e0   : > { %4888 = vmatpush2.bf16.msra.mxu1 %v8670_v0  ;;  %7539 = vmatprep.subr.bf16.mxu0 %v8674_v1  ;;  %v8751_v0 = vld [vmem:[#allocation9 + $0x3f4] ss:$12 sps:$4 sm:$0xff]   ;;  %v8746_v1 = vld [vmem:[#allocation9 + $0x330] ss:$12 sps:$4 sm:$0xff]  }
 0x3e1   : > { %4889 = vmatprep.subr.bf16.mxu1 %v8677_v3  ;;  %v8749_v3 = vld [vmem:[#allocation9 + $0x3f0] ss:$12 sps:$4 sm:$0xff]  }
 0x3e3   : > { %7540 = vmatpush3.bf16.msra.mxu0 %v8678_v47  ;;  %v8754_v47 = vld [vmem:[#allocation9 + $0x31c] ss:$12 sps:$4 sm:$0xff]  }
 0x3e4   : > { %4890 = vmatpush2.bf16.msra.mxu1 %v8675_v51  ;;  %7541 = vmatprep.subr.bf16.mxu0 %v8679_v4  ;;  %v8757_v51 = vld [vmem:[#allocation9 + $0x3dc] ss:$12 sps:$4 sm:$0xff]   ;;  %v8752_v4 = vld [vmem:[#allocation9 + $0x318] ss:$12 sps:$4 sm:$0xff]  }
 0x3e5   : > { %4891 = vmatprep.subr.bf16.mxu1 %v8682_v5  ;;  %v8755_v5 = vld [vmem:[#allocation9 + $0x3d8] ss:$12 sps:$4 sm:$0xff]  }
 0x3e7   : > { %7542 = vmatpush3.bf16.msra.mxu0 %v8683_v8  ;;  %v8760_v8 = vld [vmem:[#allocation9 + $0x304] ss:$12 sps:$4 sm:$0xff]  }
 0x3e8   : > { %4892 = vmatpush2.bf16.msra.mxu1 %v8680_v9  ;;  %5424 = vmatprep.subr.bf16.mxu0 %v8686_v10  ;;  %v8763_v9 = vld [vmem:[#allocation9 + $0x3c4] ss:$12 sps:$4 sm:$0xff]   ;;  %v8758_v10 = vld [vmem:[#allocation9 + $0x300] ss:$12 sps:$4 sm:$0xff]  }
 0x3e9   : > { %7711 = vmatprep.subr.bf16.mxu1 %v9115_v34 }
 0x3ea   : > { %4976 = vmatmul.mubr.bf16.vlgmr.msra.gmra.mxu0 %v9456_v37 }
 0x3eb   : > { %4894 = vmatmul.mubr.bf16.vlgmr.msra.gmra.mxu1 %v9456_v37  ;;  %5425 = vmatpush1.bf16.msra.mxu0 %v8684_v11  ;;  %v8761_v11 = vld [vmem:[#allocation9 + $0x3c0] ss:$12 sps:$4 sm:$0xff]  }
 0x3ec   : > { %5456 = vmatprep.mubr.bf16.mxu0 %v9454_v30  ;;  %7712 = vmatpush3.bf16.msra.mxu1 %v8687_v12  ;;  %v8764_v12 = vld [vmem:[#allocation9 + $0x3b0] ss:$12 sps:$4 sm:$0xff]  }
 0x3ed   : > { %5426 = vmatprep.subr.bf16.mxu0 %v8690_v13  ;;  %7713 = vmatprep.subr.bf16.mxu1 %v9115_v34  ;;  %v8765_v13 = vld [vmem:[#allocation9 + $0x470] ss:$12 sps:$4 sm:$0xff]  }
 0x3ee   : > { %7727 = vmatprep.mubr.msk.bf16.mxu1 %vm9116_vm2, %v9115_v34 }
 0x3ef   : > { %5427 = vmatpush1.bf16.msra.mxu0 %v8688_v14  ;;  %v8766_v14 = vld [vmem:[#allocation9 + $0x2f0] ss:$12 sps:$4 sm:$0xff]  }
 0x3f0   : > { %7714 = vmatpush3.bf16.msra.mxu1 %v8691_v15  ;;  %5428 = vmatprep.subr.bf16.mxu0 %v8694_v17  ;;  %v8767_v15 = vld [vmem:[#allocation9 + $0x398] ss:$12 sps:$4 sm:$0xff]  }
 0x3f1   : > { %7715 = vmatprep.subr.bf16.mxu1 %v9115_v34  ;;  %v8768_v17 = vld [vmem:[#allocation9 + $0x458] ss:$12 sps:$4 sm:$0xff]  }
 0x3f3   : > { %5429 = vmatpush1.bf16.msra.mxu0 %v8692_v18  ;;  %v8769_v18 = vld [vmem:[#allocation9 + $0x2d8] ss:$12 sps:$4 sm:$0xff]  }
 0x3f4   : > { %7716 = vmatpush3.bf16.msra.mxu1 %v8695_v19  ;;  %5430 = vmatprep.subr.bf16.mxu0 %v8698_v20  ;;  %v8770_v19 = vld [vmem:[#allocation9 + $0x380] ss:$12 sps:$4 sm:$0xff]  }
 0x3f5   : > { %7717 = vmatprep.subr.bf16.mxu1 %v9115_v34  ;;  %v8771_v20 = vld [vmem:[#allocation9 + $0x440] ss:$12 sps:$4 sm:$0xff]  }
 0x3f7   : > { %5431 = vmatpush1.bf16.msra.mxu0 %v8696_v21  ;;  %v8772_v21 = vld [vmem:[#allocation9 + $0x2c0] ss:$12 sps:$4 sm:$0xff]  }
 0x3f8   : > { %7718 = vmatpush3.bf16.msra.mxu1 %v8699_v22  ;;  %5432 = vmatprep.subr.bf16.mxu0 %v8702_v23  ;;  %v8773_v22 = vld [vmem:[#allocation9 + $0x368] ss:$12 sps:$4 sm:$0xff]  }
 0x3f9   : > { %7719 = vmatprep.subr.bf16.mxu1 %v9115_v34  ;;  %v8774_v23 = vld [vmem:[#allocation9 + $0x428] ss:$12 sps:$4 sm:$0xff]  }
 0x3fb   : > { %5433 = vmatpush1.bf16.msra.mxu0 %v8700_v24  ;;  %v8776_v24 = vld [vmem:[#allocation9 + $0x350] ss:$12 sps:$4 sm:$0xff]  }
 0x3fc   : > { %7720 = vmatpush3.bf16.msra.mxu1 %v8703_v63  ;;  %5434 = vmatprep.subr.bf16.mxu0 %v8706_v26  ;;  %v8777_v63 = vld [vmem:[#allocation9 + $0x410] ss:$12 sps:$4 sm:$0xff]  }
 0x3fd   : > { %7721 = vmatprep.subr.bf16.mxu1 %v9115_v34  ;;  %v8778_v26 = vld [vmem:[#allocation9 + $0x290] ss:$12 sps:$4 sm:$0xff]  }
 0x3ff   : > { %5435 = vmatpush1.bf16.msra.mxu0 %v8704_v28  ;;  %v8779_v28 = vld [vmem:[#allocation9 + $0x338] ss:$12 sps:$4 sm:$0xff]  }
 0x400   : > { %7722 = vmatpush3.bf16.msra.mxu1 %v8707_v29  ;;  %5436 = vmatprep.subr.bf16.mxu0 %v8710_v31  ;;  %v8780_v29 = vld [vmem:[#allocation9 + $0x3f8] ss:$12 sps:$4 sm:$0xff]  }
 0x401   : > { %7723 = vmatprep.subr.bf16.mxu1 %v9115_v34  ;;  %v8781_v31 = vld [vmem:[#allocation9 + $0x278] ss:$12 sps:$4 sm:$0xff]  }
 0x403   : > { %5437 = vmatpush1.bf16.msra.mxu0 %v8708_v36  ;;  %v8782_v36 = vld [vmem:[#allocation9 + $0x320] ss:$12 sps:$4 sm:$0xff]  }
 0x404   : > { %7724 = vmatpush3.bf16.msra.mxu1 %v8711_v38  ;;  %5438 = vmatprep.subr.bf16.mxu0 %v8714_v40  ;;  %v8783_v38 = vld [vmem:[#allocation9 + $0x3e0] ss:$12 sps:$4 sm:$0xff]  }
 0x405   : > { %7725 = vmatprep.subr.bf16.mxu1 %v9115_v34  ;;  %v8784_v40 = vld [vmem:[#allocation9 + $0x260] ss:$12 sps:$4 sm:$0xff]  }
 0x407   : > { %5439 = vmatpush1.bf16.msra.mxu0 %v8712_v42  ;;  %v8785_v42 = vld [vmem:[#allocation9 + $0x308] ss:$12 sps:$4 sm:$0xff]  }
 0x408   : > { %7726 = vmatpush3.bf16.msra.mxu1 %v8715_v44  ;;  %5440 = vmatprep.subr.bf16.mxu0 %v8718_v45  ;;  %v8786_v44 = vld [vmem:[#allocation9 + $0x3c8] ss:$12 sps:$4 sm:$0xff]  }
 0x409   : > { %5465 = vmatprep.subr.bf16.mxu1 %v8721_v46  ;;  %v8787_v45 = vld [vmem:[#allocation9 + $0x248] ss:$12 sps:$4 sm:$0xff]  }
 0x40b   : > { %7728 = vmatmul.mubr.bf16.vlgmr.msra.gmra.mxu1 %v9458_v39  ;;  %5441 = vmatpush2.bf16.msra.mxu0 %v8716_v48 }
 0x40c   : > { %5466 = vmatpush1.bf16.msra.mxu1 %v8719_v50  ;;  %5442 = vmatprep.subr.bf16.mxu0 %v8724_v52 }
 0x40d   : > { %5467 = vmatprep.subr.bf16.mxu1 %v8727_v53  ;;  %5497 = vmatprep.mubr.bf16.mxu1 %v9114_v16  ;;  %v8743_v16 = vld [vmem:[#allocation9 + $0x408] ss:$12 sps:$4 sm:$0xff]  }
 0x40f   : > { %5443 = vmatpush2.bf16.msra.mxu0 %v8722_v54 }
 0x410   : > { %5468 = vmatpush1.bf16.msra.mxu1 %v8725_v25  ;;  %5444 = vmatprep.subr.bf16.mxu0 %v8730_v55 }
 0x411   : > { %5469 = vmatprep.subr.bf16.mxu1 %v8733_v56 }
 0x413   : > { %5445 = vmatpush2.bf16.msra.mxu0 %v8728_v2 }
 0x414   : > { %5470 = vmatpush1.bf16.msra.mxu1 %v8731_v57  ;;  %5446 = vmatprep.subr.bf16.mxu0 %v8736_v27  ;;  %v8788_v57 = vld [vmem:[#allocation10 + $0x78] sm:$0xff]  }
 0x415   : > { %5471 = vmatprep.subr.bf16.mxu1 %v8739_v59  ;;  %v8789_v27 = vld [vmem:[#allocation10 + $0x38] sm:$0xff]   ;;  %v8792_v59 = vld [vmem:[#allocation10 + $0x68] sm:$0xff]  }
 0x417   : > { %5447 = vmatpush2.bf16.msra.mxu0 %v8734_v60  ;;  %v8793_v60 = vld [vmem:[#allocation10 + $0x28] sm:$0xff]  }
 0x418   : > { %5472 = vmatpush1.bf16.msra.mxu1 %v8737_v61  ;;  %5448 = vmatprep.subr.bf16.mxu0 %v8742_v62  ;;  %v8794_v61 = vld [vmem:[#allocation10 + $0x60] sm:$0xff]  }
 0x419   : > { %5473 = vmatprep.subr.bf16.mxu1 %v8745_v41  ;;  %v8795_v62 = vld [vmem:[#allocation10 + $0x20] sm:$0xff]   ;;  %v8796_v41 = vld [vmem:[#allocation10 + $0x58] sm:$0xff]  }
 0x41b   : > { %5449 = vmatpush2.bf16.msra.mxu0 %v8740_v6  ;;  %v8797_v6 = vld [vmem:[#allocation10 + $0x18] sm:$0xff]  }
 0x41c   : > { %5474 = vmatpush1.bf16.msra.mxu1 %v8743_v16  ;;  %5450 = vmatprep.subr.bf16.mxu0 %v8748_v7 }
 0x41d   : > { %5475 = vmatprep.subr.bf16.mxu1 %v8751_v0 }
 0x41f   : > { %5451 = vmatpush2.bf16.msra.mxu0 %v8746_v1  ;;  %v8798_v1 = vld [vmem:[#allocation10 + $0x50] sm:$0xff]  }
 0x420   : > { %5476 = vmatpush1.bf16.msra.mxu1 %v8749_v3  ;;  %5452 = vmatprep.subr.bf16.mxu0 %v8754_v47  ;;  %v8799_v47 = vld [vmem:[#allocation10 + $0x10] sm:$0xff]  }
 0x421   : > { %5477 = vmatprep.subr.bf16.mxu1 %v8757_v51 }
 0x423   : > { %5453 = vmatpush2.bf16.msra.mxu0 %v8752_v4 }
 0x424   : > { %5478 = vmatpush1.bf16.msra.mxu1 %v8755_v5  ;;  %5454 = vmatprep.subr.bf16.mxu0 %v8760_v8 }
 0x425   : > { %5479 = vmatprep.subr.bf16.mxu1 %v8763_v9 }
 0x427   : > { %5455 = vmatpush2.bf16.msra.mxu0 %v8758_v10  ;;  %v8800_v10 = vld [vmem:[#allocation10 + $0x48] sm:$0xff]  }
 0x428   : > { %5480 = vmatpush1.bf16.msra.mxu1 %v8761_v11  ;;  %7731 = vmatprep.subr.bf16.mxu0 %v9115_v34 }
 0x429   : > { %7558 = vmatprep.subr.bf16.mxu1 %v8764_v12  ;;  %v8801_v12 = vld [vmem:[#allocation10 + $0x8] sm:$0xff]  }
 0x42a   : > { %5457 = vmatmul.mubr.bf16.vlgmr.msra.gmra.mxu0 %v9456_v37 }
 0x42b   : > { %5498 = vmatmul.mubr.bf16.vlgmr.msra.gmra.mxu1 %v9458_v39  ;;  %7732 = vmatpush3.bf16.msra.mxu0 %v8765_v13  ;;  %v8802_v13 = vld [vmem:[#allocation10 + $0x40] sm:$0xff]  }
 0x42c   : > { %7559 = vmatpush3.bf16.msra.mxu1 %v8766_v14  ;;  %5538 = vmatprep.mubr.bf16.mxu1 %v9454_v30  ;;  %v8775_v30 = vld [vmem:[#allocation9 + $0x2a8] ss:$12 sps:$4 sm:$0xff]   ;;  %v8803_v14 = vld [vmem:[#allocation10] sm:$0xff]  }
 0x42d   : > { %7733 = vmatprep.subr.bf16.mxu0 %v9115_v34  ;;  %7560 = vmatprep.subr.bf16.mxu1 %v8767_v15  ;;  %v8804_v15 = vld [vmem:[#allocation10 + $0x1f8] sm:$0xff]  }
 0x42e   : > { %7747 = vmatprep.mubr.msk.bf16.mxu0 %vm9116_vm2, %v9115_v34 }
 0x42f   : > { %7734 = vmatpush3.bf16.msra.mxu0 %v8768_v17  ;;  %v8806_v17 = vld [vmem:[#allocation10 + $0xb8] sm:$0xff]  }
 0x430   : > { %7561 = vmatpush3.bf16.msra.mxu1 %v8769_v18  ;;  %7735 = vmatprep.subr.bf16.mxu0 %v9115_v34  ;;  %v8809_v18 = vld [vmem:[#allocation10 + $0xb0] sm:$0xff]  }
 0x431   : > { %7562 = vmatprep.subr.bf16.mxu1 %v8770_v19  ;;  %v8812_v19 = vld [vmem:[#allocation10 + $0xa8] sm:$0xff]  }
 0x433   : > { %7736 = vmatpush3.bf16.msra.mxu0 %v8771_v20  ;;  %v8815_v20 = vld [vmem:[#allocation10 + $0xa0] sm:$0xff]  }
 0x434   : > { %7563 = vmatpush3.bf16.msra.mxu1 %v8772_v21  ;;  %7737 = vmatprep.subr.bf16.mxu0 %v9115_v34 }
 0x435   : > { %7564 = vmatprep.subr.bf16.mxu1 %v8773_v22  ;;  %v8818_v22 = vld [vmem:[#allocation10 + $0x98] sm:$0xff]  }
 0x437   : > { %7738 = vmatpush3.bf16.msra.mxu0 %v8774_v23 }
 0x438   : > { %7565 = vmatpush3.bf16.msra.mxu1 %v8775_v30  ;;  %7739 = vmatprep.subr.bf16.mxu0 %v9115_v34 }
 0x439   : > { %7566 = vmatprep.subr.bf16.mxu1 %v8776_v24  ;;  %v8821_v24 = vld [vmem:[#allocation10 + $0x90] sm:$0xff]  }
 0x43b   : > { %7740 = vmatpush3.bf16.msra.mxu0 %v8777_v63 }
 0x43c   : > { %7567 = vmatpush3.bf16.msra.mxu1 %v8778_v26  ;;  %7741 = vmatprep.subr.bf16.mxu0 %v9115_v34  ;;  %v8824_v26 = vld [vmem:[#allocation10 + $0x88] sm:$0xff]  }
 0x43d   : > { %7568 = vmatprep.subr.bf16.mxu1 %v8779_v28  ;;  %v8827_v28 = vld [vmem:[#allocation10 + $0x80] sm:$0xff]  }
 0x43f   : > { %7742 = vmatpush3.bf16.msra.mxu0 %v8780_v29 }
 0x440   : > { %7569 = vmatpush3.bf16.msra.mxu1 %v8781_v31  ;;  %7743 = vmatprep.subr.bf16.mxu0 %v9115_v34 }
 0x441   : > { %7570 = vmatprep.subr.bf16.mxu1 %v8782_v36 }
 0x443   : > { %7744 = vmatpush3.bf16.msra.mxu0 %v8783_v38 }
 0x444   : > { %7571 = vmatpush3.bf16.msra.mxu1 %v8784_v40  ;;  %7745 = vmatprep.subr.bf16.mxu0 %v9115_v34 }
 0x445   : > { %7572 = vmatprep.subr.bf16.mxu1 %v8785_v42 }
 0x447   : > { %7746 = vmatpush3.bf16.msra.mxu0 %v8786_v44 }
 0x448   : > { %7573 = vmatpush3.bf16.msra.mxu1 %v8787_v45  ;;  %7751 = vmatprep.subr.bf16.mxu0 %v9115_v34 }
 0x449   : > { %7589 = vmatprep.subr.bf16.mxu1 %v8788_v57  ;;  %v5023_v57 = vld [vmem:[%s9624_s6] sm:$0x7] }
 0x44a   : > { %7748 = vmatmul.mubr.bf16.vlgmr.msra.gmra.mxu0 %v9458_v39  ;;  %v4253_v46 = vpop.f32.mrf.mxu0  ;;  %v8790_v39 = vld [vmem:[#allocation10 + $0x70] sm:$0xff]  }
 0x44b   : > { %5539 = vmatmul.mubr.bf16.vlgmr.msra.gmra.mxu1 %v9456_v37  ;;  %v4294_v48 = vpop.f32.mrf.mxu1  ;;  %7767 = vmatprep.mubr.msk.bf16.mxu0 %vm9116_vm2, %v9115_v34  ;;  %v8791_v37 = vld [vmem:[#allocation10 + $0x30] sm:$0xff]  }
 0x44c   : > { %v9512_v50 = vadd.f32 %v4294_v48, %v4253_v46  ;;  %v4255_v52 = vpop.f32.mrf.mxu0  ;;  %7590 = vmatpush3.bf16.msra.mxu1 %v8789_v27  ;;  %7752 = vmatpush3.bf16.msra.mxu0 %v8806_v17  ;;  %v5028_v27 = vrot.slane %v5023_v57, %v9390_v33  ;;  %v8805_v17 = vld [vmem:[#allocation10 + $0x1b8] sm:$0xff]  }
 0x44d   : > { %v4296_v53 = vpop.f32.mrf.mxu1  ;;  %7591 = vmatprep.subr.bf16.mxu1 %v8790_v39  ;;  %7753 = vmatprep.subr.bf16.mxu0 %v9115_v34  ;;  %v5032_v39 = vrot.slane %v5023_v57, %v9393_v35 }
 0x44e   : > { %v9514_v54 = vadd.f32 %v4296_v53, %v4255_v52  ;;  %v4257_v25 = vpop.f32.mrf.mxu0 }
 0x44f   : > { %v4298_v55 = vpop.f32.mrf.mxu1 }
 0x450   : > { %v4258_v56 = vpop.f32.mrf.mxu0  ;;  %7592 = vmatpush3.bf16.msra.mxu1 %v8791_v37  ;;  %7754 = vmatpush3.bf16.msra.mxu0 %v8809_v18  ;;  %v5589_v37 = vrot.slane %v9512_v50, 7 }
 0x451   : > { %v4299_v2 = vpop.f32.mrf.mxu1  ;;  %7593 = vmatprep.subr.bf16.mxu1 %v8792_v59  ;;  %7755 = vmatprep.subr.bf16.mxu0 %v9115_v34 }
 0x454   : > { %7594 = vmatpush3.bf16.msra.mxu1 %v8793_v60  ;;  %7756 = vmatpush3.bf16.msra.mxu0 %v8812_v19  ;;  %v8807_v19 = vld [vmem:[#allocation10 + $0x1f0] sm:$0xff]  }
 0x455   : > { %7595 = vmatprep.subr.bf16.mxu1 %v8794_v61  ;;  %7757 = vmatprep.subr.bf16.mxu0 %v9115_v34 }
 0x458   : > { %7596 = vmatpush3.bf16.msra.mxu1 %v8795_v62  ;;  %7758 = vmatpush3.bf16.msra.mxu0 %v8815_v20  ;;  %v5590_v62 = vrot.slane %v9514_v54, 7  ;;  %v8808_v20 = vld [vmem:[#allocation10 + $0x1b0] sm:$0xff]  }
 0x459   : > { %7597 = vmatprep.subr.bf16.mxu1 %v8796_v41  ;;  %7759 = vmatprep.subr.bf16.mxu0 %v9115_v34 }
 0x45a   : > { %v5599_v50 = vsel %vm9399_vm0, %v5590_v62, 0.0  ;;  %v8831_v62 = vld [vmem:[#allocation10 + $0x130] sm:$0xff]  }
 0x45c   : > { %7598 = vmatpush3.bf16.msra.mxu1 %v8797_v6  ;;  %7760 = vmatpush3.bf16.msra.mxu0 %v8818_v22  ;;  %v8811_v22 = vld [vmem:[#allocation10 + $0x1a8] sm:$0xff]  }
 0x45d   : > { %7599 = vmatprep.subr.bf16.mxu1 %v8798_v1  ;;  %7761 = vmatprep.subr.bf16.mxu0 %v9115_v34  ;;  %v5598_v1 = vsel %vm9399_vm0, %v5589_v37, 0.0  ;;  %v8828_v37 = vld [vmem:[#allocation10 + $0x138] sm:$0xff]  }
 0x460   : > { %7600 = vmatpush3.bf16.msra.mxu1 %v8799_v47  ;;  %7762 = vmatpush3.bf16.msra.mxu0 %v8821_v24  ;;  %v8816_v24 = vld [vmem:[#allocation10 + $0x1d8] sm:$0xff]  }
 0x461   : > { %7601 = vmatprep.subr.bf16.mxu1 %v8800_v10  ;;  %7763 = vmatprep.subr.bf16.mxu0 %v9115_v34 }
 0x464   : > { %7602 = vmatpush3.bf16.msra.mxu1 %v8801_v12  ;;  %7764 = vmatpush3.bf16.msra.mxu0 %v8824_v26  ;;  %v8819_v26 = vld [vmem:[#allocation10 + $0x1d0] sm:$0xff]  }
 0x465   : > { %7603 = vmatprep.subr.bf16.mxu1 %v8802_v13  ;;  %7765 = vmatprep.subr.bf16.mxu0 %v9115_v34 }
 0x468   : > { %7604 = vmatpush3.bf16.msra.mxu1 %v8803_v14  ;;  %7766 = vmatpush3.bf16.msra.mxu0 %v8827_v28 }
 0x469   : > { %7620 = vmatprep.subr.bf16.mxu1 %v8804_v15  ;;  %7771 = vmatprep.subr.bf16.mxu0 %v9115_v34 }
 0x46a   : > { %v4375_v16 = vpop.f32.mrf.mxu0 }
 0x46b   : > { %v7512_v7 = vpop.f32.mrf.mxu1 }
 0x46c   : > { %v7709_v0 = vpop.f32.mrf.mxu0 }
 0x46d   : > { %v7513_v3 = vpop.f32.mrf.mxu1 }
 0x46e   : > { %v7514_v51 = vadd.f32 %v7513_v3, %v7512_v7  ;;  %v4378_v4 = vpop.f32.mrf.mxu0 }
 0x46f   : > { %v7515_v5 = vpop.f32.mrf.mxu1 }
 0x470   : > { %v9516_v8 = vadd.f32 %v7514_v51, %v4375_v16  ;;  %v7710_v9 = vpop.f32.mrf.mxu0 }
 0x471   : > { %v7516_v11 = vpop.f32.mrf.mxu1 }
 0x48a   : > { %v4936_v21 = vpop.f32.mrf.mxu0 }
 0x48c   : > { %v4938_v23 = vpop.f32.mrf.mxu0 }
 0x48e   : > { %v4940_v30 = vpop.f32.mrf.mxu0 }
 0x48f   : > { %v8814_v30 = vld [vmem:[#allocation10 + $0x1a0] sm:$0xff]  }
 0x490   : > { %v4941_v63 = vpop.f32.mrf.mxu0 }
 0x491   : > { %v8817_v63 = vld [vmem:[#allocation10 + $0x198] sm:$0xff]  }
 0x4aa   : > { %v7543_v29 = vpop.f32.mrf.mxu0 }
 0x4ab   : > { %v4895_v31 = vpop.f32.mrf.mxu1 }
 0x4ac   : > { %v4937_v36 = vadd.f32 %v4936_v21, %v4895_v31  ;;  %v7544_v38 = vpop.f32.mrf.mxu0  ;;  %v8810_v21 = vld [vmem:[#allocation10 + $0x1e8] sm:$0xff]   ;;  %v8820_v31 = vld [vmem:[#allocation10 + $0x190] sm:$0xff]  }
 0x4ad   : > { %v7545_v40 = vadd.f32 %v7544_v38, %v7543_v29  ;;  %v4897_v42 = vpop.f32.mrf.mxu1  ;;  %v5036_v38 = vrot.slane %v5023_v57, %v3259_v58  ;;  %v8826_v58 = vld [vmem:[#allocation10 + $0x180] sm:$0xff]  }
 0x4ae   : > { %v4939_v44 = vadd.f32 %v4938_v23, %v4897_v42  ;;  %v7546_v45 = vpop.f32.mrf.mxu0  ;;  %v5607_v41 = vrot.slane %v4937_v36, 1  ;;  %v8813_v23 = vld [vmem:[#allocation10 + $0x1e0] sm:$0xff]  }
 0x4af   : > { %v4899_v46 = vpop.f32.mrf.mxu1 }
 0x4b0   : > { %v7547_v48 = vpop.f32.mrf.mxu0  ;;  %v5608_v3 = vrot.slane %v4939_v44, 1  ;;  %v5616_v4 = vsel %vm9404_vm1, %v5607_v41, 0.0  ;;  %v5591_v46 = vrot.slane %v9516_v8, 7 }
 0x4b1   : > { %v4900_v52 = vpop.f32.mrf.mxu1 }
 0x4b2   : > { %v5617_v11 = vsel %vm9404_vm1, %v5608_v3, 0.0  ;;  %v8823_v52 = vld [vmem:[#allocation10 + $0x188] sm:$0xff]   ;;  %v5600_v32 = vsel %vm9399_vm0, %v5591_v46, 0.0 }
 0x4b3   : > { %v8836_v3 = vld [vmem:[#allocation10 + $0x228] sm:$0xff]  }
 0x4cb   : > { %v5017_v53 = vpop.f32.mrf.mxu1 }
 0x4cc   : > { %v9526_v25 = vadd.f32 %v7545_v40, %v5017_v53  ;;  %v8822_v40 = vld [vmem:[#allocation10 + $0x1c8] sm:$0xff]  }
 0x4cd   : > { %v7729_v55 = vpop.f32.mrf.mxu1 }
 0x4cf   : > { %v5020_v56 = vpop.f32.mrf.mxu1 }
 0x4d0   : > { %v8825_v56 = vld [vmem:[#allocation10 + $0x1c0] sm:$0xff]  }
 0x4d1   : > { %v7730_v2 = vpop.f32.mrf.mxu1 }
 0x4d2   : > { %v5609_v2 = vrot.slane %v9526_v25, 1  ;;  %v8830_v25 = vld [vmem:[#allocation10 + $0x238] sm:$0xff]  }
 0x4d4   : > { %v5618_v8 = vsel %vm9404_vm1, %v5609_v2, 0.0 }
 0x4ea   : > { %v5458_v59 = vpop.f32.mrf.mxu0 }
 0x4eb   : > { %v5459_v60 = vadd.f32 %v5458_v59, %v5028_v27  ;;  %v5499_v61 = vpop.f32.mrf.mxu1 }
 0x4ec   : > { %v5460_v6 = vpop.f32.mrf.mxu0 }
 0x4ed   : > { %v5500_v16 = vadd.f32 %v5499_v61, %v5459_v60  ;;  %v5461_v7 = vadd.f32 %v5460_v6, %v5032_v39  ;;  %v5501_v0 = vpop.f32.mrf.mxu1  ;;  %v8829_v60 = vld [vmem:[#allocation10 + $0xf8] sm:$0xff]   ;;  %v8832_v6 = vld [vmem:[#allocation10 + $0xf0] sm:$0xff]  }
 0x4ee   : > { %v5462_v47 = vpop.f32.mrf.mxu0 }
 0x4ef   : > { %v5601_v33 = vadd.f32 %v5598_v1, %v5500_v16  ;;  %v5502_v51 = vadd.f32 %v5501_v0, %v5461_v7  ;;  %v5503_v35 = vpop.f32.mrf.mxu1  ;;  %v8834_v16 = vld [vmem:[#allocation10 + $0x128] sm:$0xff]   ;;  %v8833_v7 = vld [vmem:[#allocation10 + $0x230] sm:$0xff]   ;;  %v8837_v1 = vld [vmem:[#allocation10 + $0x120] sm:$0xff]  }
 0x4f0   : > { %v5463_v54 = vpop.f32.mrf.mxu0  ;;  %v8835_v0 = vld [vmem:[#allocation10 + $0xe8] sm:$0xff]   ;;  %v8838_v47 = vld [vmem:[#allocation10 + $0xe0] sm:$0xff]   ;;  %v8841_v35 = vld [vmem:[#allocation10 + $0xd8] sm:$0xff]  }
 0x4f1   : > { %v5619_v5 = vadd.f32 %v5616_v4, %v5601_v33  ;;  %v5602_v9 = vadd.f32 %v5599_v50, %v5502_v51  ;;  %v5504_v10 = vpop.f32.mrf.mxu1  ;;  %v8840_v33 = vld [vmem:[#allocation10 + $0x118] sm:$0xff]   ;;  %v8839_v51 = vld [vmem:[#allocation10 + $0x220] sm:$0xff]   ;;  %v8843_v50 = vld [vmem:[#allocation10 + $0x110] sm:$0xff]  }
 0x4f2   : > { %v8842_v4 = vld [vmem:[#allocation10 + $0x218] sm:$0xff]   ;;  %v8844_v54 = vld [vmem:[#allocation10 + $0xd0] sm:$0xff]   ;;  %v8847_v10 = vld [vmem:[#allocation10 + $0xc8] sm:$0xff]  }
 0x4f3   : > { %v5620_v12 = vadd.f32 %v5617_v11, %v5602_v9  ;;  %v5622_v13 = vmax.f32 %v5619_v5, 0.0  ;;  %v8846_v5 = vld [vmem:[#allocation10 + $0x108] sm:$0xff]   ;;  %v8845_v9 = vld [vmem:[#allocation10 + $0x210] sm:$0xff]   ;;  %v8849_v11 = vld [vmem:[#allocation10 + $0x100] sm:$0xff]  }
 0x4f5   : > { %v5623_v14 = vmax.f32 %v5620_v12, 0.0  ;;  %v9543_v18 = vpack.c.bf16 %v5622_v13, %v5622_v13  ;;  %v8848_v12 = vld [vmem:[#allocation10 + $0x208] sm:$0xff]   ;;  %v8850_v13 = vld [vmem:[#allocation10 + $0xc0] sm:$0xff]  }
 0x4f7   : > { %v5626_v15 = vpack.c.bf16 %v5623_v14, %v5623_v14  ;;  %v8851_v14 = vld [vmem:[#allocation10 + $0x200] sm:$0xff]  }
 0x4f9   : > { %5900 = vmatprep.mubr.bf16.mxu1 %v5626_v15 }
 0x4fa   : > { %5901 = vmatmul.mubr.bf16.vlgmr.msra.gmra.mxu1 %v9543_v18 }
 0x4fb   : > { %7621 = vmatpush3.bf16.msra.mxu1 %v8805_v17  ;;  %6172 = vmatprep.mubr.bf16.mxu1 %v5626_v15  ;;  %v8853_v17 = vld [vmem:[#allocation10 + $0x170] sm:$0xff]  }
 0x4fc   : > { %7622 = vmatprep.subr.bf16.mxu1 %v8807_v19  ;;  %v8854_v19 = vld [vmem:[#allocation10 + $0x168] sm:$0xff]  }
 0x4ff   : > { %7623 = vmatpush3.bf16.msra.mxu1 %v8808_v20  ;;  %v8856_v20 = vld [vmem:[#allocation10 + $0x158] sm:$0xff]  }
 0x500   : > { %7624 = vmatprep.subr.bf16.mxu1 %v8810_v21  ;;  %v8857_v21 = vld [vmem:[#allocation10 + $0x150] sm:$0xff]  }
 0x503   : > { %7625 = vmatpush3.bf16.msra.mxu1 %v8811_v22  ;;  %v8858_v22 = vld [vmem:[#allocation10 + $0x148] sm:$0xff]  }
 0x504   : > { %7626 = vmatprep.subr.bf16.mxu1 %v8813_v23  ;;  %v8859_v23 = vld [vmem:[#allocation10 + $0x140] sm:$0xff]  }
 0x507   : > { %7627 = vmatpush3.bf16.msra.mxu1 %v8814_v30  ;;  %v8860_v30 = vld [vmem:[#allocation12 + $0x38] sm:$0xff]  }
 0x508   : > { %7628 = vmatprep.subr.bf16.mxu1 %v8816_v24  ;;  %v8861_v24 = vld [vmem:[#allocation12 + $0x30] sm:$0xff]  }
 0x50a   : > { %v5580_v28 = vpop.f32.mrf.mxu0 }
 0x50b   : > { %7629 = vmatpush3.bf16.msra.mxu1 %v8817_v63  ;;  %v7574_v29 = vpop.f32.mrf.mxu1  ;;  %v8862_v63 = vld [vmem:[#allocation12 + $0x28] sm:$0xff]  }
 0x50c   : > { %v7749_v36 = vpop.f32.mrf.mxu0  ;;  %7630 = vmatprep.subr.bf16.mxu1 %v8819_v26  ;;  %v8863_v26 = vld [vmem:[#allocation12 + $0x20] sm:$0xff]  }
 0x50d   : > { %v7575_v42 = vpop.f32.mrf.mxu1  ;;  %v8867_v36 = vld [vmem:[#allocation12] sm:$0xff]  }
 0x50e   : > { %v7576_v44 = vadd.f32 %v7575_v42, %v7574_v29  ;;  %v5583_v45 = vpop.f32.mrf.mxu0  ;;  %v8865_v29 = vld [vmem:[#allocation12 + $0x10] sm:$0xff]  }
 0x50f   : > { %7631 = vmatpush3.bf16.msra.mxu1 %v8820_v31  ;;  %v7577_v48 = vpop.f32.mrf.mxu1  ;;  %v8866_v31 = vld [vmem:[#allocation12 + $0x8] sm:$0xff]  }
 0x510   : > { %v5541_v53 = vadd.f32 %v7576_v44, %v5036_v38  ;;  %v7750_v55 = vpop.f32.mrf.mxu0  ;;  %7632 = vmatprep.subr.bf16.mxu1 %v8822_v40 }
 0x511   : > { %v7578_v27 = vpop.f32.mrf.mxu1 }
 0x512   : > { %v5581_v39 = vadd.f32 %v5580_v28, %v5541_v53  ;;  %v8864_v28 = vld [vmem:[#allocation12 + $0x18] sm:$0xff]  }
 0x513   : > { %7633 = vmatpush3.bf16.msra.mxu1 %v8823_v52 }
 0x514   : > { %v5603_v57 = vadd.f32 %v5600_v32, %v5581_v39  ;;  %7634 = vmatprep.subr.bf16.mxu1 %v8825_v56 }
 0x516   : > { %v5621_v59 = vadd.f32 %v5618_v8, %v5603_v57 }
 0x517   : > { %7635 = vmatpush3.bf16.msra.mxu1 %v8826_v58 }
 0x518   : > { %7651 = vmatprep.subr.bf16.mxu1 %v8828_v37  ;;  %v5624_v61 = vmax.f32 %v5621_v59, 0.0 }
 0x51a   : > { %6173 = vmatmul.mubr.bf16.vlgmr.msra.gmra.mxu1 %v9543_v18  ;;  %v9555_v41 = vpack.c.bf16 %v5624_v61, %v5624_v61 }
 0x51b   : > { %7652 = vmatpush3.bf16.msra.mxu1 %v8829_v60  ;;  %6403 = vmatprep.mubr.bf16.mxu1 %v5626_v15  ;;  %v8852_v15 = vld [vmem:[#allocation10 + $0x178] sm:$0xff]  }
 0x51c   : > { %7768 = vmatmul.mubr.bf16.vlgmr.msra.gmra.mxu0 %v9555_v41  ;;  %7653 = vmatprep.subr.bf16.mxu1 %v8831_v62 }
 0x51d   : > { %7772 = vmatpush3.bf16.msra.mxu0 %v8830_v25  ;;  %7787 = vmatprep.mubr.msk.bf16.mxu0 %vm9116_vm2, %v9115_v34 }
 0x51e   : > { %7773 = vmatprep.subr.bf16.mxu0 %v9115_v34 }
 0x51f   : > { %7654 = vmatpush3.bf16.msra.mxu1 %v8832_v6 }
 0x520   : > { %7655 = vmatprep.subr.bf16.mxu1 %v8834_v16 }
 0x521   : > { %7774 = vmatpush3.bf16.msra.mxu0 %v8833_v7 }
 0x522   : > { %7775 = vmatprep.subr.bf16.mxu0 %v9115_v34 }
 0x523   : > { %7656 = vmatpush3.bf16.msra.mxu1 %v8835_v0 }
 0x524   : > { %7657 = vmatprep.subr.bf16.mxu1 %v8837_v1 }
 0x525   : > { %7776 = vmatpush3.bf16.msra.mxu0 %v8836_v3 }
 0x526   : > { %7777 = vmatprep.subr.bf16.mxu0 %v9115_v34 }
 0x527   : > { %7658 = vmatpush3.bf16.msra.mxu1 %v8838_v47 }
 0x528   : > { %7659 = vmatprep.subr.bf16.mxu1 %v8840_v33 }
 0x529   : > { %7778 = vmatpush3.bf16.msra.mxu0 %v8839_v51 }
 0x52a   : > { %7779 = vmatprep.subr.bf16.mxu0 %v9115_v34 }
 0x52b   : > { %7660 = vmatpush3.bf16.msra.mxu1 %v8841_v35 }
 0x52c   : > { %7661 = vmatprep.subr.bf16.mxu1 %v8843_v50 }
 0x52d   : > { %7780 = vmatpush3.bf16.msra.mxu0 %v8842_v4 }
 0x52e   : > { %7781 = vmatprep.subr.bf16.mxu0 %v9115_v34 }
 0x52f   : > { %7662 = vmatpush3.bf16.msra.mxu1 %v8844_v54 }
 0x530   : > { %7663 = vmatprep.subr.bf16.mxu1 %v8846_v5 }
 0x531   : > { %7782 = vmatpush3.bf16.msra.mxu0 %v8845_v9  ;;  %v7419_v9 = vld [vmem:[%s9628_s10] ss:$0 sm:$0xff] }
 0x532   : > { %7783 = vmatprep.subr.bf16.mxu0 %v9115_v34 }
 0x533   : > { %7664 = vmatpush3.bf16.msra.mxu1 %v8847_v10 }
 0x534   : > { %7665 = vmatprep.subr.bf16.mxu1 %v8849_v11 }
 0x535   : > { %7784 = vmatpush3.bf16.msra.mxu0 %v8848_v12 }
 0x536   : > { %7785 = vmatprep.subr.bf16.mxu0 %v9115_v34 }
 0x537   : > { %7666 = vmatpush3.bf16.msra.mxu1 %v8850_v13 }
 0x538   : > { %7811 = vmatprep.subr.bf16.mxu1 %v9115_v34 }
 0x539   : > { %7786 = vmatpush3.bf16.msra.mxu0 %v8851_v14 }
 0x53a   : > { %6404 = vmatmul.mubr.bf16.vlgmr.msra.gmra.mxu1 %v9543_v18  ;;  %7791 = vmatprep.subr.bf16.mxu0 %v9115_v34  ;;  %v8855_v18 = vld [vmem:[#allocation10 + $0x160] sm:$0xff]  }
 0x53b   : > { %7827 = vmatprep.mubr.msk.bf16.mxu1 %vm9116_vm2, %v9115_v34  ;;  %7812 = vmatpush3.bf16.msra.mxu1 %v8860_v30 }
 0x53c   : > { %7788 = vmatmul.mubr.bf16.vlgmr.msra.gmra.mxu0 %v9555_v41  ;;  %7813 = vmatprep.subr.bf16.mxu1 %v9115_v34 }
 0x53d   : > { %7792 = vmatpush3.bf16.msra.mxu0 %v8852_v15  ;;  %7807 = vmatprep.mubr.msk.bf16.mxu0 %vm9116_vm2, %v9115_v34 }
 0x53e   : > { %7793 = vmatprep.subr.bf16.mxu0 %v9115_v34 }
 0x53f   : > { %7814 = vmatpush3.bf16.msra.mxu1 %v8861_v24 }
 0x540   : > { %7815 = vmatprep.subr.bf16.mxu1 %v9115_v34 }
 0x541   : > { %7794 = vmatpush3.bf16.msra.mxu0 %v8853_v17 }
 0x542   : > { %7795 = vmatprep.subr.bf16.mxu0 %v9115_v34 }
 0x543   : > { %7816 = vmatpush3.bf16.msra.mxu1 %v8862_v63 }
 0x544   : > { %7817 = vmatprep.subr.bf16.mxu1 %v9115_v34 }
 0x545   : > { %7796 = vmatpush3.bf16.msra.mxu0 %v8854_v19 }
 0x546   : > { %7797 = vmatprep.subr.bf16.mxu0 %v9115_v34 }
 0x547   : > { %7818 = vmatpush3.bf16.msra.mxu1 %v8863_v26 }
 0x548   : > { %7819 = vmatprep.subr.bf16.mxu1 %v9115_v34 }
 0x549   : > { %7798 = vmatpush3.bf16.msra.mxu0 %v8855_v18 }
 0x54a   : > { %7799 = vmatprep.subr.bf16.mxu0 %v9115_v34 }
 0x54b   : > { %7820 = vmatpush3.bf16.msra.mxu1 %v8864_v28 }
 0x54c   : > { %7821 = vmatprep.subr.bf16.mxu1 %v9115_v34 }
 0x54d   : > { %7800 = vmatpush3.bf16.msra.mxu0 %v8856_v20 }
 0x54e   : > { %7801 = vmatprep.subr.bf16.mxu0 %v9115_v34 }
 0x54f   : > { %7822 = vmatpush3.bf16.msra.mxu1 %v8865_v29 }
 0x550   : > { %7823 = vmatprep.subr.bf16.mxu1 %v9115_v34 }
 0x551   : > { %7802 = vmatpush3.bf16.msra.mxu0 %v8857_v21 }
 0x552   : > { %7803 = vmatprep.subr.bf16.mxu0 %v9115_v34 }
 0x553   : > { %7824 = vmatpush3.bf16.msra.mxu1 %v8866_v31 }
 0x554   : > { %7825 = vmatprep.subr.bf16.mxu1 %v9115_v34 }
 0x555   : > { %7804 = vmatpush3.bf16.msra.mxu0 %v8858_v22 }
 0x556   : > { %7805 = vmatprep.subr.bf16.mxu0 %v9115_v34 }
 0x557   : > { %7826 = vmatpush3.bf16.msra.mxu1 %v8867_v36 }
 0x559   : > { %7806 = vmatpush3.bf16.msra.mxu0 %v8859_v23  ;;  %v6598_v23 = vld [vmem:[%s487_s29] sm:$0x7] }
 0x55c   : > { %7808 = vmatmul.mubr.bf16.vlgmr.msra.gmra.mxu0 %v9555_v41  ;;  %v7394_v41 = vld [vmem:[%s9626_s8] ss:$0 sm:$0xff] }
 0x5ba   : > { %v7605_v38 = vpop.f32.mrf.mxu1 }
 0x5bc   : > { %v7606_v40 = vpop.f32.mrf.mxu1 }
 0x5bd   : > { %v7607_v42 = vadd.f32 %v7606_v40, %v7605_v38 }
 0x5be   : > { %v7608_v44 = vpop.f32.mrf.mxu1 }
 0x5c0   : > { %v7609_v45 = vpop.f32.mrf.mxu1 }
 0x5da   : > { %v7636_v46 = vpop.f32.mrf.mxu1 }
 0x5dc   : > { %v7637_v48 = vpop.f32.mrf.mxu1  ;;  %v5942_v52 = vpop.f32.mrf.mxu0 }
 0x5dd   : > { %v7638_v60 = vadd.f32 %v7637_v48, %v7636_v46  ;;  %v5943_v61 = vadd.f32 %v7607_v42, %v5942_v52 }
 0x5de   : > { %v7639_v53 = vpop.f32.mrf.mxu1  ;;  %v7769_v55 = vpop.f32.mrf.mxu0 }
 0x5df   : > { %v6452_v6 = vrot.slane %v5943_v61, 7 }
 0x5e0   : > { %v7640_v56 = vpop.f32.mrf.mxu1  ;;  %v5945_v2 = vpop.f32.mrf.mxu0 }
 0x5e1   : > { %v6455_v3 = vsel %vm9399_vm0, %v6452_v6, 0.0 }
 0x5e2   : > { %v7770_v27 = vpop.f32.mrf.mxu0 }
 0x5fa   : > { %v7667_v39 = vpop.f32.mrf.mxu1 }
 0x5fc   : > { %v6214_v32 = vpop.f32.mrf.mxu0  ;;  %v7668_v58 = vpop.f32.mrf.mxu1 }
 0x5fd   : > { %v7669_v62 = vadd.f32 %v7668_v58, %v7667_v39  ;;  %v6215_v25 = vadd.f32 %v7638_v60, %v6214_v32 }
 0x5fe   : > { %v7789_v57 = vpop.f32.mrf.mxu0  ;;  %v7670_v34 = vpop.f32.mrf.mxu1 }
 0x5ff   : > { %v6406_v16 = vadd.f32 %v7669_v62, %v7394_v41  ;;  %v6458_v7 = vrot.slane %v6215_v25, 1 }
 0x600   : > { %v6217_v37 = vpop.f32.mrf.mxu0  ;;  %v7671_v8 = vpop.f32.mrf.mxu1 }
 0x601   : > { %v6461_v51 = vsel %vm9404_vm1, %v6458_v7, 0.0 }
 0x602   : > { %v7790_v59 = vpop.f32.mrf.mxu0 }
 0x61c   : > { %v6445_v0 = vpop.f32.mrf.mxu0 }
 0x61d   : > { %v6446_v1 = vadd.f32 %v6445_v0, %v6406_v16 }
 0x61e   : > { %v7809_v47 = vpop.f32.mrf.mxu0 }
 0x61f   : > { %v6456_v33 = vadd.f32 %v6455_v3, %v6446_v1 }
 0x620   : > { %v6448_v35 = vpop.f32.mrf.mxu0 }
 0x621   : > { %v6462_v50 = vadd.f32 %v6461_v51, %v6456_v33 }
 0x622   : > { %v7810_v4 = vpop.f32.mrf.mxu0 }
 0x623   : > { %v6463_v54 = vmax.f32 %v6462_v50, 0.0 }
 0x625   : > { %v6464_v5 = vpack.c.bf16 %v6463_v54, %v6463_v54 }
 0x627   : > { %7828 = vmatmul.mubr.bf16.vlgmr.msra.gmra.mxu1 %v6464_v5 }
 0x6e7   : > { %v6570_v10 = vpop.f32.mrf.mxu1 }
 0x6e8   : > { %v6571_v43 = vadd.f32 %v7419_v9, %v6570_v10 }
 0x6e9   : > { %v7829_v11 = vpop.f32.mrf.mxu1 }
 0x6ea   : > { %v6577_v12 = vrot.slane %v6571_v43, 1  ;;  %v6585_v18 = vrot.slane %v6571_v43, 3 }
 0x6eb   : > { %v6573_v13 = vpop.f32.mrf.mxu1 }
 0x6ec   : > { %v6579_v49 = vmax.f32 %v6571_v43, %v6577_v12 }
 0x6ed   : > { %v7830_v14 = vpop.f32.mrf.mxu1 }
 0x6ee   : > { %v6581_v15 = vrot.slane %v6579_v49, 1  ;;  %v6583_v17 = vrot.slane %v6579_v49, 2  ;;  %v6587_v19 = vsel %vm2353_vm3, %v6571_v43, %v6579_v49 }
 0x6f0   : > { %v6589_v20 = vsel %vm6588_vm4, %v6587_v19, %v6581_v15 }
 0x6f1   : > { %v6591_v21 = vsel %vm6590_vm5, %v6589_v20, %v6583_v17 }
 0x6f2   : > { %v6593_v22 = vsel %vm6592_vm6, %v6591_v21, %v6585_v18 }
 0x6f3   : > { %v6594_v30 = vpack.c.bf16 %v6593_v22, %v6593_v22 }
 0x6f5   : > { %v6599_v24 = vsel %vm6597_vm8, %v6594_v30, %v6598_v23 }
 0x6f6   : > { %6600 = vst [vmem:[%s487_s29] sm:$0x7] %v6599_v24 }
 0x6f7 PF: > { %p24_p8 = scmp.ge.s32.totalorder %s9286_s27, 4   ;;  %s9659_s17 = smov %s9091_s18 }
 0x6f8   : > { %s9660_s18 = smov %s9095_s19  ;;  %s9661_s19 = smov %s9298_s16 }
 0x6f9   : > { %s9662_s20 = smov %s9286_s27  ;;  %26 = sbr.rel (!%p24_p8) target bundleno = 9 (0x9), region = 128 }
 0x6fe   :  { %6620 = vsyncpa [#allocation3], 1 }
 0x6ff   :  { %6622 = vsyncpa [#allocation3 + $0x1], 1 }
 0x700   :  { %6623 = vsyncpa [#allocation5], 1 }
 0x701   :  { %6624 = vsyncpa [#allocation8], 1 }
 0x702   :  { %6625 = vsyncpa [#allocation11], 1 }

</bundles_post_ra>
